<compile_context>
chip_gen: v7x
topology: tpu7x:2x2x1
jax: 0.10.0
libtpu: 0.0.40
codegen_flags: <defaults>
</compile_context>

<pallas_src>
import jax
import jax.numpy as jnp
from jax.experimental import pallas as pl
from jax.experimental.pallas import tpu as pltpu

LANE = 128
SUBLANE = 8
UNROLL_THRESHOLD = 16   # static unroll up to this seq length, fori_loop beyond
FORI_UNROLL = 4


def _round_up(x: int, m: int) -> int:
    return (x + m - 1) // m * m


def make_lstm_kernel(num_layers: int, seq: int, batch_p: int, hidden_p: int, matmul_dtype):
    """Kernel body for fixed (num_layers, seq, padded batch, padded hidden)."""
    Hp = hidden_p
    Bp = batch_p
    md = matmul_dtype

    def kernel(*refs):
        # refs layout:
        #   [x_ref (S*Bp, D),
        #    (w_ih_l (in_p, 4Hp), w_hh_l (Hp, 4Hp), b_l (1, 4Hp)) * num_layers,
        #    fc_w (Hp, O), fc_b (1, O),
        #    out_ref (Bp, O),
        #    gx_scratch (S*Bp, 4Hp) f32,
        #    seq_scratch (S*Bp, Hp) f32   (only if num_layers > 1)]
        x_ref = refs[0]
        idx = 1
        layer_params = []
        for _ in range(num_layers):
            layer_params.append((refs[idx], refs[idx + 1], refs[idx + 2]))
            idx += 3
        fc_w, fc_b = refs[idx], refs[idx + 1]
        out_ref = refs[idx + 2]
        gx_ref = refs[idx + 3]
        seq_ref = refs[idx + 4] if num_layers > 1 else None

        h = None
        for layer in range(num_layers):
            w_ih, w_hh, b = layer_params[layer]
            last = layer == num_layers - 1

            # Layer input slab: x for layer 0, previous layer's sequence scratch otherwise.
            layer_in = x_ref[...] if layer == 0 else seq_ref[...]

            # Hoisted input projection for ALL timesteps (one big MXU slab, bias folded in),
            # materialized to VMEM scratch -> the serial recurrence only does h @ W_hh.
            gx_ref[...] = (
                jnp.dot(layer_in.astype(md), w_ih[...], preferred_element_type=jnp.float32)
                + b[...]
            )  # (S*Bp, 4Hp), PyTorch gate order i, f, g, o (each block Hp lanes wide)

            # h0 = c0 = 0 (matches the PyTorch module's zero initial states).
            h0 = jnp.zeros((Bp, Hp), jnp.float32)
            c0 = jnp.zeros((Bp, Hp), jnp.float32)

            def step(t_start, h, c):
                # Only one small matmul remains on the recurrent critical path.
                gates = gx_ref[pl.ds(t_start, Bp), :] + jnp.dot(
                    h.astype(md), w_hh[...], preferred_element_type=jnp.float32
                )  # (Bp, 4Hp)
                # Gate blocks are 128-lane aligned -> whole-vreg slices, full-lane
                # elementwise math (EUP sigmoid/tanh + VPU cell update), all f32.
                i_g = jax.nn.sigmoid(gates[:, 0 * Hp:1 * Hp])
                f_g = jax.nn.sigmoid(gates[:, 1 * Hp:2 * Hp])
                g_g = jnp.tanh(gates[:, 2 * Hp:3 * Hp])
                o_g = jax.nn.sigmoid(gates[:, 3 * Hp:4 * Hp])
                c = f_g * c + i_g * g_g
                h = o_g * jnp.tanh(c)
                if not last:
                    # One aligned vst per step into the sequence scratch (next layer's input).
                    seq_ref[pl.ds(t_start, Bp), :] = h
                return h, c

            if seq <= UNROLL_THRESHOLD:
                h, c = h0, c0
                for t in range(seq):
                    h, c = step(t * Bp, h, c)
            else:
                def body(t, carry):
                    hh, cc = carry
                    t_start = pl.multiple_of(t * Bp, Bp)
                    return step(t_start, hh, cc)

                h, c = jax.lax.fori_loop(0, seq, body, (h0, c0), unroll=FORI_UNROLL)

        # fc(out[:, -1, :]) == fc(top-layer h at the last timestep).
        out_ref[...] = (
            jnp.dot(h, fc_w[...], preferred_element_type=jnp.float32) + fc_b[...]
        )

    return kernel


def _pad_gate_cols(w, H, Hp):
    """(in, 4H) -> (in, 4Hp): each gate's columns zero-padded to Hp (lane-aligned).

    NOTE: the pad MUST be exactly zero (weights AND bias) -- zero gate pre-activations on
    pad lanes keep c = h = 0 there inductively.
    """
    if H == Hp:
        return w
    out = jnp.zeros((w.shape[0], 4 * Hp), w.dtype)
    for g in range(4):
        out = out.at[:, g * Hp:g * Hp + H].set(w[:, g * H:(g + 1) * H])
    return out


def _pad_rows(w, rows_p):
    """Zero-pad leading (contraction) dim to rows_p."""
    pad = rows_p - w.shape[0]
    if pad == 0:
        return w
    return jnp.concatenate([w, jnp.zeros((pad,) + w.shape[1:], w.dtype)], axis=0)


def _nbytes(shape, dtype):
    n = 1
    for s in shape:
        n *= int(s)
    return n * jnp.dtype(dtype).itemsize


def lstm_forward_pallas(x, params, *, hidden_dim, num_layers, output_dim,
                        matmul_dtype=jnp.float32):
    """x: (batch, seq, input_dim) float32. params: dict of pre-transposed weights."""
    B, S, D = x.shape
    H, O = hidden_dim, output_dim
    Hp = _round_up(H, LANE)      # gate blocks lane-tile aligned
    Bp = _round_up(B, SUBLANE)   # per-step rows sublane-tile aligned

    # Time-major, batch-padded, flattened: row t*Bp + b == (timestep t, batch b).
    # Pad rows are zero (so padded h/c also stay zero; they are sliced off the output below).
    x_tm = jnp.transpose(x, (1, 0, 2))                       # (S, B, D)
    if Bp != B:
        x_tm = jnp.pad(x_tm, ((0, 0), (0, Bp - B), (0, 0)))  # (S, Bp, D)
    x_tm = x_tm.reshape(S * Bp, D).astype(matmul_dtype)

    flat_inputs = [x_tm]
    for l in range(num_layers):
        in_dp = D if l == 0 else Hp
        w_ih = _pad_rows(_pad_gate_cols(params[f"w_ih_{l}"], H, Hp), in_dp).astype(matmul_dtype)
        w_hh = _pad_rows(_pad_gate_cols(params[f"w_hh_{l}"], H, Hp), Hp).astype(matmul_dtype)
        b = _pad_gate_cols(params[f"b_{l}"], H, Hp)   # stays f32; pad entries are exactly 0
        flat_inputs += [w_ih, w_hh, b]
    flat_inputs += [_pad_rows(params["fc_w"], Hp), params["fc_b"]]

    kernel = make_lstm_kernel(num_layers, S, Bp, Hp, matmul_dtype)

    scratch_shapes = [pltpu.VMEM((S * Bp, 4 * Hp), jnp.float32)]   # gx slab
    if num_layers > 1:
        scratch_shapes.append(pltpu.VMEM((S * Bp, Hp), jnp.float32))  # layer sequence buffer

    # VMEM limit derived from the actual resident set (inputs + output + scratch), with
    # headroom for (8,128) tile padding; clamped to v7x's 64 MiB physical VMEM.
    resident = sum(_nbytes(a.shape, a.dtype) for a in flat_inputs)
    resident += _nbytes((Bp, O), jnp.float32)
    resident += _nbytes((S * Bp, 4 * Hp), jnp.float32)
    if num_layers > 1:
        resident += _nbytes((S * Bp, Hp), jnp.float32)
    vmem_limit = int(min(64 * 1024 * 1024, max(3 * resident, 16 * 1024 * 1024)))

    vmem_spec = pl.BlockSpec(memory_space=pltpu.MemorySpace.VMEM)
    out = pl.pallas_call(
        kernel,
        out_shape=jax.ShapeDtypeStruct((Bp, O), jnp.float32),
        in_specs=[vmem_spec] * len(flat_inputs),
        out_specs=vmem_spec,
        scratch_shapes=scratch_shapes,
        compiler_params=pltpu.CompilerParams(vmem_limit_bytes=vmem_limit),
    )(*flat_inputs)
    # Drop the padded batch rows.
    return out[:B]


def init_params(key, input_dim, hidden_dim, num_layers, output_dim):
    """Deterministic synthetic init mimicking PyTorch's U(-1/sqrt(H), 1/sqrt(H))."""
    H = hidden_dim
    bound = 1.0 / jnp.sqrt(jnp.float32(H))
    params = {}
    for l in range(num_layers):
        in_d = input_dim if l == 0 else H
        key, k1, k2, k3, k4 = jax.random.split(key, 5)
        # Stored pre-transposed: (in, 4H) so the kernel does x @ W.
        params[f"w_ih_{l}"] = jax.random.uniform(k1, (in_d, 4 * H), jnp.float32, -bound, bound)
        params[f"w_hh_{l}"] = jax.random.uniform(k2, (H, 4 * H), jnp.float32, -bound, bound)
        b_ih = jax.random.uniform(k3, (4 * H,), jnp.float32, -bound, bound)
        b_hh = jax.random.uniform(k4, (4 * H,), jnp.float32, -bound, bound)
        params[f"b_{l}"] = (b_ih + b_hh).reshape(1, 4 * H)
    key, k5, k6 = jax.random.split(key, 3)
    fc_bound = 1.0 / jnp.sqrt(jnp.float32(H))
    params["fc_w"] = jax.random.uniform(k5, (H, output_dim), jnp.float32, -fc_bound, fc_bound)
    params["fc_b"] = jax.random.uniform(k6, (1, output_dim), jnp.float32, -fc_bound, fc_bound)
    return params


def lstm_forward_ref(x, params, *, hidden_dim, num_layers, output_dim,
                     matmul_dtype=jnp.float32):
    """Pure-JAX reference (unpadded), mirroring the kernel's matmul-dtype cast points."""
    B, S, _ = x.shape
    H = hidden_dim
    md = matmul_dtype
    layer_in = x
    for l in range(num_layers):
        w_ih = params[f"w_ih_{l}"].astype(md)
        w_hh = params[f"w_hh_{l}"].astype(md)
        b = params[f"b_{l}"]
        h = jnp.zeros((B, H), jnp.float32)
        c = jnp.zeros((B, H), jnp.float32)
        outs = []
        for t in range(S):
            gates = (
                jnp.dot(layer_in[:, t, :].astype(md), w_ih, preferred_element_type=jnp.float32)
                + jnp.dot(h.astype(md), w_hh, preferred_element_type=jnp.float32)
                + b
            )
            i_g = jax.nn.sigmoid(gates[:, 0 * H:1 * H])
            f_g = jax.nn.sigmoid(gates[:, 1 * H:2 * H])
            g_g = jnp.tanh(gates[:, 2 * H:3 * H])
            o_g = jax.nn.sigmoid(gates[:, 3 * H:4 * H])
            c = f_g * c + i_g * g_g
            h = o_g * jnp.tanh(c)
            outs.append(h)
        layer_in = jnp.stack(outs, axis=1)
    return (
        jnp.dot(layer_in[:, -1, :], params["fc_w"], preferred_element_type=jnp.float32)
        + params["fc_b"]
    )


if __name__ == "__main__":
    input_dim, hidden_dim, num_layers, output_dim = 4, 32, 2, 4

    key = jax.random.PRNGKey(0)
    kx1, kx2, kp = jax.random.split(key, 3)
    params = init_params(kp, input_dim, hidden_dim, num_layers, output_dim)
    kw = dict(hidden_dim=hidden_dim, num_layers=num_layers, output_dim=output_dim)

    # Case 1: small batch/seq, f32 (static-unroll recurrence path; batch padded 2 -> 8).
    x1 = jax.random.normal(kx1, (2, 8, input_dim), jnp.float32)
    out1 = jax.block_until_ready(lstm_forward_pallas(x1, params, **kw))
    ref1 = lstm_forward_ref(x1, params, **kw)
    assert out1.shape == (2, output_dim)
    assert jnp.allclose(out1, ref1, rtol=1e-4, atol=1e-5), (out1, ref1)

    # Case 2: seq > 16 -> lax.fori_loop(unroll=4) recurrence path, batch padded 4 -> 8.
    x2 = jax.random.normal(kx2, (4, 24, input_dim), jnp.float32)
    out2 = jax.block_until_ready(lstm_forward_pallas(x2, params, **kw))
    ref2 = lstm_forward_ref(x2, params, **kw)
    assert out2.shape == (4, output_dim)
    assert jnp.allclose(out2, ref2, rtol=5e-4, atol=1e-4), (out2, ref2)

    # Case 3: bf16 weights + matmul activations (gate/cell math stays f32).
    out3 = jax.block_until_ready(
        lstm_forward_pallas(x1, params, matmul_dtype=jnp.bfloat16, **kw)
    )
    ref3 = lstm_forward_ref(x1, params, matmul_dtype=jnp.bfloat16, **kw)
    assert out3.shape == (2, output_dim)
    assert jnp.allclose(out3, ref3, rtol=5e-2, atol=5e-2), (out3, ref3)

    print("KERNEL_OK")
</pallas_src>

<mosaic_0001>
module attributes {stable_mosaic.version = 11 : i64} {
  func.func @kernel(%arg0: memref<64x4xf32, #tpu.memory_space<vmem>>, %arg1: memref<4x512xf32, #tpu.memory_space<vmem>>, %arg2: memref<128x512xf32, #tpu.memory_space<vmem>>, %arg3: memref<1x512xf32, #tpu.memory_space<vmem>>, %arg4: memref<128x512xf32, #tpu.memory_space<vmem>>, %arg5: memref<128x512xf32, #tpu.memory_space<vmem>>, %arg6: memref<1x512xf32, #tpu.memory_space<vmem>>, %arg7: memref<128x4xf32, #tpu.memory_space<vmem>>, %arg8: memref<1x4xf32, #tpu.memory_space<vmem>>, %arg9: memref<8x4xf32, #tpu.memory_space<vmem>>, %arg10: memref<64x512xf32, #tpu.memory_space<vmem>>, %arg11: memref<64x128xf32, #tpu.memory_space<vmem>>) attributes {dimension_semantics = [], scalar_prefetch = 0 : i64, scratch_operands = 2 : i64, tpu.core_type = #tpu.core_type<tc>} {
    %c0 = arith.constant 0 : index
    %c0_0 = arith.constant 0 : index
    %0 = vector.load %arg0[%c0, %c0_0] : memref<64x4xf32, #tpu.memory_space<vmem>>, vector<64x4xf32>
    %c0_1 = arith.constant 0 : index
    %c0_2 = arith.constant 0 : index
    %1 = vector.load %arg1[%c0_1, %c0_2] : memref<4x512xf32, #tpu.memory_space<vmem>>, vector<4x512xf32>
    %cst = arith.constant dense<0.000000e+00> : vector<64x512xf32>
    %2 = tpu.matmul %0, %1, %cst {dimension_numbers = #tpu.dot_dimension_numbers<[1], [0], [0], [1], [0, 0, 1, 1], [], []>} : vector<64x4xf32>, vector<4x512xf32>, vector<64x512xf32> -> vector<64x512xf32>
    %c0_3 = arith.constant 0 : index
    %c0_4 = arith.constant 0 : index
    %3 = vector.load %arg3[%c0_3, %c0_4] : memref<1x512xf32, #tpu.memory_space<vmem>>, vector<1x512xf32>
    %4 = vector.broadcast %3 : vector<1x512xf32> to vector<64x512xf32>
    %5 = arith.addf %2, %4 : vector<64x512xf32>
    %c0_5 = arith.constant 0 : index
    %c0_6 = arith.constant 0 : index
    %6 = vector.load %arg10[%c0_5, %c0_6] : memref<64x512xf32, #tpu.memory_space<vmem>>, vector<64x512xf32>
    tpu.vector_store %arg10[%c0_5, %c0_6], %5 {strides = array<i32>} : memref<64x512xf32, #tpu.memory_space<vmem>>, vector<64x512xf32>,
    %cst_7 = arith.constant 0.000000e+00 : f32
    %7 = vector.broadcast %cst_7 : f32 to vector<8x128xf32>
    %cst_8 = arith.constant 0.000000e+00 : f32
    %8 = vector.broadcast %cst_8 : f32 to vector<8x128xf32>
    %c0_9 = arith.constant 0 : index
    %c0_10 = arith.constant 0 : index
    %9 = vector.load %arg10[%c0_9, %c0_10] : memref<64x512xf32, #tpu.memory_space<vmem>>, vector<8x512xf32>
    %c0_11 = arith.constant 0 : index
    %c0_12 = arith.constant 0 : index
    %10 = vector.load %arg2[%c0_11, %c0_12] : memref<128x512xf32, #tpu.memory_space<vmem>>, vector<128x512xf32>
    %cst_13 = arith.constant dense<0.000000e+00> : vector<8x512xf32>
    %11 = tpu.matmul %7, %10, %cst_13 {dimension_numbers = #tpu.dot_dimension_numbers<[1], [0], [0], [1], [0, 0, 1, 1], [], []>} : vector<8x128xf32>, vector<128x512xf32>, vector<8x512xf32> -> vector<8x512xf32>
    %12 = arith.addf %9, %11 : vector<8x512xf32>
    %13 = vector.extract_strided_slice %12 {offsets = [0, 0], sizes = [8, 128], strides = [1, 1]} : vector<8x512xf32> to vector<8x128xf32>
    %14 = arith.negf %13 : vector<8x128xf32>
    %15 = math.exp %14 : vector<8x128xf32>
    %cst_14 = arith.constant 1.000000e+00 : f32
    %16 = vector.broadcast %cst_14 : f32 to vector<8x128xf32>
    %17 = arith.addf %16, %15 : vector<8x128xf32>
    %18 = arith.divf %16, %17 : vector<8x128xf32>
    %19 = vector.extract_strided_slice %12 {offsets = [0, 128], sizes = [8, 128], strides = [1, 1]} : vector<8x512xf32> to vector<8x128xf32>
    %20 = arith.negf %19 : vector<8x128xf32>
    %21 = math.exp %20 : vector<8x128xf32>
    %cst_15 = arith.constant 1.000000e+00 : f32
    %22 = vector.broadcast %cst_15 : f32 to vector<8x128xf32>
    %23 = arith.addf %22, %21 : vector<8x128xf32>
    %24 = arith.divf %22, %23 : vector<8x128xf32>
    %25 = vector.extract_strided_slice %12 {offsets = [0, 256], sizes = [8, 128], strides = [1, 1]} : vector<8x512xf32> to vector<8x128xf32>
    %26 = math.tanh %25 : vector<8x128xf32>
    %27 = vector.extract_strided_slice %12 {offsets = [0, 384], sizes = [8, 128], strides = [1, 1]} : vector<8x512xf32> to vector<8x128xf32>
    %28 = arith.negf %27 : vector<8x128xf32>
    %29 = math.exp %28 : vector<8x128xf32>
    %cst_16 = arith.constant 1.000000e+00 : f32
    %30 = vector.broadcast %cst_16 : f32 to vector<8x128xf32>
    %31 = arith.addf %30, %29 : vector<8x128xf32>
    %32 = arith.divf %30, %31 : vector<8x128xf32>
    %33 = arith.mulf %24, %8 : vector<8x128xf32>
    %34 = arith.mulf %18, %26 : vector<8x128xf32>
    %35 = arith.addf %33, %34 : vector<8x128xf32>
    %36 = math.tanh %35 : vector<8x128xf32>
    %37 = arith.mulf %32, %36 : vector<8x128xf32>
    %c0_17 = arith.constant 0 : index
    %c0_18 = arith.constant 0 : index
    %38 = vector.load %arg11[%c0_17, %c0_18] : memref<64x128xf32, #tpu.memory_space<vmem>>, vector<8x128xf32>
    tpu.vector_store %arg11[%c0_17, %c0_18], %37 {strides = array<i32>} : memref<64x128xf32, #tpu.memory_space<vmem>>, vector<8x128xf32>,
    %c8 = arith.constant 8 : index
    %c0_19 = arith.constant 0 : index
    %39 = vector.load %arg10[%c8, %c0_19] : memref<64x512xf32, #tpu.memory_space<vmem>>, vector<8x512xf32>
    %c0_20 = arith.constant 0 : index
    %c0_21 = arith.constant 0 : index
    %40 = vector.load %arg2[%c0_20, %c0_21] : memref<128x512xf32, #tpu.memory_space<vmem>>, vector<128x512xf32>
    %cst_22 = arith.constant dense<0.000000e+00> : vector<8x512xf32>
    %41 = tpu.matmul %37, %40, %cst_22 {dimension_numbers = #tpu.dot_dimension_numbers<[1], [0], [0], [1], [0, 0, 1, 1], [], []>} : vector<8x128xf32>, vector<128x512xf32>, vector<8x512xf32> -> vector<8x512xf32>
    %42 = arith.addf %39, %41 : vector<8x512xf32>
    %43 = vector.extract_strided_slice %42 {offsets = [0, 0], sizes = [8, 128], strides = [1, 1]} : vector<8x512xf32> to vector<8x128xf32>
    %44 = arith.negf %43 : vector<8x128xf32>
    %45 = math.exp %44 : vector<8x128xf32>
    %cst_23 = arith.constant 1.000000e+00 : f32
    %46 = vector.broadcast %cst_23 : f32 to vector<8x128xf32>
    %47 = arith.addf %46, %45 : vector<8x128xf32>
    %48 = arith.divf %46, %47 : vector<8x128xf32>
    %49 = vector.extract_strided_slice %42 {offsets = [0, 128], sizes = [8, 128], strides = [1, 1]} : vector<8x512xf32> to vector<8x128xf32>
    %50 = arith.negf %49 : vector<8x128xf32>
    %51 = math.exp %50 : vector<8x128xf32>
    %cst_24 = arith.constant 1.000000e+00 : f32
    %52 = vector.broadcast %cst_24 : f32 to vector<8x128xf32>
    %53 = arith.addf %52, %51 : vector<8x128xf32>
    %54 = arith.divf %52, %53 : vector<8x128xf32>
    %55 = vector.extract_strided_slice %42 {offsets = [0, 256], sizes = [8, 128], strides = [1, 1]} : vector<8x512xf32> to vector<8x128xf32>
    %56 = math.tanh %55 : vector<8x128xf32>
    %57 = vector.extract_strided_slice %42 {offsets = [0, 384], sizes = [8, 128], strides = [1, 1]} : vector<8x512xf32> to vector<8x128xf32>
    %58 = arith.negf %57 : vector<8x128xf32>
    %59 = math.exp %58 : vector<8x128xf32>
    %cst_25 = arith.constant 1.000000e+00 : f32
    %60 = vector.broadcast %cst_25 : f32 to vector<8x128xf32>
    %61 = arith.addf %60, %59 : vector<8x128xf32>
    %62 = arith.divf %60, %61 : vector<8x128xf32>
    %63 = arith.mulf %54, %35 : vector<8x128xf32>
    %64 = arith.mulf %48, %56 : vector<8x128xf32>
    %65 = arith.addf %63, %64 : vector<8x128xf32>
    %66 = math.tanh %65 : vector<8x128xf32>
    %67 = arith.mulf %62, %66 : vector<8x128xf32>
    %c8_26 = arith.constant 8 : index
    %c0_27 = arith.constant 0 : index
    %68 = vector.load %arg11[%c8_26, %c0_27] : memref<64x128xf32, #tpu.memory_space<vmem>>, vector<8x128xf32>
    tpu.vector_store %arg11[%c8_26, %c0_27], %67 {strides = array<i32>} : memref<64x128xf32, #tpu.memory_space<vmem>>, vector<8x128xf32>,
    %c16 = arith.constant 16 : index
    %c0_28 = arith.constant 0 : index
    %69 = vector.load %arg10[%c16, %c0_28] : memref<64x512xf32, #tpu.memory_space<vmem>>, vector<8x512xf32>
    %c0_29 = arith.constant 0 : index
    %c0_30 = arith.constant 0 : index
    %70 = vector.load %arg2[%c0_29, %c0_30] : memref<128x512xf32, #tpu.memory_space<vmem>>, vector<128x512xf32>
    %cst_31 = arith.constant dense<0.000000e+00> : vector<8x512xf32>
    %71 = tpu.matmul %67, %70, %cst_31 {dimension_numbers = #tpu.dot_dimension_numbers<[1], [0], [0], [1], [0, 0, 1, 1], [], []>} : vector<8x128xf32>, vector<128x512xf32>, vector<8x512xf32> -> vector<8x512xf32>
    %72 = arith.addf %69, %71 : vector<8x512xf32>
    %73 = vector.extract_strided_slice %72 {offsets = [0, 0], sizes = [8, 128], strides = [1, 1]} : vector<8x512xf32> to vector<8x128xf32>
    %74 = arith.negf %73 : vector<8x128xf32>
    %75 = math.exp %74 : vector<8x128xf32>
    %cst_32 = arith.constant 1.000000e+00 : f32
    %76 = vector.broadcast %cst_32 : f32 to vector<8x128xf32>
    %77 = arith.addf %76, %75 : vector<8x128xf32>
    %78 = arith.divf %76, %77 : vector<8x128xf32>
    %79 = vector.extract_strided_slice %72 {offsets = [0, 128], sizes = [8, 128], strides = [1, 1]} : vector<8x512xf32> to vector<8x128xf32>
    %80 = arith.negf %79 : vector<8x128xf32>
    %81 = math.exp %80 : vector<8x128xf32>
    %cst_33 = arith.constant 1.000000e+00 : f32
    %82 = vector.broadcast %cst_33 : f32 to vector<8x128xf32>
    %83 = arith.addf %82, %81 : vector<8x128xf32>
    %84 = arith.divf %82, %83 : vector<8x128xf32>
    %85 = vector.extract_strided_slice %72 {offsets = [0, 256], sizes = [8, 128], strides = [1, 1]} : vector<8x512xf32> to vector<8x128xf32>
    %86 = math.tanh %85 : vector<8x128xf32>
    %87 = vector.extract_strided_slice %72 {offsets = [0, 384], sizes = [8, 128], strides = [1, 1]} : vector<8x512xf32> to vector<8x128xf32>
    %88 = arith.negf %87 : vector<8x128xf32>
    %89 = math.exp %88 : vector<8x128xf32>
    %cst_34 = arith.constant 1.000000e+00 : f32
    %90 = vector.broadcast %cst_34 : f32 to vector<8x128xf32>
    %91 = arith.addf %90, %89 : vector<8x128xf32>
    %92 = arith.divf %90, %91 : vector<8x128xf32>
    %93 = arith.mulf %84, %65 : vector<8x128xf32>
    %94 = arith.mulf %78, %86 : vector<8x128xf32>
    %95 = arith.addf %93, %94 : vector<8x128xf32>
    %96 = math.tanh %95 : vector<8x128xf32>
    %97 = arith.mulf %92, %96 : vector<8x128xf32>
    %c16_35 = arith.constant 16 : index
    %c0_36 = arith.constant 0 : index
    %98 = vector.load %arg11[%c16_35, %c0_36] : memref<64x128xf32, #tpu.memory_space<vmem>>, vector<8x128xf32>
    tpu.vector_store %arg11[%c16_35, %c0_36], %97 {strides = array<i32>} : memref<64x128xf32, #tpu.memory_space<vmem>>, vector<8x128xf32>,
    %c24 = arith.constant 24 : index
    %c0_37 = arith.constant 0 : index
    %99 = vector.load %arg10[%c24, %c0_37] : memref<64x512xf32, #tpu.memory_space<vmem>>, vector<8x512xf32>
    %c0_38 = arith.constant 0 : index
    %c0_39 = arith.constant 0 : index
    %100 = vector.load %arg2[%c0_38, %c0_39] : memref<128x512xf32, #tpu.memory_space<vmem>>, vector<128x512xf32>
    %cst_40 = arith.constant dense<0.000000e+00> : vector<8x512xf32>
    %101 = tpu.matmul %97, %100, %cst_40 {dimension_numbers = #tpu.dot_dimension_numbers<[1], [0], [0], [1], [0, 0, 1, 1], [], []>} : vector<8x128xf32>, vector<128x512xf32>, vector<8x512xf32> -> vector<8x512xf32>
    %102 = arith.addf %99, %101 : vector<8x512xf32>
    %103 = vector.extract_strided_slice %102 {offsets = [0, 0], sizes = [8, 128], strides = [1, 1]} : vector<8x512xf32> to vector<8x128xf32>
    %104 = arith.negf %103 : vector<8x128xf32>
    %105 = math.exp %104 : vector<8x128xf32>
    %cst_41 = arith.constant 1.000000e+00 : f32
    %106 = vector.broadcast %cst_41 : f32 to vector<8x128xf32>
    %107 = arith.addf %106, %105 : vector<8x128xf32>
    %108 = arith.divf %106, %107 : vector<8x128xf32>
    %109 = vector.extract_strided_slice %102 {offsets = [0, 128], sizes = [8, 128], strides = [1, 1]} : vector<8x512xf32> to vector<8x128xf32>
    %110 = arith.negf %109 : vector<8x128xf32>
    %111 = math.exp %110 : vector<8x128xf32>
    %cst_42 = arith.constant 1.000000e+00 : f32
    %112 = vector.broadcast %cst_42 : f32 to vector<8x128xf32>
    %113 = arith.addf %112, %111 : vector<8x128xf32>
    %114 = arith.divf %112, %113 : vector<8x128xf32>
    %115 = vector.extract_strided_slice %102 {offsets = [0, 256], sizes = [8, 128], strides = [1, 1]} : vector<8x512xf32> to vector<8x128xf32>
    %116 = math.tanh %115 : vector<8x128xf32>
    %117 = vector.extract_strided_slice %102 {offsets = [0, 384], sizes = [8, 128], strides = [1, 1]} : vector<8x512xf32> to vector<8x128xf32>
    %118 = arith.negf %117 : vector<8x128xf32>
    %119 = math.exp %118 : vector<8x128xf32>
    %cst_43 = arith.constant 1.000000e+00 : f32
    %120 = vector.broadcast %cst_43 : f32 to vector<8x128xf32>
    %121 = arith.addf %120, %119 : vector<8x128xf32>
    %122 = arith.divf %120, %121 : vector<8x128xf32>
    %123 = arith.mulf %114, %95 : vector<8x128xf32>
    %124 = arith.mulf %108, %116 : vector<8x128xf32>
    %125 = arith.addf %123, %124 : vector<8x128xf32>
    %126 = math.tanh %125 : vector<8x128xf32>
    %127 = arith.mulf %122, %126 : vector<8x128xf32>
    %c24_44 = arith.constant 24 : index
    %c0_45 = arith.constant 0 : index
    %128 = vector.load %arg11[%c24_44, %c0_45] : memref<64x128xf32, #tpu.memory_space<vmem>>, vector<8x128xf32>
    tpu.vector_store %arg11[%c24_44, %c0_45], %127 {strides = array<i32>} : memref<64x128xf32, #tpu.memory_space<vmem>>, vector<8x128xf32>,
    %c32 = arith.constant 32 : index
    %c0_46 = arith.constant 0 : index
    %129 = vector.load %arg10[%c32, %c0_46] : memref<64x512xf32, #tpu.memory_space<vmem>>, vector<8x512xf32>
    %c0_47 = arith.constant 0 : index
    %c0_48 = arith.constant 0 : index
    %130 = vector.load %arg2[%c0_47, %c0_48] : memref<128x512xf32, #tpu.memory_space<vmem>>, vector<128x512xf32>
    %cst_49 = arith.constant dense<0.000000e+00> : vector<8x512xf32>
    %131 = tpu.matmul %127, %130, %cst_49 {dimension_numbers = #tpu.dot_dimension_numbers<[1], [0], [0], [1], [0, 0, 1, 1], [], []>} : vector<8x128xf32>, vector<128x512xf32>, vector<8x512xf32> -> vector<8x512xf32>
    %132 = arith.addf %129, %131 : vector<8x512xf32>
    %133 = vector.extract_strided_slice %132 {offsets = [0, 0], sizes = [8, 128], strides = [1, 1]} : vector<8x512xf32> to vector<8x128xf32>
    %134 = arith.negf %133 : vector<8x128xf32>
    %135 = math.exp %134 : vector<8x128xf32>
    %cst_50 = arith.constant 1.000000e+00 : f32
    %136 = vector.broadcast %cst_50 : f32 to vector<8x128xf32>
    %137 = arith.addf %136, %135 : vector<8x128xf32>
    %138 = arith.divf %136, %137 : vector<8x128xf32>
    %139 = vector.extract_strided_slice %132 {offsets = [0, 128], sizes = [8, 128], strides = [1, 1]} : vector<8x512xf32> to vector<8x128xf32>
    %140 = arith.negf %139 : vector<8x128xf32>
    %141 = math.exp %140 : vector<8x128xf32>
    %cst_51 = arith.constant 1.000000e+00 : f32
    %142 = vector.broadcast %cst_51 : f32 to vector<8x128xf32>
    %143 = arith.addf %142, %141 : vector<8x128xf32>
    %144 = arith.divf %142, %143 : vector<8x128xf32>
    %145 = vector.extract_strided_slice %132 {offsets = [0, 256], sizes = [8, 128], strides = [1, 1]} : vector<8x512xf32> to vector<8x128xf32>
    %146 = math.tanh %145 : vector<8x128xf32>
    %147 = vector.extract_strided_slice %132 {offsets = [0, 384], sizes = [8, 128], strides = [1, 1]} : vector<8x512xf32> to vector<8x128xf32>
    %148 = arith.negf %147 : vector<8x128xf32>
    %149 = math.exp %148 : vector<8x128xf32>
    %cst_52 = arith.constant 1.000000e+00 : f32
    %150 = vector.broadcast %cst_52 : f32 to vector<8x128xf32>
    %151 = arith.addf %150, %149 : vector<8x128xf32>
    %152 = arith.divf %150, %151 : vector<8x128xf32>
    %153 = arith.mulf %144, %125 : vector<8x128xf32>
    %154 = arith.mulf %138, %146 : vector<8x128xf32>
    %155 = arith.addf %153, %154 : vector<8x128xf32>
    %156 = math.tanh %155 : vector<8x128xf32>
    %157 = arith.mulf %152, %156 : vector<8x128xf32>
    %c32_53 = arith.constant 32 : index
    %c0_54 = arith.constant 0 : index
    %158 = vector.load %arg11[%c32_53, %c0_54] : memref<64x128xf32, #tpu.memory_space<vmem>>, vector<8x128xf32>
    tpu.vector_store %arg11[%c32_53, %c0_54], %157 {strides = array<i32>} : memref<64x128xf32, #tpu.memory_space<vmem>>, vector<8x128xf32>,
    %c40 = arith.constant 40 : index
    %c0_55 = arith.constant 0 : index
    %159 = vector.load %arg10[%c40, %c0_55] : memref<64x512xf32, #tpu.memory_space<vmem>>, vector<8x512xf32>
    %c0_56 = arith.constant 0 : index
    %c0_57 = arith.constant 0 : index
    %160 = vector.load %arg2[%c0_56, %c0_57] : memref<128x512xf32, #tpu.memory_space<vmem>>, vector<128x512xf32>
    %cst_58 = arith.constant dense<0.000000e+00> : vector<8x512xf32>
    %161 = tpu.matmul %157, %160, %cst_58 {dimension_numbers = #tpu.dot_dimension_numbers<[1], [0], [0], [1], [0, 0, 1, 1], [], []>} : vector<8x128xf32>, vector<128x512xf32>, vector<8x512xf32> -> vector<8x512xf32>
    %162 = arith.addf %159, %161 : vector<8x512xf32>
    %163 = vector.extract_strided_slice %162 {offsets = [0, 0], sizes = [8, 128], strides = [1, 1]} : vector<8x512xf32> to vector<8x128xf32>
    %164 = arith.negf %163 : vector<8x128xf32>
    %165 = math.exp %164 : vector<8x128xf32>
    %cst_59 = arith.constant 1.000000e+00 : f32
    %166 = vector.broadcast %cst_59 : f32 to vector<8x128xf32>
    %167 = arith.addf %166, %165 : vector<8x128xf32>
    %168 = arith.divf %166, %167 : vector<8x128xf32>
    %169 = vector.extract_strided_slice %162 {offsets = [0, 128], sizes = [8, 128], strides = [1, 1]} : vector<8x512xf32> to vector<8x128xf32>
    %170 = arith.negf %169 : vector<8x128xf32>
    %171 = math.exp %170 : vector<8x128xf32>
    %cst_60 = arith.constant 1.000000e+00 : f32
    %172 = vector.broadcast %cst_60 : f32 to vector<8x128xf32>
    %173 = arith.addf %172, %171 : vector<8x128xf32>
    %174 = arith.divf %172, %173 : vector<8x128xf32>
    %175 = vector.extract_strided_slice %162 {offsets = [0, 256], sizes = [8, 128], strides = [1, 1]} : vector<8x512xf32> to vector<8x128xf32>
    %176 = math.tanh %175 : vector<8x128xf32>
    %177 = vector.extract_strided_slice %162 {offsets = [0, 384], sizes = [8, 128], strides = [1, 1]} : vector<8x512xf32> to vector<8x128xf32>
    %178 = arith.negf %177 : vector<8x128xf32>
    %179 = math.exp %178 : vector<8x128xf32>
    %cst_61 = arith.constant 1.000000e+00 : f32
    %180 = vector.broadcast %cst_61 : f32 to vector<8x128xf32>
    %181 = arith.addf %180, %179 : vector<8x128xf32>
    %182 = arith.divf %180, %181 : vector<8x128xf32>
    %183 = arith.mulf %174, %155 : vector<8x128xf32>
    %184 = arith.mulf %168, %176 : vector<8x128xf32>
    %185 = arith.addf %183, %184 : vector<8x128xf32>
    %186 = math.tanh %185 : vector<8x128xf32>
    %187 = arith.mulf %182, %186 : vector<8x128xf32>
    %c40_62 = arith.constant 40 : index
    %c0_63 = arith.constant 0 : index
    %188 = vector.load %arg11[%c40_62, %c0_63] : memref<64x128xf32, #tpu.memory_space<vmem>>, vector<8x128xf32>
    tpu.vector_store %arg11[%c40_62, %c0_63], %187 {strides = array<i32>} : memref<64x128xf32, #tpu.memory_space<vmem>>, vector<8x128xf32>,
    %c48 = arith.constant 48 : index
    %c0_64 = arith.constant 0 : index
    %189 = vector.load %arg10[%c48, %c0_64] : memref<64x512xf32, #tpu.memory_space<vmem>>, vector<8x512xf32>
    %c0_65 = arith.constant 0 : index
    %c0_66 = arith.constant 0 : index
    %190 = vector.load %arg2[%c0_65, %c0_66] : memref<128x512xf32, #tpu.memory_space<vmem>>, vector<128x512xf32>
    %cst_67 = arith.constant dense<0.000000e+00> : vector<8x512xf32>
    %191 = tpu.matmul %187, %190, %cst_67 {dimension_numbers = #tpu.dot_dimension_numbers<[1], [0], [0], [1], [0, 0, 1, 1], [], []>} : vector<8x128xf32>, vector<128x512xf32>, vector<8x512xf32> -> vector<8x512xf32>
    %192 = arith.addf %189, %191 : vector<8x512xf32>
    %193 = vector.extract_strided_slice %192 {offsets = [0, 0], sizes = [8, 128], strides = [1, 1]} : vector<8x512xf32> to vector<8x128xf32>
    %194 = arith.negf %193 : vector<8x128xf32>
    %195 = math.exp %194 : vector<8x128xf32>
    %cst_68 = arith.constant 1.000000e+00 : f32
    %196 = vector.broadcast %cst_68 : f32 to vector<8x128xf32>
    %197 = arith.addf %196, %195 : vector<8x128xf32>
    %198 = arith.divf %196, %197 : vector<8x128xf32>
    %199 = vector.extract_strided_slice %192 {offsets = [0, 128], sizes = [8, 128], strides = [1, 1]} : vector<8x512xf32> to vector<8x128xf32>
    %200 = arith.negf %199 : vector<8x128xf32>
    %201 = math.exp %200 : vector<8x128xf32>
    %cst_69 = arith.constant 1.000000e+00 : f32
    %202 = vector.broadcast %cst_69 : f32 to vector<8x128xf32>
    %203 = arith.addf %202, %201 : vector<8x128xf32>
    %204 = arith.divf %202, %203 : vector<8x128xf32>
    %205 = vector.extract_strided_slice %192 {offsets = [0, 256], sizes = [8, 128], strides = [1, 1]} : vector<8x512xf32> to vector<8x128xf32>
    %206 = math.tanh %205 : vector<8x128xf32>
    %207 = vector.extract_strided_slice %192 {offsets = [0, 384], sizes = [8, 128], strides = [1, 1]} : vector<8x512xf32> to vector<8x128xf32>
    %208 = arith.negf %207 : vector<8x128xf32>
    %209 = math.exp %208 : vector<8x128xf32>
    %cst_70 = arith.constant 1.000000e+00 : f32
    %210 = vector.broadcast %cst_70 : f32 to vector<8x128xf32>
    %211 = arith.addf %210, %209 : vector<8x128xf32>
    %212 = arith.divf %210, %211 : vector<8x128xf32>
    %213 = arith.mulf %204, %185 : vector<8x128xf32>
    %214 = arith.mulf %198, %206 : vector<8x128xf32>
    %215 = arith.addf %213, %214 : vector<8x128xf32>
    %216 = math.tanh %215 : vector<8x128xf32>
    %217 = arith.mulf %212, %216 : vector<8x128xf32>
    %c48_71 = arith.constant 48 : index
    %c0_72 = arith.constant 0 : index
    %218 = vector.load %arg11[%c48_71, %c0_72] : memref<64x128xf32, #tpu.memory_space<vmem>>, vector<8x128xf32>
    tpu.vector_store %arg11[%c48_71, %c0_72], %217 {strides = array<i32>} : memref<64x128xf32, #tpu.memory_space<vmem>>, vector<8x128xf32>,
    %c56 = arith.constant 56 : index
    %c0_73 = arith.constant 0 : index
    %219 = vector.load %arg10[%c56, %c0_73] : memref<64x512xf32, #tpu.memory_space<vmem>>, vector<8x512xf32>
    %c0_74 = arith.constant 0 : index
    %c0_75 = arith.constant 0 : index
    %220 = vector.load %arg2[%c0_74, %c0_75] : memref<128x512xf32, #tpu.memory_space<vmem>>, vector<128x512xf32>
    %cst_76 = arith.constant dense<0.000000e+00> : vector<8x512xf32>
    %221 = tpu.matmul %217, %220, %cst_76 {dimension_numbers = #tpu.dot_dimension_numbers<[1], [0], [0], [1], [0, 0, 1, 1], [], []>} : vector<8x128xf32>, vector<128x512xf32>, vector<8x512xf32> -> vector<8x512xf32>
    %222 = arith.addf %219, %221 : vector<8x512xf32>
    %223 = vector.extract_strided_slice %222 {offsets = [0, 0], sizes = [8, 128], strides = [1, 1]} : vector<8x512xf32> to vector<8x128xf32>
    %224 = arith.negf %223 : vector<8x128xf32>
    %225 = math.exp %224 : vector<8x128xf32>
    %cst_77 = arith.constant 1.000000e+00 : f32
    %226 = vector.broadcast %cst_77 : f32 to vector<8x128xf32>
    %227 = arith.addf %226, %225 : vector<8x128xf32>
    %228 = arith.divf %226, %227 : vector<8x128xf32>
    %229 = vector.extract_strided_slice %222 {offsets = [0, 128], sizes = [8, 128], strides = [1, 1]} : vector<8x512xf32> to vector<8x128xf32>
    %230 = arith.negf %229 : vector<8x128xf32>
    %231 = math.exp %230 : vector<8x128xf32>
    %cst_78 = arith.constant 1.000000e+00 : f32
    %232 = vector.broadcast %cst_78 : f32 to vector<8x128xf32>
    %233 = arith.addf %232, %231 : vector<8x128xf32>
    %234 = arith.divf %232, %233 : vector<8x128xf32>
    %235 = vector.extract_strided_slice %222 {offsets = [0, 256], sizes = [8, 128], strides = [1, 1]} : vector<8x512xf32> to vector<8x128xf32>
    %236 = math.tanh %235 : vector<8x128xf32>
    %237 = vector.extract_strided_slice %222 {offsets = [0, 384], sizes = [8, 128], strides = [1, 1]} : vector<8x512xf32> to vector<8x128xf32>
    %238 = arith.negf %237 : vector<8x128xf32>
    %239 = math.exp %238 : vector<8x128xf32>
    %cst_79 = arith.constant 1.000000e+00 : f32
    %240 = vector.broadcast %cst_79 : f32 to vector<8x128xf32>
    %241 = arith.addf %240, %239 : vector<8x128xf32>
    %242 = arith.divf %240, %241 : vector<8x128xf32>
    %243 = arith.mulf %234, %215 : vector<8x128xf32>
    %244 = arith.mulf %228, %236 : vector<8x128xf32>
    %245 = arith.addf %243, %244 : vector<8x128xf32>
    %246 = math.tanh %245 : vector<8x128xf32>
    %247 = arith.mulf %242, %246 : vector<8x128xf32>
    %c56_80 = arith.constant 56 : index
    %c0_81 = arith.constant 0 : index
    %248 = vector.load %arg11[%c56_80, %c0_81] : memref<64x128xf32, #tpu.memory_space<vmem>>, vector<8x128xf32>
    tpu.vector_store %arg11[%c56_80, %c0_81], %247 {strides = array<i32>} : memref<64x128xf32, #tpu.memory_space<vmem>>, vector<8x128xf32>,
    %c0_82 = arith.constant 0 : index
    %c0_83 = arith.constant 0 : index
    %249 = vector.load %arg11[%c0_82, %c0_83] : memref<64x128xf32, #tpu.memory_space<vmem>>, vector<64x128xf32>
    %c0_84 = arith.constant 0 : index
    %c0_85 = arith.constant 0 : index
    %250 = vector.load %arg4[%c0_84, %c0_85] : memref<128x512xf32, #tpu.memory_space<vmem>>, vector<128x512xf32>
    %cst_86 = arith.constant dense<0.000000e+00> : vector<64x512xf32>
    %251 = tpu.matmul %249, %250, %cst_86 {dimension_numbers = #tpu.dot_dimension_numbers<[1], [0], [0], [1], [0, 0, 1, 1], [], []>} : vector<64x128xf32>, vector<128x512xf32>, vector<64x512xf32> -> vector<64x512xf32>
    %c0_87 = arith.constant 0 : index
    %c0_88 = arith.constant 0 : index
    %252 = vector.load %arg6[%c0_87, %c0_88] : memref<1x512xf32, #tpu.memory_space<vmem>>, vector<1x512xf32>
    %253 = vector.broadcast %252 : vector<1x512xf32> to vector<64x512xf32>
    %254 = arith.addf %251, %253 : vector<64x512xf32>
    %c0_89 = arith.constant 0 : index
    %c0_90 = arith.constant 0 : index
    %255 = vector.load %arg10[%c0_89, %c0_90] : memref<64x512xf32, #tpu.memory_space<vmem>>, vector<64x512xf32>
    tpu.vector_store %arg10[%c0_89, %c0_90], %254 {strides = array<i32>} : memref<64x512xf32, #tpu.memory_space<vmem>>, vector<64x512xf32>,
    %cst_91 = arith.constant 0.000000e+00 : f32
    %256 = vector.broadcast %cst_91 : f32 to vector<8x128xf32>
    %cst_92 = arith.constant 0.000000e+00 : f32
    %257 = vector.broadcast %cst_92 : f32 to vector<8x128xf32>
    %c0_93 = arith.constant 0 : index
    %c0_94 = arith.constant 0 : index
    %258 = vector.load %arg10[%c0_93, %c0_94] : memref<64x512xf32, #tpu.memory_space<vmem>>, vector<8x512xf32>
    %c0_95 = arith.constant 0 : index
    %c0_96 = arith.constant 0 : index
    %259 = vector.load %arg5[%c0_95, %c0_96] : memref<128x512xf32, #tpu.memory_space<vmem>>, vector<128x512xf32>
    %cst_97 = arith.constant dense<0.000000e+00> : vector<8x512xf32>
    %260 = tpu.matmul %256, %259, %cst_97 {dimension_numbers = #tpu.dot_dimension_numbers<[1], [0], [0], [1], [0, 0, 1, 1], [], []>} : vector<8x128xf32>, vector<128x512xf32>, vector<8x512xf32> -> vector<8x512xf32>
    %261 = arith.addf %258, %260 : vector<8x512xf32>
    %262 = vector.extract_strided_slice %261 {offsets = [0, 0], sizes = [8, 128], strides = [1, 1]} : vector<8x512xf32> to vector<8x128xf32>
    %263 = arith.negf %262 : vector<8x128xf32>
    %264 = math.exp %263 : vector<8x128xf32>
    %cst_98 = arith.constant 1.000000e+00 : f32
    %265 = vector.broadcast %cst_98 : f32 to vector<8x128xf32>
    %266 = arith.addf %265, %264 : vector<8x128xf32>
    %267 = arith.divf %265, %266 : vector<8x128xf32>
    %268 = vector.extract_strided_slice %261 {offsets = [0, 128], sizes = [8, 128], strides = [1, 1]} : vector<8x512xf32> to vector<8x128xf32>
    %269 = arith.negf %268 : vector<8x128xf32>
    %270 = math.exp %269 : vector<8x128xf32>
    %cst_99 = arith.constant 1.000000e+00 : f32
    %271 = vector.broadcast %cst_99 : f32 to vector<8x128xf32>
    %272 = arith.addf %271, %270 : vector<8x128xf32>
    %273 = arith.divf %271, %272 : vector<8x128xf32>
    %274 = vector.extract_strided_slice %261 {offsets = [0, 256], sizes = [8, 128], strides = [1, 1]} : vector<8x512xf32> to vector<8x128xf32>
    %275 = math.tanh %274 : vector<8x128xf32>
    %276 = vector.extract_strided_slice %261 {offsets = [0, 384], sizes = [8, 128], strides = [1, 1]} : vector<8x512xf32> to vector<8x128xf32>
    %277 = arith.negf %276 : vector<8x128xf32>
    %278 = math.exp %277 : vector<8x128xf32>
    %cst_100 = arith.constant 1.000000e+00 : f32
    %279 = vector.broadcast %cst_100 : f32 to vector<8x128xf32>
    %280 = arith.addf %279, %278 : vector<8x128xf32>
    %281 = arith.divf %279, %280 : vector<8x128xf32>
    %282 = arith.mulf %273, %257 : vector<8x128xf32>
    %283 = arith.mulf %267, %275 : vector<8x128xf32>
    %284 = arith.addf %282, %283 : vector<8x128xf32>
    %285 = math.tanh %284 : vector<8x128xf32>
    %286 = arith.mulf %281, %285 : vector<8x128xf32>
    %c8_101 = arith.constant 8 : index
    %c0_102 = arith.constant 0 : index
    %287 = vector.load %arg10[%c8_101, %c0_102] : memref<64x512xf32, #tpu.memory_space<vmem>>, vector<8x512xf32>
    %c0_103 = arith.constant 0 : index
    %c0_104 = arith.constant 0 : index
    %288 = vector.load %arg5[%c0_103, %c0_104] : memref<128x512xf32, #tpu.memory_space<vmem>>, vector<128x512xf32>
    %cst_105 = arith.constant dense<0.000000e+00> : vector<8x512xf32>
    %289 = tpu.matmul %286, %288, %cst_105 {dimension_numbers = #tpu.dot_dimension_numbers<[1], [0], [0], [1], [0, 0, 1, 1], [], []>} : vector<8x128xf32>, vector<128x512xf32>, vector<8x512xf32> -> vector<8x512xf32>
    %290 = arith.addf %287, %289 : vector<8x512xf32>
    %291 = vector.extract_strided_slice %290 {offsets = [0, 0], sizes = [8, 128], strides = [1, 1]} : vector<8x512xf32> to vector<8x128xf32>
    %292 = arith.negf %291 : vector<8x128xf32>
    %293 = math.exp %292 : vector<8x128xf32>
    %cst_106 = arith.constant 1.000000e+00 : f32
    %294 = vector.broadcast %cst_106 : f32 to vector<8x128xf32>
    %295 = arith.addf %294, %293 : vector<8x128xf32>
    %296 = arith.divf %294, %295 : vector<8x128xf32>
    %297 = vector.extract_strided_slice %290 {offsets = [0, 128], sizes = [8, 128], strides = [1, 1]} : vector<8x512xf32> to vector<8x128xf32>
    %298 = arith.negf %297 : vector<8x128xf32>
    %299 = math.exp %298 : vector<8x128xf32>
    %cst_107 = arith.constant 1.000000e+00 : f32
    %300 = vector.broadcast %cst_107 : f32 to vector<8x128xf32>
    %301 = arith.addf %300, %299 : vector<8x128xf32>
    %302 = arith.divf %300, %301 : vector<8x128xf32>
    %303 = vector.extract_strided_slice %290 {offsets = [0, 256], sizes = [8, 128], strides = [1, 1]} : vector<8x512xf32> to vector<8x128xf32>
    %304 = math.tanh %303 : vector<8x128xf32>
    %305 = vector.extract_strided_slice %290 {offsets = [0, 384], sizes = [8, 128], strides = [1, 1]} : vector<8x512xf32> to vector<8x128xf32>
    %306 = arith.negf %305 : vector<8x128xf32>
    %307 = math.exp %306 : vector<8x128xf32>
    %cst_108 = arith.constant 1.000000e+00 : f32
    %308 = vector.broadcast %cst_108 : f32 to vector<8x128xf32>
    %309 = arith.addf %308, %307 : vector<8x128xf32>
    %310 = arith.divf %308, %309 : vector<8x128xf32>
    %311 = arith.mulf %302, %284 : vector<8x128xf32>
    %312 = arith.mulf %296, %304 : vector<8x128xf32>
    %313 = arith.addf %311, %312 : vector<8x128xf32>
    %314 = math.tanh %313 : vector<8x128xf32>
    %315 = arith.mulf %310, %314 : vector<8x128xf32>
    %c16_109 = arith.constant 16 : index
    %c0_110 = arith.constant 0 : index
    %316 = vector.load %arg10[%c16_109, %c0_110] : memref<64x512xf32, #tpu.memory_space<vmem>>, vector<8x512xf32>
    %c0_111 = arith.constant 0 : index
    %c0_112 = arith.constant 0 : index
    %317 = vector.load %arg5[%c0_111, %c0_112] : memref<128x512xf32, #tpu.memory_space<vmem>>, vector<128x512xf32>
    %cst_113 = arith.constant dense<0.000000e+00> : vector<8x512xf32>
    %318 = tpu.matmul %315, %317, %cst_113 {dimension_numbers = #tpu.dot_dimension_numbers<[1], [0], [0], [1], [0, 0, 1, 1], [], []>} : vector<8x128xf32>, vector<128x512xf32>, vector<8x512xf32> -> vector<8x512xf32>
    %319 = arith.addf %316, %318 : vector<8x512xf32>
    %320 = vector.extract_strided_slice %319 {offsets = [0, 0], sizes = [8, 128], strides = [1, 1]} : vector<8x512xf32> to vector<8x128xf32>
    %321 = arith.negf %320 : vector<8x128xf32>
    %322 = math.exp %321 : vector<8x128xf32>
    %cst_114 = arith.constant 1.000000e+00 : f32
    %323 = vector.broadcast %cst_114 : f32 to vector<8x128xf32>
    %324 = arith.addf %323, %322 : vector<8x128xf32>
    %325 = arith.divf %323, %324 : vector<8x128xf32>
    %326 = vector.extract_strided_slice %319 {offsets = [0, 128], sizes = [8, 128], strides = [1, 1]} : vector<8x512xf32> to vector<8x128xf32>
    %327 = arith.negf %326 : vector<8x128xf32>
    %328 = math.exp %327 : vector<8x128xf32>
    %cst_115 = arith.constant 1.000000e+00 : f32
    %329 = vector.broadcast %cst_115 : f32 to vector<8x128xf32>
    %330 = arith.addf %329, %328 : vector<8x128xf32>
    %331 = arith.divf %329, %330 : vector<8x128xf32>
    %332 = vector.extract_strided_slice %319 {offsets = [0, 256], sizes = [8, 128], strides = [1, 1]} : vector<8x512xf32> to vector<8x128xf32>
    %333 = math.tanh %332 : vector<8x128xf32>
    %334 = vector.extract_strided_slice %319 {offsets = [0, 384], sizes = [8, 128], strides = [1, 1]} : vector<8x512xf32> to vector<8x128xf32>
    %335 = arith.negf %334 : vector<8x128xf32>
    %336 = math.exp %335 : vector<8x128xf32>
    %cst_116 = arith.constant 1.000000e+00 : f32
    %337 = vector.broadcast %cst_116 : f32 to vector<8x128xf32>
    %338 = arith.addf %337, %336 : vector<8x128xf32>
    %339 = arith.divf %337, %338 : vector<8x128xf32>
    %340 = arith.mulf %331, %313 : vector<8x128xf32>
    %341 = arith.mulf %325, %333 : vector<8x128xf32>
    %342 = arith.addf %340, %341 : vector<8x128xf32>
    %343 = math.tanh %342 : vector<8x128xf32>
    %344 = arith.mulf %339, %343 : vector<8x128xf32>
    %c24_117 = arith.constant 24 : index
    %c0_118 = arith.constant 0 : index
    %345 = vector.load %arg10[%c24_117, %c0_118] : memref<64x512xf32, #tpu.memory_space<vmem>>, vector<8x512xf32>
    %c0_119 = arith.constant 0 : index
    %c0_120 = arith.constant 0 : index
    %346 = vector.load %arg5[%c0_119, %c0_120] : memref<128x512xf32, #tpu.memory_space<vmem>>, vector<128x512xf32>
    %cst_121 = arith.constant dense<0.000000e+00> : vector<8x512xf32>
    %347 = tpu.matmul %344, %346, %cst_121 {dimension_numbers = #tpu.dot_dimension_numbers<[1], [0], [0], [1], [0, 0, 1, 1], [], []>} : vector<8x128xf32>, vector<128x512xf32>, vector<8x512xf32> -> vector<8x512xf32>
    %348 = arith.addf %345, %347 : vector<8x512xf32>
    %349 = vector.extract_strided_slice %348 {offsets = [0, 0], sizes = [8, 128], strides = [1, 1]} : vector<8x512xf32> to vector<8x128xf32>
    %350 = arith.negf %349 : vector<8x128xf32>
    %351 = math.exp %350 : vector<8x128xf32>
    %cst_122 = arith.constant 1.000000e+00 : f32
    %352 = vector.broadcast %cst_122 : f32 to vector<8x128xf32>
    %353 = arith.addf %352, %351 : vector<8x128xf32>
    %354 = arith.divf %352, %353 : vector<8x128xf32>
    %355 = vector.extract_strided_slice %348 {offsets = [0, 128], sizes = [8, 128], strides = [1, 1]} : vector<8x512xf32> to vector<8x128xf32>
    %356 = arith.negf %355 : vector<8x128xf32>
    %357 = math.exp %356 : vector<8x128xf32>
    %cst_123 = arith.constant 1.000000e+00 : f32
    %358 = vector.broadcast %cst_123 : f32 to vector<8x128xf32>
    %359 = arith.addf %358, %357 : vector<8x128xf32>
    %360 = arith.divf %358, %359 : vector<8x128xf32>
    %361 = vector.extract_strided_slice %348 {offsets = [0, 256], sizes = [8, 128], strides = [1, 1]} : vector<8x512xf32> to vector<8x128xf32>
    %362 = math.tanh %361 : vector<8x128xf32>
    %363 = vector.extract_strided_slice %348 {offsets = [0, 384], sizes = [8, 128], strides = [1, 1]} : vector<8x512xf32> to vector<8x128xf32>
    %364 = arith.negf %363 : vector<8x128xf32>
    %365 = math.exp %364 : vector<8x128xf32>
    %cst_124 = arith.constant 1.000000e+00 : f32
    %366 = vector.broadcast %cst_124 : f32 to vector<8x128xf32>
    %367 = arith.addf %366, %365 : vector<8x128xf32>
    %368 = arith.divf %366, %367 : vector<8x128xf32>
    %369 = arith.mulf %360, %342 : vector<8x128xf32>
    %370 = arith.mulf %354, %362 : vector<8x128xf32>
    %371 = arith.addf %369, %370 : vector<8x128xf32>
    %372 = math.tanh %371 : vector<8x128xf32>
    %373 = arith.mulf %368, %372 : vector<8x128xf32>
    %c32_125 = arith.constant 32 : index
    %c0_126 = arith.constant 0 : index
    %374 = vector.load %arg10[%c32_125, %c0_126] : memref<64x512xf32, #tpu.memory_space<vmem>>, vector<8x512xf32>
    %c0_127 = arith.constant 0 : index
    %c0_128 = arith.constant 0 : index
    %375 = vector.load %arg5[%c0_127, %c0_128] : memref<128x512xf32, #tpu.memory_space<vmem>>, vector<128x512xf32>
    %cst_129 = arith.constant dense<0.000000e+00> : vector<8x512xf32>
    %376 = tpu.matmul %373, %375, %cst_129 {dimension_numbers = #tpu.dot_dimension_numbers<[1], [0], [0], [1], [0, 0, 1, 1], [], []>} : vector<8x128xf32>, vector<128x512xf32>, vector<8x512xf32> -> vector<8x512xf32>
    %377 = arith.addf %374, %376 : vector<8x512xf32>
    %378 = vector.extract_strided_slice %377 {offsets = [0, 0], sizes = [8, 128], strides = [1, 1]} : vector<8x512xf32> to vector<8x128xf32>
    %379 = arith.negf %378 : vector<8x128xf32>
    %380 = math.exp %379 : vector<8x128xf32>
    %cst_130 = arith.constant 1.000000e+00 : f32
    %381 = vector.broadcast %cst_130 : f32 to vector<8x128xf32>
    %382 = arith.addf %381, %380 : vector<8x128xf32>
    %383 = arith.divf %381, %382 : vector<8x128xf32>
    %384 = vector.extract_strided_slice %377 {offsets = [0, 128], sizes = [8, 128], strides = [1, 1]} : vector<8x512xf32> to vector<8x128xf32>
    %385 = arith.negf %384 : vector<8x128xf32>
    %386 = math.exp %385 : vector<8x128xf32>
    %cst_131 = arith.constant 1.000000e+00 : f32
    %387 = vector.broadcast %cst_131 : f32 to vector<8x128xf32>
    %388 = arith.addf %387, %386 : vector<8x128xf32>
    %389 = arith.divf %387, %388 : vector<8x128xf32>
    %390 = vector.extract_strided_slice %377 {offsets = [0, 256], sizes = [8, 128], strides = [1, 1]} : vector<8x512xf32> to vector<8x128xf32>
    %391 = math.tanh %390 : vector<8x128xf32>
    %392 = vector.extract_strided_slice %377 {offsets = [0, 384], sizes = [8, 128], strides = [1, 1]} : vector<8x512xf32> to vector<8x128xf32>
    %393 = arith.negf %392 : vector<8x128xf32>
    %394 = math.exp %393 : vector<8x128xf32>
    %cst_132 = arith.constant 1.000000e+00 : f32
    %395 = vector.broadcast %cst_132 : f32 to vector<8x128xf32>
    %396 = arith.addf %395, %394 : vector<8x128xf32>
    %397 = arith.divf %395, %396 : vector<8x128xf32>
    %398 = arith.mulf %389, %371 : vector<8x128xf32>
    %399 = arith.mulf %383, %391 : vector<8x128xf32>
    %400 = arith.addf %398, %399 : vector<8x128xf32>
    %401 = math.tanh %400 : vector<8x128xf32>
    %402 = arith.mulf %397, %401 : vector<8x128xf32>
    %c40_133 = arith.constant 40 : index
    %c0_134 = arith.constant 0 : index
    %403 = vector.load %arg10[%c40_133, %c0_134] : memref<64x512xf32, #tpu.memory_space<vmem>>, vector<8x512xf32>
    %c0_135 = arith.constant 0 : index
    %c0_136 = arith.constant 0 : index
    %404 = vector.load %arg5[%c0_135, %c0_136] : memref<128x512xf32, #tpu.memory_space<vmem>>, vector<128x512xf32>
    %cst_137 = arith.constant dense<0.000000e+00> : vector<8x512xf32>
    %405 = tpu.matmul %402, %404, %cst_137 {dimension_numbers = #tpu.dot_dimension_numbers<[1], [0], [0], [1], [0, 0, 1, 1], [], []>} : vector<8x128xf32>, vector<128x512xf32>, vector<8x512xf32> -> vector<8x512xf32>
    %406 = arith.addf %403, %405 : vector<8x512xf32>
    %407 = vector.extract_strided_slice %406 {offsets = [0, 0], sizes = [8, 128], strides = [1, 1]} : vector<8x512xf32> to vector<8x128xf32>
    %408 = arith.negf %407 : vector<8x128xf32>
    %409 = math.exp %408 : vector<8x128xf32>
    %cst_138 = arith.constant 1.000000e+00 : f32
    %410 = vector.broadcast %cst_138 : f32 to vector<8x128xf32>
    %411 = arith.addf %410, %409 : vector<8x128xf32>
    %412 = arith.divf %410, %411 : vector<8x128xf32>
    %413 = vector.extract_strided_slice %406 {offsets = [0, 128], sizes = [8, 128], strides = [1, 1]} : vector<8x512xf32> to vector<8x128xf32>
    %414 = arith.negf %413 : vector<8x128xf32>
    %415 = math.exp %414 : vector<8x128xf32>
    %cst_139 = arith.constant 1.000000e+00 : f32
    %416 = vector.broadcast %cst_139 : f32 to vector<8x128xf32>
    %417 = arith.addf %416, %415 : vector<8x128xf32>
    %418 = arith.divf %416, %417 : vector<8x128xf32>
    %419 = vector.extract_strided_slice %406 {offsets = [0, 256], sizes = [8, 128], strides = [1, 1]} : vector<8x512xf32> to vector<8x128xf32>
    %420 = math.tanh %419 : vector<8x128xf32>
    %421 = vector.extract_strided_slice %406 {offsets = [0, 384], sizes = [8, 128], strides = [1, 1]} : vector<8x512xf32> to vector<8x128xf32>
    %422 = arith.negf %421 : vector<8x128xf32>
    %423 = math.exp %422 : vector<8x128xf32>
    %cst_140 = arith.constant 1.000000e+00 : f32
    %424 = vector.broadcast %cst_140 : f32 to vector<8x128xf32>
    %425 = arith.addf %424, %423 : vector<8x128xf32>
    %426 = arith.divf %424, %425 : vector<8x128xf32>
    %427 = arith.mulf %418, %400 : vector<8x128xf32>
    %428 = arith.mulf %412, %420 : vector<8x128xf32>
    %429 = arith.addf %427, %428 : vector<8x128xf32>
    %430 = math.tanh %429 : vector<8x128xf32>
    %431 = arith.mulf %426, %430 : vector<8x128xf32>
    %c48_141 = arith.constant 48 : index
    %c0_142 = arith.constant 0 : index
    %432 = vector.load %arg10[%c48_141, %c0_142] : memref<64x512xf32, #tpu.memory_space<vmem>>, vector<8x512xf32>
    %c0_143 = arith.constant 0 : index
    %c0_144 = arith.constant 0 : index
    %433 = vector.load %arg5[%c0_143, %c0_144] : memref<128x512xf32, #tpu.memory_space<vmem>>, vector<128x512xf32>
    %cst_145 = arith.constant dense<0.000000e+00> : vector<8x512xf32>
    %434 = tpu.matmul %431, %433, %cst_145 {dimension_numbers = #tpu.dot_dimension_numbers<[1], [0], [0], [1], [0, 0, 1, 1], [], []>} : vector<8x128xf32>, vector<128x512xf32>, vector<8x512xf32> -> vector<8x512xf32>
    %435 = arith.addf %432, %434 : vector<8x512xf32>
    %436 = vector.extract_strided_slice %435 {offsets = [0, 0], sizes = [8, 128], strides = [1, 1]} : vector<8x512xf32> to vector<8x128xf32>
    %437 = arith.negf %436 : vector<8x128xf32>
    %438 = math.exp %437 : vector<8x128xf32>
    %cst_146 = arith.constant 1.000000e+00 : f32
    %439 = vector.broadcast %cst_146 : f32 to vector<8x128xf32>
    %440 = arith.addf %439, %438 : vector<8x128xf32>
    %441 = arith.divf %439, %440 : vector<8x128xf32>
    %442 = vector.extract_strided_slice %435 {offsets = [0, 128], sizes = [8, 128], strides = [1, 1]} : vector<8x512xf32> to vector<8x128xf32>
    %443 = arith.negf %442 : vector<8x128xf32>
    %444 = math.exp %443 : vector<8x128xf32>
    %cst_147 = arith.constant 1.000000e+00 : f32
    %445 = vector.broadcast %cst_147 : f32 to vector<8x128xf32>
    %446 = arith.addf %445, %444 : vector<8x128xf32>
    %447 = arith.divf %445, %446 : vector<8x128xf32>
    %448 = vector.extract_strided_slice %435 {offsets = [0, 256], sizes = [8, 128], strides = [1, 1]} : vector<8x512xf32> to vector<8x128xf32>
    %449 = math.tanh %448 : vector<8x128xf32>
    %450 = vector.extract_strided_slice %435 {offsets = [0, 384], sizes = [8, 128], strides = [1, 1]} : vector<8x512xf32> to vector<8x128xf32>
    %451 = arith.negf %450 : vector<8x128xf32>
    %452 = math.exp %451 : vector<8x128xf32>
    %cst_148 = arith.constant 1.000000e+00 : f32
    %453 = vector.broadcast %cst_148 : f32 to vector<8x128xf32>
    %454 = arith.addf %453, %452 : vector<8x128xf32>
    %455 = arith.divf %453, %454 : vector<8x128xf32>
    %456 = arith.mulf %447, %429 : vector<8x128xf32>
    %457 = arith.mulf %441, %449 : vector<8x128xf32>
    %458 = arith.addf %456, %457 : vector<8x128xf32>
    %459 = math.tanh %458 : vector<8x128xf32>
    %460 = arith.mulf %455, %459 : vector<8x128xf32>
    %c56_149 = arith.constant 56 : index
    %c0_150 = arith.constant 0 : index
    %461 = vector.load %arg10[%c56_149, %c0_150] : memref<64x512xf32, #tpu.memory_space<vmem>>, vector<8x512xf32>
    %c0_151 = arith.constant 0 : index
    %c0_152 = arith.constant 0 : index
    %462 = vector.load %arg5[%c0_151, %c0_152] : memref<128x512xf32, #tpu.memory_space<vmem>>, vector<128x512xf32>
    %cst_153 = arith.constant dense<0.000000e+00> : vector<8x512xf32>
    %463 = tpu.matmul %460, %462, %cst_153 {dimension_numbers = #tpu.dot_dimension_numbers<[1], [0], [0], [1], [0, 0, 1, 1], [], []>} : vector<8x128xf32>, vector<128x512xf32>, vector<8x512xf32> -> vector<8x512xf32>
    %464 = arith.addf %461, %463 : vector<8x512xf32>
    %465 = vector.extract_strided_slice %464 {offsets = [0, 0], sizes = [8, 128], strides = [1, 1]} : vector<8x512xf32> to vector<8x128xf32>
    %466 = arith.negf %465 : vector<8x128xf32>
    %467 = math.exp %466 : vector<8x128xf32>
    %cst_154 = arith.constant 1.000000e+00 : f32
    %468 = vector.broadcast %cst_154 : f32 to vector<8x128xf32>
    %469 = arith.addf %468, %467 : vector<8x128xf32>
    %470 = arith.divf %468, %469 : vector<8x128xf32>
    %471 = vector.extract_strided_slice %464 {offsets = [0, 128], sizes = [8, 128], strides = [1, 1]} : vector<8x512xf32> to vector<8x128xf32>
    %472 = arith.negf %471 : vector<8x128xf32>
    %473 = math.exp %472 : vector<8x128xf32>
    %cst_155 = arith.constant 1.000000e+00 : f32
    %474 = vector.broadcast %cst_155 : f32 to vector<8x128xf32>
    %475 = arith.addf %474, %473 : vector<8x128xf32>
    %476 = arith.divf %474, %475 : vector<8x128xf32>
    %477 = vector.extract_strided_slice %464 {offsets = [0, 256], sizes = [8, 128], strides = [1, 1]} : vector<8x512xf32> to vector<8x128xf32>
    %478 = math.tanh %477 : vector<8x128xf32>
    %479 = vector.extract_strided_slice %464 {offsets = [0, 384], sizes = [8, 128], strides = [1, 1]} : vector<8x512xf32> to vector<8x128xf32>
    %480 = arith.negf %479 : vector<8x128xf32>
    %481 = math.exp %480 : vector<8x128xf32>
    %cst_156 = arith.constant 1.000000e+00 : f32
    %482 = vector.broadcast %cst_156 : f32 to vector<8x128xf32>
    %483 = arith.addf %482, %481 : vector<8x128xf32>
    %484 = arith.divf %482, %483 : vector<8x128xf32>
    %485 = arith.mulf %476, %458 : vector<8x128xf32>
    %486 = arith.mulf %470, %478 : vector<8x128xf32>
    %487 = arith.addf %485, %486 : vector<8x128xf32>
    %488 = math.tanh %487 : vector<8x128xf32>
    %489 = arith.mulf %484, %488 : vector<8x128xf32>
    %c0_157 = arith.constant 0 : index
    %c0_158 = arith.constant 0 : index
    %490 = vector.load %arg7[%c0_157, %c0_158] : memref<128x4xf32, #tpu.memory_space<vmem>>, vector<128x4xf32>
    %cst_159 = arith.constant dense<0.000000e+00> : vector<8x4xf32>
    %491 = tpu.matmul %489, %490, %cst_159 {dimension_numbers = #tpu.dot_dimension_numbers<[1], [0], [0], [1], [0, 0, 1, 1], [], []>} : vector<8x128xf32>, vector<128x4xf32>, vector<8x4xf32> -> vector<8x4xf32>
    %c0_160 = arith.constant 0 : index
    %c0_161 = arith.constant 0 : index
    %492 = vector.load %arg8[%c0_160, %c0_161] : memref<1x4xf32, #tpu.memory_space<vmem>>, vector<1x4xf32>
    %493 = vector.broadcast %492 : vector<1x4xf32> to vector<8x4xf32>
    %494 = arith.addf %491, %493 : vector<8x4xf32>
    %c0_162 = arith.constant 0 : index
    %c0_163 = arith.constant 0 : index
    %495 = vector.load %arg9[%c0_162, %c0_163] : memref<8x4xf32, #tpu.memory_space<vmem>>, vector<8x4xf32>
    tpu.vector_store %arg9[%c0_162, %c0_163], %494 {strides = array<i32>} : memref<8x4xf32, #tpu.memory_space<vmem>>, vector<8x4xf32>,
    return
  }
}

</mosaic_0001>

<bundles_post_ra>
// kernel: tpu_custom_call.1
= control target key start
LH: loop header
LB: loop body
LE: loop exit
PB: predicated region body
PF: predicated region fallthrough
CT: control target
= control target key end

     0   :  { %14 = vsyncpa [#allocation5], 0  ;;  %s7104_s0 = inlined_call_operand.vmem [shape: f32[64,4], index: 0, kind: input, shape index: {}]   ;;  %s7105_s1 = inlined_call_operand.vmem [shape: f32[4,512], index: 1, kind: input, shape index: {}]   ;;  %s7106_s2 = inlined_call_operand.hbm [shape: f32[128,512], index: 2, kind: input, shape index: {}]   ;;  %s7107_s3 = inlined_call_operand.vmem [shape: f32[1,512], index: 3, kind: input, shape index: {}]   ;;  %s7108_s4 = inlined_call_operand.hbm [shape: f32[128,512], index: 4, kind: input, shape index: {}]   ;;  %s7109_s5 = inlined_call_operand.hbm [shape: f32[128,512], index: 5, kind: input, shape index: {}]   ;;  %s7110_s6 = inlined_call_operand.vmem [shape: f32[1,512], index: 6, kind: input, shape index: {}]   ;;  %s7111_s7 = inlined_call_operand.vmem [shape: f32[128,4], index: 7, kind: input, shape index: {}]   ;;  %s7112_s8 = inlined_call_operand.vmem [shape: f32[1,4], index: 8, kind: input, shape index: {}]   ;;  %s7113_s9 = inlined_call_operand.vmem [shape: f32[8,4], index: 9, kind: output, shape index: {}]  }
   0x1   :  { %15 = vsyncpa [#allocation7], 0  ;;  %s5918_s30 = smov [#allocation6]   ;;  %s5919_s11 = smov [#allocation4]  }
   0x2   :  { %s39_s10 = sshll.u32 %s5918_s30, 4  ;;  %s25_s12 = sshll.u32 %s5919_s11, 4  ;;  %s40_s10 = int_to_ptr.vmem [resolvable:$true] %s39_s10  ;;  %s5976_s12 = int_to_ptr.vmem [resolvable:$true] %s25_s12 }
   0x3   :  { %s5848_s15 = scalar_lea.hbm %s7108_s4, 8192 }
   0x4   :  { %p5849_p0 = scmp.ne.s32.totalorder %s7108_s4, %s5848_s15  ;;  %p5852_p1 = scmp.lt.u32.totalorder %s5848_s15, %s7108_s4 }
   0x6   :  { %p5854_p2 = pnand %p5852_p1, %p5849_p0 }
   0x8   :  { %5857 = shalt.err (!%p5854_p2)
}
   0x9   :  { %s5858_s20 = scalar_lea.vmem %s40_s10, 8192  ;;  %p5863_p4 = scmp.lt.s32.totalorder %s40_s10, %s40_s10 }
   0xa   :  { %p5859_p3 = scmp.ne.s32.totalorder %s40_s10, %s5858_s20  ;;  %p5864_p5 = scmp.lt.s32.totalorder %s5858_s20, %s5858_s20 }
   0xc   :  { %p5865_p6 = por %p5864_p5, %p5863_p4 }
   0xe   :  { %p5866_p7 = pnand %p5865_p6, %p5859_p3 }
  0x10   :  { %5869 = shalt.err (!%p5866_p7)
}
  0x11   :  { %s5920_s21 = smov 512   ;;  %s5921_s22 = smov 32  }
  0x12   :  { %45 = dma.hbm_to_vmem [thread:$0]  %s7108_s4, 8192, %s40_s10, [#allocation7], %s5920_s21, %s5920_s21, %s5921_s22  }
  0x13   :  { %s5870_s27 = scalar_lea.hbm %s7106_s2, 8192 }
  0x14   :  { %p5871_p8 = scmp.ne.s32.totalorder %s7106_s2, %s5870_s27  ;;  %p5874_p9 = scmp.lt.u32.totalorder %s5870_s27, %s7106_s2 }
  0x16   :  { %p5876_p10 = pnand %p5874_p9, %p5871_p8 }
  0x18   :  { %5879 = shalt.err (!%p5876_p10)
}
  0x19   :  { %s5880_s13 = scalar_lea.vmem %s5976_s12, 8192  ;;  %p5885_p12 = scmp.lt.s32.totalorder %s5976_s12, %s5976_s12 }
  0x1a   :  { %p5881_p11 = scmp.ne.s32.totalorder %s5976_s12, %s5880_s13  ;;  %p5886_p13 = scmp.lt.s32.totalorder %s5880_s13, %s5880_s13 }
  0x1c   :  { %p5887_p0 = por %p5886_p13, %p5885_p12 }
  0x1e   :  { %p5888_p1 = pnand %p5887_p0, %p5881_p11 }
  0x20   :  { %5891 = shalt.err (!%p5888_p1)
}
  0x21   :  { %31 = dma.hbm_to_vmem [thread:$0]  %s7106_s2, 8192, %s5976_s12, [#allocation5], %s5920_s21, %s5920_s21, %s5921_s22  }
  0x22   :  { %s5922_s14 = smov [#allocation8]   ;;  %s5892_s18 = scalar_lea.hbm %s7109_s5, 8192 }
  0x23   :  { %s51_s15 = sshll.u32 %s5922_s14, 4  ;;  %p5893_p2 = scmp.ne.s32.totalorder %s7109_s5, %s5892_s18  ;;  %s52_s15 = int_to_ptr.vmem [resolvable:$true] %s51_s15 }
  0x24   :  { %p5896_p3 = scmp.lt.u32.totalorder %s5892_s18, %s7109_s5 }
  0x26   :  { %p5898_p4 = pnand %p5896_p3, %p5893_p2 }
  0x28   :  { %5901 = shalt.err (!%p5898_p4)
}
  0x29   :  { %s5902_s25 = scalar_lea.vmem %s52_s15, 8192  ;;  %p5907_p6 = scmp.lt.s32.totalorder %s52_s15, %s52_s15 }
  0x2a   :  { %p5903_p5 = scmp.ne.s32.totalorder %s52_s15, %s5902_s25  ;;  %p5908_p7 = scmp.lt.s32.totalorder %s5902_s25, %s5902_s25 }
  0x2c   :  { %p5909_p8 = por %p5908_p7, %p5907_p6 }
  0x2e   :  { %p5910_p9 = pnand %p5909_p8, %p5903_p5 }
  0x30   :  { %5913 = shalt.err (!%p5910_p9)
}
  0x31   :  { %57 = dma.hbm_to_vmem [thread:$0]  %s7109_s5, 8192, %s52_s15, [#allocation7], %s5920_s21, %s5920_s21, %s5921_s22  }
  0x32   :  { %5914 = dma.done.wait [#allocation5], 8192  }
  0x33   :  { %5915 = vsyncadd [#allocation5], 4294959104 }
  0x34   :  { %5916 = dma.done.wait [#allocation7], 16384  }
  0x35   :  { %5917 = vsyncadd [#allocation7], 4294950912  ;;  %v5923_v0 = vmov 0.0   ;;  %v81_v1 = vld [vmem:[%s7105_s1] sm:$0xff]  ;;  %vm134_vm0 = vcmask 1043456   ;;  %v82_v2 = vld [vmem:[%s7105_s1 + $0x8] sm:$0xff] }
  0x36   :  { %207 = vmatprep.mubr.f32.mxu0 %v5923_v0  ;;  %320 = vmatprep.mubr.f32.mxu1 %v5923_v0  ;;  %v73_v3 = vld [vmem:[%s7104_s0] sm:$0xff]  ;;  %v107_v4 = vcombine.high %v81_v1, %v81_v1  ;;  %v108_v5 = vcombine.high %v82_v2, %v82_v2  ;;  %v406_v6 = vld [vmem:[#allocation4 + $0x8] sm:$0xff]  ;;  %v408_v8 = vld [vmem:[#allocation4 + $0x18] sm:$0xff]  ;;  %vm109_vm1 = vcmask 31744   ;;  %vm5925_vm2 = vmmov 0  }
  0x37   :  { %v410_v7 = vld [vmem:[#allocation4 + $0x28] sm:$0xff]  ;;  %v412_v10 = vld [vmem:[#allocation4 + $0x38] sm:$0xff]  ;;  %v405_v11 = vld [vmem:[#allocation4] sm:$0xff] }
  0x38   :  { %v6039_v9 = vpack.c.bf16 %v410_v7, %v406_v6  ;;  %v409_v12 = vld [vmem:[#allocation4 + $0x20] sm:$0xff]  ;;  %4221 = vmatprep.subr.msk.mxu0 %vm134_vm0, %v107_v4  ;;  %4231 = vmatprep.subr.msk.mxu1 %vm134_vm0, %v108_v5  ;;  %v6043_v13 = vpack.c.bf16 %v412_v10, %v408_v8  ;;  %v407_v15 = vld [vmem:[#allocation4 + $0x10] sm:$0xff]  ;;  %v414_v18 = vld [vmem:[#allocation4 + $0x48] sm:$0xff] }
  0x39   :  { %v6045_v14 = vpack.c.bf16 %v409_v12, %v405_v11  ;;  %v411_v16 = vld [vmem:[#allocation4 + $0x30] sm:$0xff]  ;;  %4222 = vmatpush1.msk.msra.mxu0 %vm134_vm0, %v81_v1  ;;  %4232 = vmatpush1.msk.msra.mxu1 %vm134_vm0, %v82_v2  ;;  %v418_v19 = vld [vmem:[#allocation4 + $0x68] sm:$0xff]  ;;  %v416_v20 = vld [vmem:[#allocation4 + $0x58] sm:$0xff] }
  0x3a   :  { %v6049_v17 = vpack.c.bf16 %v411_v16, %v407_v15  ;;  %4223 = vmatmul.mubr.msk.f32.vlgmr.msra.gmra.mrb[0].mxu0 %vm109_vm1, %v73_v3  ;;  %4233 = vmatmul.mubr.msk.f32.vlgmr.msra.gmra.mrb[0].mxu1 %vm109_vm1, %v73_v3  ;;  %v420_v21 = vld [vmem:[#allocation4 + $0x78] sm:$0xff]  ;;  %v413_v22 = vld [vmem:[#allocation4 + $0x40] sm:$0xff]  ;;  %v74_v24 = vld [vmem:[%s7104_s0 + $0x8] sm:$0xff]  ;;  %v6058_v25 = vpack.c.bf16 %v418_v19, %v414_v18 }
  0x3b   :  { %v417_v23 = vld [vmem:[#allocation4 + $0x60] sm:$0xff]  ;;  %4343 = vmatprep.subr.bf16.mxu0 %v6039_v9  ;;  %4375 = vmatprep.subr.bf16.mxu1 %v6043_v13  ;;  %v6060_v26 = vpack.c.bf16 %v420_v21, %v416_v20  ;;  %v415_v27 = vld [vmem:[#allocation4 + $0x50] sm:$0xff]  ;;  %v422_v31 = vld [vmem:[#allocation4 + $0x88] sm:$0xff] }
  0x3c   :  { %v419_v28 = vld [vmem:[#allocation4 + $0x70] sm:$0xff]  ;;  %4345 = vmatpush1.bf16.msra.mxu0 %v6045_v14  ;;  %4377 = vmatpush1.bf16.msra.mxu1 %v6049_v17  ;;  %v6064_v29 = vpack.c.bf16 %v417_v23, %v413_v22  ;;  %v426_v32 = vld [vmem:[#allocation4 + $0xa8] sm:$0xff]  ;;  %v424_v33 = vld [vmem:[#allocation4 + $0x98] sm:$0xff] }
  0x3d   :  { %v6066_v30 = vpack.c.bf16 %v419_v28, %v415_v27  ;;  %213 = vmatprep.mubr.f32.mxu0 %v5923_v0  ;;  %326 = vmatprep.mubr.f32.mxu1 %v5923_v0  ;;  %v428_v34 = vld [vmem:[#allocation4 + $0xb8] sm:$0xff]  ;;  %v421_v35 = vld [vmem:[#allocation4 + $0x80] sm:$0xff]  ;;  %v423_v37 = vld [vmem:[#allocation4 + $0x90] sm:$0xff]  ;;  %v6077_v40 = vpack.c.bf16 %v426_v32, %v422_v31 }
  0x3e   :  { %v425_v36 = vld [vmem:[#allocation4 + $0xa0] sm:$0xff]  ;;  %4224 = vmatmul.mubr.msk.f32.gmra.mrb[2].mxu0 %vm109_vm1, %v74_v24  ;;  %4234 = vmatmul.mubr.msk.f32.gmra.mrb[2].mxu1 %vm109_vm1, %v74_v24  ;;  %v427_v38 = vld [vmem:[#allocation4 + $0xb0] sm:$0xff]  ;;  %v6079_v41 = vpack.c.bf16 %v428_v34, %v424_v33  ;;  %v430_v42 = vld [vmem:[#allocation4 + $0xc8] sm:$0xff] }
  0x3f   :  { %4347 = vmatprep.subr.bf16.mxu0 %v6058_v25  ;;  %4379 = vmatprep.subr.bf16.mxu1 %v6060_v26  ;;  %v75_v39 = vld [vmem:[%s7104_s0 + $0x10] sm:$0xff]  ;;  %v434_v43 = vld [vmem:[#allocation4 + $0xe8] sm:$0xff]  ;;  %v6083_v44 = vpack.c.bf16 %v425_v36, %v421_v35  ;;  %v6085_v45 = vpack.c.bf16 %v427_v38, %v423_v37  ;;  %v432_v46 = vld [vmem:[#allocation4 + $0xd8] sm:$0xff] }
  0x40   :  { %4349 = vmatpush1.bf16.msra.mxu0 %v6064_v29  ;;  %4381 = vmatpush1.bf16.msra.mxu1 %v6066_v30  ;;  %v436_v47 = vld [vmem:[#allocation4 + $0xf8] sm:$0xff]  ;;  %v429_v48 = vld [vmem:[#allocation4 + $0xc0] sm:$0xff]  ;;  %v431_v50 = vld [vmem:[#allocation4 + $0xd0] sm:$0xff]  ;;  %v6096_v53 = vpack.c.bf16 %v434_v43, %v430_v42 }
  0x41   :  { %219 = vmatprep.mubr.f32.mxu0 %v5923_v0  ;;  %332 = vmatprep.mubr.f32.mxu1 %v5923_v0  ;;  %v433_v49 = vld [vmem:[#allocation4 + $0xe0] sm:$0xff]  ;;  %v435_v51 = vld [vmem:[#allocation4 + $0xf0] sm:$0xff]  ;;  %v76_v52 = vld [vmem:[%s7104_s0 + $0x18] sm:$0xff]  ;;  %v6098_v54 = vpack.c.bf16 %v436_v47, %v432_v46 }
  0x42   :  { %4225 = vmatmul.mubr.msk.f32.gmra.mrb[4].mxu0 %vm109_vm1, %v75_v39  ;;  %4235 = vmatmul.mubr.msk.f32.gmra.mrb[4].mxu1 %vm109_vm1, %v75_v39  ;;  %v438_v55 = vld [vmem:[#allocation4 + $0x108] sm:$0xff]  ;;  %v6102_v57 = vpack.c.bf16 %v433_v49, %v429_v48  ;;  %v6104_v58 = vpack.c.bf16 %v435_v51, %v431_v50  ;;  %v440_v59 = vld [vmem:[#allocation4 + $0x118] sm:$0xff]  ;;  %v437_v61 = vld [vmem:[#allocation4 + $0x100] sm:$0xff] }
  0x43   :  { %4351 = vmatprep.subr.bf16.mxu0 %v6077_v40  ;;  %4383 = vmatprep.subr.bf16.mxu1 %v6079_v41  ;;  %v442_v56 = vld [vmem:[#allocation4 + $0x128] sm:$0xff]  ;;  %v444_v60 = vld [vmem:[#allocation4 + $0x138] sm:$0xff]  ;;  %v441_v62 = vld [vmem:[#allocation4 + $0x120] sm:$0xff] }
  0x44   :  { %4353 = vmatpush1.bf16.msra.mxu0 %v6083_v44  ;;  %4385 = vmatpush1.bf16.msra.mxu1 %v6085_v45  ;;  %v439_v63 = vld [vmem:[#allocation4 + $0x110] sm:$0xff]  ;;  %v77_v2 = vld [vmem:[%s7104_s0 + $0x20] sm:$0xff]  ;;  %v6115_v3 = vpack.c.bf16 %v442_v56, %v438_v55  ;;  %v6117_v4 = vpack.c.bf16 %v444_v60, %v440_v59  ;;  %v446_v5 = vld [vmem:[#allocation4 + $0x148] sm:$0xff]  ;;  %v6121_v7 = vpack.c.bf16 %v441_v62, %v437_v61  ;;  %v85_v62 = vlaneseq }
  0x45   :  { %225 = vmatprep.mubr.f32.mxu0 %v5923_v0  ;;  %338 = vmatprep.mubr.f32.mxu1 %v5923_v0  ;;  %v443_v1 = vld [vmem:[#allocation4 + $0x130] sm:$0xff]  ;;  %v450_v6 = vld [vmem:[#allocation4 + $0x168] sm:$0xff]  ;;  %v448_v10 = vld [vmem:[#allocation4 + $0x158] sm:$0xff] }
  0x46   :  { %4226 = vmatmul.mubr.msk.f32.gmra.mrb[6].mxu0 %vm109_vm1, %v76_v52  ;;  %4236 = vmatmul.mubr.msk.f32.gmra.mrb[6].mxu1 %vm109_vm1, %v76_v52  ;;  %v6123_v8 = vpack.c.bf16 %v443_v1, %v439_v63  ;;  %v452_v11 = vld [vmem:[#allocation4 + $0x178] sm:$0xff]  ;;  %v445_v12 = vld [vmem:[#allocation4 + $0x140] sm:$0xff]  ;;  %v447_v16 = vld [vmem:[#allocation4 + $0x150] sm:$0xff]  ;;  %v6134_v20 = vpack.c.bf16 %v450_v6, %v446_v5  ;;  %v6230_v63 = vshrl.u32 %v85_v62, 7 }
  0x47   :  { %4355 = vmatprep.subr.bf16.mxu0 %v6096_v53  ;;  %4387 = vmatprep.subr.bf16.mxu1 %v6098_v54  ;;  %v449_v15 = vld [vmem:[#allocation4 + $0x160] sm:$0xff]  ;;  %v451_v18 = vld [vmem:[#allocation4 + $0x170] sm:$0xff]  ;;  %v78_v19 = vld [vmem:[%s7104_s0 + $0x28] sm:$0xff]  ;;  %v6136_v21 = vpack.c.bf16 %v452_v11, %v448_v10 }
  0x48   :  { %4357 = vmatpush1.bf16.msra.mxu0 %v6102_v57  ;;  %4389 = vmatpush1.bf16.msra.mxu1 %v6104_v58  ;;  %v454_v22 = vld [vmem:[#allocation4 + $0x188] sm:$0xff]  ;;  %v6140_v24 = vpack.c.bf16 %v449_v15, %v445_v12  ;;  %v6142_v27 = vpack.c.bf16 %v451_v18, %v447_v16  ;;  %v456_v28 = vld [vmem:[#allocation4 + $0x198] sm:$0xff]  ;;  %v453_v32 = vld [vmem:[#allocation4 + $0x180] sm:$0xff]  ;;  %v87_v1 = vsub.s32 0, %v6230_v63  ;;  %v91_v5 = vsub.s32 1, %v6230_v63 }
  0x49   :  { %231 = vmatprep.mubr.f32.mxu0 %v5923_v0  ;;  %344 = vmatprep.mubr.f32.mxu1 %v5923_v0  ;;  %v458_v23 = vld [vmem:[#allocation4 + $0x1a8] sm:$0xff]  ;;  %v460_v31 = vld [vmem:[#allocation4 + $0x1b8] sm:$0xff]  ;;  %v457_v33 = vld [vmem:[#allocation4 + $0x1a0] sm:$0xff]  ;;  %v99_v11 = vsub.s32 3, %v6230_v63 }
  0x4a   :  { %4227 = vmatmul.mubr.msk.f32.gmra.mrb[8].mxu0 %vm109_vm1, %v77_v2  ;;  %4237 = vmatmul.mubr.msk.f32.gmra.mrb[8].mxu1 %vm109_vm1, %v77_v2  ;;  %v455_v34 = vld [vmem:[#allocation4 + $0x190] sm:$0xff]  ;;  %v6153_v37 = vpack.c.bf16 %v458_v23, %v454_v22  ;;  %v6155_v38 = vpack.c.bf16 %v460_v31, %v456_v28  ;;  %v462_v39 = vld [vmem:[#allocation4 + $0x1c8] sm:$0xff]  ;;  %v6159_v43 = vpack.c.bf16 %v457_v33, %v453_v32  ;;  %v464_v47 = vld [vmem:[#allocation4 + $0x1d8] sm:$0xff]  ;;  %v95_v28 = vsub.s32 2, %v6230_v63 }
  0x4b   :  { %4359 = vmatprep.subr.bf16.mxu0 %v6115_v3  ;;  %4391 = vmatprep.subr.bf16.mxu1 %v6117_v4  ;;  %v459_v35 = vld [vmem:[#allocation4 + $0x1b0] sm:$0xff]  ;;  %v466_v42 = vld [vmem:[#allocation4 + $0x1e8] sm:$0xff]  ;;  %v468_v48 = vld [vmem:[#allocation4 + $0x1f8] sm:$0xff] }
  0x4c   :  { %4361 = vmatpush1.bf16.msra.mxu0 %v6121_v7  ;;  %4393 = vmatpush1.bf16.msra.mxu1 %v6123_v8  ;;  %v79_v36 = vld [vmem:[%s7104_s0 + $0x30] sm:$0xff]  ;;  %v6161_v46 = vpack.c.bf16 %v459_v35, %v455_v34  ;;  %v461_v49 = vld [vmem:[#allocation4 + $0x1c0] sm:$0xff]  ;;  %v80_v55 = vld [vmem:[%s7104_s0 + $0x38] sm:$0xff]  ;;  %v6172_v56 = vpack.c.bf16 %v466_v42, %v462_v39  ;;  %v6174_v59 = vpack.c.bf16 %v468_v48, %v464_v47 }
  0x4d   :  { %237 = vmatprep.mubr.f32.mxu0 %v5923_v0  ;;  %350 = vmatprep.mubr.f32.mxu1 %v5923_v0  ;;  %v465_v50 = vld [vmem:[#allocation4 + $0x1e0] sm:$0xff]  ;;  %v463_v51 = vld [vmem:[#allocation4 + $0x1d0] sm:$0xff] }
  0x4e   :  { %4228 = vmatmul.mubr.msk.f32.gmra.mrb[10].mxu0 %vm109_vm1, %v78_v19  ;;  %4238 = vmatmul.mubr.msk.f32.gmra.mrb[10].mxu1 %vm109_vm1, %v78_v19  ;;  %v467_v52 = vld [vmem:[#allocation4 + $0x1f0] sm:$0xff]  ;;  %v6178_v60 = vpack.c.bf16 %v465_v50, %v461_v49  ;;  %v83_v2 = vld [vmem:[%s7107_s3] sm:$0xf] }
  0x4f   :  { %4363 = vmatprep.subr.bf16.mxu0 %v6134_v20  ;;  %4395 = vmatprep.subr.bf16.mxu1 %v6136_v21  ;;  %v6180_v61 = vpack.c.bf16 %v467_v52, %v463_v51  ;;  %v6239_v6 = vrot.slane %v83_v2, %v87_v1  ;;  %v6250_v23 = vrot.slane %v83_v2, %v99_v11 }
  0x50   :  { %4365 = vmatpush1.bf16.msra.mxu0 %v6140_v24  ;;  %4397 = vmatpush1.bf16.msra.mxu1 %v6142_v27  ;;  %v6256_v32 = vrot.slane %v83_v2, %v95_v28 }
  0x51   :  { %243 = vmatprep.mubr.f32.mxu0 %v5923_v0  ;;  %356 = vmatprep.mubr.f32.mxu1 %v5923_v0 }
  0x52   :  { %4229 = vmatmul.mubr.msk.f32.gmra.mrb[12].mxu0 %vm109_vm1, %v79_v36  ;;  %4239 = vmatmul.mubr.msk.f32.gmra.mrb[12].mxu1 %vm109_vm1, %v79_v36 }
  0x53   :  { %4367 = vmatprep.subr.bf16.mxu0 %v6153_v37  ;;  %4399 = vmatprep.subr.bf16.mxu1 %v6155_v38 }
  0x54   :  { %4369 = vmatpush1.bf16.msra.mxu0 %v6159_v43  ;;  %4401 = vmatpush1.bf16.msra.mxu1 %v6161_v46 }
  0x55   :  { %249 = vmatprep.mubr.f32.mxu0 %v5923_v0  ;;  %362 = vmatprep.mubr.f32.mxu1 %v5923_v0 }
  0x56   :  { %4230 = vmatmul.mubr.msk.f32.gmra.mrb[14].mxu0 %vm109_vm1, %v80_v55  ;;  %4240 = vmatmul.mubr.msk.f32.gmra.mrb[14].mxu1 %vm109_vm1, %v80_v55 }
  0x57   :  { %4371 = vmatprep.subr.bf16.mxu0 %v6172_v56  ;;  %4403 = vmatprep.subr.bf16.mxu1 %v6174_v59 }
  0x58   :  { %4373 = vmatpush1.bf16.msra.mxu0 %v6178_v60  ;;  %4405 = vmatpush1.bf16.msra.mxu1 %v6180_v61 }
  0x59   :  { %533 = vmatprep.mubr.f32.mxu0 %v5923_v0  ;;  %604 = vmatprep.mubr.f32.mxu1 %v5923_v0 }
  0x5a   :  { %4407 = vmatprep.subr.bf16.mxu0 %v6039_v9  ;;  %4439 = vmatprep.subr.bf16.mxu1 %v6043_v13 }
  0x5b   :  { %534 = vmatmul.mubr.f32.vlgmr.msra.gmra.mrb[0].mxu0 %v5923_v0  ;;  %605 = vmatmul.mubr.f32.vlgmr.msra.gmra.mrb[0].mxu1 %v5923_v0 }
  0x5c   :  { %4409 = vmatpush1.bf16.msra.mxu0 %v6045_v14  ;;  %4441 = vmatpush1.bf16.msra.mxu1 %v6049_v17 }
  0x5d   :  { %4411 = vmatprep.subr.bf16.mxu0 %v6058_v25  ;;  %4443 = vmatprep.subr.bf16.mxu1 %v6060_v26 }
  0x5e   :  { %772 = vmatprep.mubr.f32.mxu0 %v5923_v0  ;;  %843 = vmatprep.mubr.f32.mxu1 %v5923_v0 }
  0x60   :  { %4413 = vmatpush1.bf16.msra.mxu0 %v6064_v29  ;;  %4445 = vmatpush1.bf16.msra.mxu1 %v6066_v30 }
  0x61   :  { %4415 = vmatprep.subr.bf16.mxu0 %v6077_v40  ;;  %4447 = vmatprep.subr.bf16.mxu1 %v6079_v41 }
  0x64   :  { %4417 = vmatpush1.bf16.msra.mxu0 %v6083_v44  ;;  %4449 = vmatpush1.bf16.msra.mxu1 %v6085_v45 }
  0x65   :  { %4419 = vmatprep.subr.bf16.mxu0 %v6096_v53  ;;  %4451 = vmatprep.subr.bf16.mxu1 %v6098_v54 }
  0x68   :  { %4421 = vmatpush1.bf16.msra.mxu0 %v6102_v57  ;;  %4453 = vmatpush1.bf16.msra.mxu1 %v6104_v58 }
  0x69   :  { %4423 = vmatprep.subr.bf16.mxu0 %v6115_v3  ;;  %4455 = vmatprep.subr.bf16.mxu1 %v6117_v4 }
  0x6c   :  { %4425 = vmatpush1.bf16.msra.mxu0 %v6121_v7  ;;  %4457 = vmatpush1.bf16.msra.mxu1 %v6123_v8 }
  0x6d   :  { %4427 = vmatprep.subr.bf16.mxu0 %v6134_v20  ;;  %4459 = vmatprep.subr.bf16.mxu1 %v6136_v21 }
  0x70   :  { %4429 = vmatpush1.bf16.msra.mxu0 %v6140_v24  ;;  %4461 = vmatpush1.bf16.msra.mxu1 %v6142_v27 }
  0x71   :  { %4431 = vmatprep.subr.bf16.mxu0 %v6153_v37  ;;  %4463 = vmatprep.subr.bf16.mxu1 %v6155_v38 }
  0x74   :  { %4433 = vmatpush1.bf16.msra.mxu0 %v6159_v43  ;;  %4465 = vmatpush1.bf16.msra.mxu1 %v6161_v46 }
  0x75   :  { %4435 = vmatprep.subr.bf16.mxu0 %v6172_v56  ;;  %4467 = vmatprep.subr.bf16.mxu1 %v6174_v59 }
  0x78   :  { %4437 = vmatpush1.bf16.msra.mxu0 %v6178_v60  ;;  %4469 = vmatpush1.bf16.msra.mxu1 %v6180_v61 }
  0x79   :  { %4471 = vmatprep.subr.bf16.mxu0 %v6039_v9  ;;  %4503 = vmatprep.subr.bf16.mxu1 %v6043_v13  ;;  %v6243_v9 = vrot.slane %v83_v2, %v91_v5 }
 0x12e   :  { %v535_v13 = vpop.f32.mrb[0].mxu0  ;;  %v606_v10 = vpop.f32.mrb[0].mxu1 }
 0x12f   :  { %v5454_v12 = vadd.f32 %v535_v13, %v6239_v6  ;;  %v537_v15 = vpop.f32.mrb[1].mxu0  ;;  %v608_v16 = vpop.f32.mrb[1].mxu1  ;;  %v5470_v34 = vadd.f32 %v606_v10, %v6256_v32 }
 0x130   :  { %v5455_v18 = vadd.f32 %v537_v15, %v6243_v9  ;;  %v5471_v31 = vadd.f32 %v608_v16, %v6250_v23 }
 0x131   :  { %v4241_v19 = vmul.f32 -1.442695, %v5454_v12 }
 0x132   :  { %v4242_v22 = vmul.f32 -1.442695, %v5455_v18  ;;  %v4243_v33 = vmul.f32 -1.442695, %v5471_v31 }
 0x133   :  { %5592 = vpow2.f32 %v4241_v19 }
 0x134   :  { %5594 = vpow2.f32 %v4242_v22 }
 0x135   :  { %5596 = vpow2.f32 %v4243_v33 }
 0x136   :  { %5598 = vtanh.f32 %v5470_v34 }
 0x13d   :  { %v5593_v35 = vpop.eup %5592 }
 0x13e   :  { %v5595_v36 = vpop.eup %5594  ;;  %v618_v39 = vadd.f32 1.0, %v5593_v35 }
 0x13f   :  { %v624_v42 = vadd.f32 1.0, %v5595_v36  ;;  %v5597_v47 = vpop.eup %5596 }
 0x140   :  { %5600 = vrcp.f32 %v618_v39  ;;  %v5599_v48 = vpop.eup %5598  ;;  %v631_v52 = vadd.f32 1.0, %v5597_v47 }
 0x141   :  { %5602 = vrcp.f32 %v624_v42 }
 0x142   :  { %5604 = vrcp.f32 %v631_v52 }
 0x14a   :  { %v5601_v49 = vpop.eup %5600 }
 0x14b   :  { %v5603_v50 = vpop.eup %5602  ;;  %v635_v51 = vmul.f32 %v5601_v49, %v5599_v48 }
 0x14c   :  { %v634_v55 = vmul.f32 0.0, %v5603_v50  ;;  %v5605_v2 = vpop.eup %5604 }
 0x14e   :  { %v6259_v62 = vadd.f32 %v635_v51, %v634_v55 }
 0x150   :  { %5606 = vtanh.f32 %v6259_v62 }
 0x15a   :  { %v5607_v13 = vpop.eup %5606 }
 0x15b   :  { %v6262_v10 = vmul.f32 %v5607_v13, %v5605_v2  ;;  %v1123_v2 = vld [vmem:[#allocation4 + $0x8] sm:$0xff] }
 0x15c   :  { %v1127_v13 = vld [vmem:[#allocation4 + $0x28] sm:$0xff] }
 0x15d   :  { %773 = vmatmul.mubr.f32.vlgmr.msra.gmra.mrb[2].mxu0 %v6262_v10  ;;  %844 = vmatmul.mubr.f32.vlgmr.msra.gmra.mrb[2].mxu1 %v6262_v10 }
 0x15e   :  { %4473 = vmatpush1.bf16.msra.mxu0 %v6045_v14  ;;  %4505 = vmatpush1.bf16.msra.mxu1 %v6049_v17 }
 0x15f   :  { %4475 = vmatprep.subr.bf16.mxu0 %v6058_v25  ;;  %4507 = vmatprep.subr.bf16.mxu1 %v6060_v26 }
 0x160   :  { %1011 = vmatprep.mubr.f32.mxu0 %v5923_v0  ;;  %1082 = vmatprep.mubr.f32.mxu1 %v5923_v0 }
 0x162   :  { %4477 = vmatpush1.bf16.msra.mxu0 %v6064_v29  ;;  %4509 = vmatpush1.bf16.msra.mxu1 %v6066_v30 }
 0x163   :  { %4479 = vmatprep.subr.bf16.mxu0 %v6077_v40  ;;  %4511 = vmatprep.subr.bf16.mxu1 %v6079_v41 }
 0x166   :  { %4481 = vmatpush1.bf16.msra.mxu0 %v6083_v44  ;;  %4513 = vmatpush1.bf16.msra.mxu1 %v6085_v45 }
 0x167   :  { %4483 = vmatprep.subr.bf16.mxu0 %v6096_v53  ;;  %4515 = vmatprep.subr.bf16.mxu1 %v6098_v54 }
 0x16a   :  { %4485 = vmatpush1.bf16.msra.mxu0 %v6102_v57  ;;  %4517 = vmatpush1.bf16.msra.mxu1 %v6104_v58 }
 0x16b   :  { %4487 = vmatprep.subr.bf16.mxu0 %v6115_v3  ;;  %4519 = vmatprep.subr.bf16.mxu1 %v6117_v4 }
 0x16e   :  { %4489 = vmatpush1.bf16.msra.mxu0 %v6121_v7  ;;  %4521 = vmatpush1.bf16.msra.mxu1 %v6123_v8 }
 0x16f   :  { %4491 = vmatprep.subr.bf16.mxu0 %v6134_v20  ;;  %4523 = vmatprep.subr.bf16.mxu1 %v6136_v21 }
 0x172   :  { %4493 = vmatpush1.bf16.msra.mxu0 %v6140_v24  ;;  %4525 = vmatpush1.bf16.msra.mxu1 %v6142_v27 }
 0x173   :  { %4495 = vmatprep.subr.bf16.mxu0 %v6153_v37  ;;  %4527 = vmatprep.subr.bf16.mxu1 %v6155_v38 }
 0x176   :  { %4497 = vmatpush1.bf16.msra.mxu0 %v6159_v43  ;;  %4529 = vmatpush1.bf16.msra.mxu1 %v6161_v46 }
 0x177   :  { %4499 = vmatprep.subr.bf16.mxu0 %v6172_v56  ;;  %4531 = vmatprep.subr.bf16.mxu1 %v6174_v59 }
 0x17a   :  { %4501 = vmatpush1.bf16.msra.mxu0 %v6178_v60  ;;  %4533 = vmatpush1.bf16.msra.mxu1 %v6180_v61 }
 0x230   :  { %v774_v14 = vpop.f32.mrb[2].mxu0  ;;  %v845_v17 = vpop.f32.mrb[2].mxu1 }
 0x231   :  { %v5456_v25 = vadd.f32 %v774_v14, %v6239_v6  ;;  %v776_v26 = vpop.f32.mrb[3].mxu0  ;;  %v847_v29 = vpop.f32.mrb[3].mxu1  ;;  %v5472_v19 = vadd.f32 %v845_v17, %v6256_v32  ;;  %v6312_v14 = vpack.c.bf16 %v1127_v13, %v1123_v2  ;;  %v1129_v17 = vld [vmem:[#allocation4 + $0x38] sm:$0xff] }
 0x232   :  { %v5457_v30 = vadd.f32 %v776_v26, %v6243_v9  ;;  %v5473_v16 = vadd.f32 %v847_v29, %v6250_v23  ;;  %v1126_v26 = vld [vmem:[#allocation4 + $0x20] sm:$0xff]  ;;  %v1380_v2 = vld [vmem:[#allocation4 + $0x98] sm:$0xff] }
 0x233   :  { %v4244_v12 = vmul.f32 -1.442695, %v5456_v25  ;;  %v1122_v25 = vld [vmem:[#allocation4] sm:$0xff]  ;;  %4535 = vmatprep.subr.bf16.mxu0 %v6312_v14 }
 0x234   :  { %v4245_v15 = vmul.f32 -1.442695, %v5457_v30  ;;  %v4246_v18 = vmul.f32 -1.442695, %v5473_v16  ;;  %v6316_v30 = vpack.c.bf16 %v1126_v26, %v1122_v25  ;;  %v1381_v25 = vld [vmem:[#allocation4 + $0xa0] sm:$0xff] }
 0x235   :  { %5608 = vpow2.f32 %v4244_v12  ;;  %v1124_v12 = vld [vmem:[#allocation4 + $0x10] sm:$0xff] }
 0x236   :  { %5610 = vpow2.f32 %v4245_v15  ;;  %v1128_v15 = vld [vmem:[#allocation4 + $0x30] sm:$0xff] }
 0x237   :  { %5612 = vpow2.f32 %v4246_v18  ;;  %v6319_v16 = vpack.c.bf16 %v1128_v15, %v1124_v12  ;;  %v1131_v18 = vld [vmem:[#allocation4 + $0x48] sm:$0xff]  ;;  %v1379_v15 = vld [vmem:[#allocation4 + $0x90] sm:$0xff] }
 0x238   :  { %5614 = vtanh.f32 %v5472_v19  ;;  %v1135_v19 = vld [vmem:[#allocation4 + $0x68] sm:$0xff] }
 0x23f   :  { %v5609_v22 = vpop.eup %5608 }
 0x240   :  { %v5611_v31 = vpop.eup %5610  ;;  %v857_v33 = vadd.f32 1.0, %v5609_v22  ;;  %v1133_v22 = vld [vmem:[#allocation4 + $0x58] sm:$0xff] }
 0x241   :  { %v863_v34 = vadd.f32 1.0, %v5611_v31  ;;  %v5613_v35 = vpop.eup %5612  ;;  %v6324_v31 = vpack.c.bf16 %v1135_v19, %v1131_v18  ;;  %v1383_v18 = vld [vmem:[#allocation4 + $0xb0] sm:$0xff] }
 0x242   :  { %5616 = vrcp.f32 %v857_v33  ;;  %v5615_v36 = vpop.eup %5614  ;;  %v870_v48 = vadd.f32 1.0, %v5613_v35  ;;  %v1137_v33 = vld [vmem:[#allocation4 + $0x78] sm:$0xff]  ;;  %v1134_v35 = vld [vmem:[#allocation4 + $0x60] sm:$0xff]  ;;  %v6389_v19 = vpack.c.bf16 %v1383_v18, %v1379_v15  ;;  %v1414_v18 = vld [vmem:[#allocation4 + $0x1a8] sm:$0xff] }
 0x243   :  { %5618 = vrcp.f32 %v863_v34  ;;  %v1130_v34 = vld [vmem:[#allocation4 + $0x40] sm:$0xff] }
 0x244   :  { %5620 = vrcp.f32 %v870_v48 }
 0x24c   :  { %v5617_v39 = vpop.eup %5616 }
 0x24d   :  { %v5619_v42 = vpop.eup %5618  ;;  %v874_v47 = vmul.f32 %v5617_v39, %v5615_v36  ;;  %v6326_v36 = vpack.c.bf16 %v1137_v33, %v1133_v22  ;;  %v6328_v39 = vpack.c.bf16 %v1134_v35, %v1130_v34  ;;  %v1386_v22 = vld [vmem:[#allocation4 + $0xc8] sm:$0xff]  ;;  %v1388_v34 = vld [vmem:[#allocation4 + $0xd8] sm:$0xff] }
 0x24e   :  { %v873_v49 = vmul.f32 %v5619_v42, %v6259_v62  ;;  %v5621_v51 = vpop.eup %5620  ;;  %v1125_v62 = vld [vmem:[#allocation4 + $0x18] sm:$0xff]  ;;  %v1132_v42 = vld [vmem:[#allocation4 + $0x50] sm:$0xff]  ;;  %v1390_v33 = vld [vmem:[#allocation4 + $0xe8] sm:$0xff] }
 0x24f   :  { %v6314_v29 = vpack.c.bf16 %v1129_v17, %v1125_v62  ;;  %v1384_v62 = vld [vmem:[#allocation4 + $0xb8] sm:$0xff]  ;;  %v1377_v17 = vld [vmem:[#allocation4 + $0x80] sm:$0xff]  ;;  %v6394_v35 = vpack.c.bf16 %v1390_v33, %v1386_v22 }
 0x250   :  { %v6303_v50 = vadd.f32 %v874_v47, %v873_v49  ;;  %v1136_v47 = vld [vmem:[#allocation4 + $0x70] sm:$0xff]  ;;  %v6384_v26 = vpack.c.bf16 %v1384_v62, %v1380_v2  ;;  %v6386_v12 = vpack.c.bf16 %v1381_v25, %v1377_v17  ;;  %v1410_v25 = vld [vmem:[#allocation4 + $0x188] sm:$0xff]  ;;  %v1412_v22 = vld [vmem:[#allocation4 + $0x198] sm:$0xff] }
 0x251   :  { %4567 = vmatprep.subr.bf16.mxu1 %v6314_v29  ;;  %v6331_v48 = vpack.c.bf16 %v1136_v47, %v1132_v42  ;;  %v1392_v42 = vld [vmem:[#allocation4 + $0xf8] sm:$0xff]  ;;  %v1385_v47 = vld [vmem:[#allocation4 + $0xc0] sm:$0xff]  ;;  %v1403_v62 = vld [vmem:[#allocation4 + $0x150] sm:$0xff] }
 0x252   :  { %5622 = vtanh.f32 %v6303_v50  ;;  %v1407_v17 = vld [vmem:[#allocation4 + $0x170] sm:$0xff]  ;;  %v1416_v33 = vld [vmem:[#allocation4 + $0x1b8] sm:$0xff] }
 0x253   :  { %v6425_v15 = vpack.c.bf16 %v1407_v17, %v1403_v62 }
 0x25c   :  { %v5623_v52 = vpop.eup %5622 }
 0x25d   :  { %v6306_v55 = vmul.f32 %v5623_v52, %v5621_v51  ;;  %v1382_v52 = vld [vmem:[#allocation4 + $0xa8] sm:$0xff] }
 0x25f   :  { %1012 = vmatmul.mubr.f32.vlgmr.msra.gmra.mrb[4].mxu0 %v6306_v55  ;;  %1083 = vmatmul.mubr.f32.vlgmr.msra.gmra.mrb[4].mxu1 %v6306_v55 }
 0x260   :  { %1250 = vmatprep.mubr.f32.mxu0 %v5923_v0  ;;  %1321 = vmatprep.mubr.f32.mxu1 %v5923_v0 }
 0x261   :  { %4537 = vmatpush1.bf16.msra.mxu0 %v6316_v30  ;;  %4569 = vmatpush1.bf16.msra.mxu1 %v6319_v16 }
 0x262   :  { %4539 = vmatprep.subr.bf16.mxu0 %v6324_v31  ;;  %4571 = vmatprep.subr.bf16.mxu1 %v6326_v36 }
 0x265   :  { %4541 = vmatpush1.bf16.msra.mxu0 %v6328_v39  ;;  %4573 = vmatpush1.bf16.msra.mxu1 %v6331_v48 }
 0x266   :  { %4543 = vmatprep.subr.bf16.mxu0 %v6077_v40  ;;  %4575 = vmatprep.subr.bf16.mxu1 %v6079_v41 }
 0x269   :  { %4545 = vmatpush1.bf16.msra.mxu0 %v6083_v44  ;;  %4577 = vmatpush1.bf16.msra.mxu1 %v6085_v45 }
 0x26a   :  { %4547 = vmatprep.subr.bf16.mxu0 %v6096_v53  ;;  %4579 = vmatprep.subr.bf16.mxu1 %v6098_v54 }
 0x26d   :  { %4549 = vmatpush1.bf16.msra.mxu0 %v6102_v57  ;;  %4581 = vmatpush1.bf16.msra.mxu1 %v6104_v58 }
 0x26e   :  { %4551 = vmatprep.subr.bf16.mxu0 %v6115_v3  ;;  %4583 = vmatprep.subr.bf16.mxu1 %v6117_v4 }
 0x271   :  { %4553 = vmatpush1.bf16.msra.mxu0 %v6121_v7  ;;  %4585 = vmatpush1.bf16.msra.mxu1 %v6123_v8 }
 0x272   :  { %4555 = vmatprep.subr.bf16.mxu0 %v6134_v20  ;;  %4587 = vmatprep.subr.bf16.mxu1 %v6136_v21 }
 0x275   :  { %4557 = vmatpush1.bf16.msra.mxu0 %v6140_v24  ;;  %4589 = vmatpush1.bf16.msra.mxu1 %v6142_v27 }
 0x276   :  { %4559 = vmatprep.subr.bf16.mxu0 %v6153_v37  ;;  %4591 = vmatprep.subr.bf16.mxu1 %v6155_v38 }
 0x279   :  { %4561 = vmatpush1.bf16.msra.mxu0 %v6159_v43  ;;  %4593 = vmatpush1.bf16.msra.mxu1 %v6161_v46 }
 0x27a   :  { %4563 = vmatprep.subr.bf16.mxu0 %v6172_v56  ;;  %4595 = vmatprep.subr.bf16.mxu1 %v6174_v59 }
 0x27d   :  { %4565 = vmatpush1.bf16.msra.mxu0 %v6178_v60  ;;  %4597 = vmatpush1.bf16.msra.mxu1 %v6180_v61 }
 0x27e   :  { %4599 = vmatprep.subr.bf16.mxu0 %v6312_v14  ;;  %4631 = vmatprep.subr.bf16.mxu1 %v6314_v29 }
 0x332   :  { %v1013_v40 = vpop.f32.mrb[4].mxu0  ;;  %v1084_v41 = vpop.f32.mrb[4].mxu1 }
 0x333   :  { %v5458_v44 = vadd.f32 %v1013_v40, %v6239_v6  ;;  %v1015_v45 = vpop.f32.mrb[5].mxu0  ;;  %v1086_v53 = vpop.f32.mrb[5].mxu1  ;;  %v5474_v7 = vadd.f32 %v1084_v41, %v6256_v32  ;;  %v1389_v40 = vld [vmem:[#allocation4 + $0xe0] sm:$0xff]  ;;  %v6396_v41 = vpack.c.bf16 %v1392_v42, %v1388_v34  ;;  %v6428_v34 = vpack.c.bf16 %v1414_v18, %v1410_v25 }
 0x334   :  { %v5459_v54 = vadd.f32 %v1015_v45, %v6243_v9  ;;  %v5475_v3 = vadd.f32 %v1086_v53, %v6250_v23  ;;  %v1387_v45 = vld [vmem:[#allocation4 + $0xd0] sm:$0xff]  ;;  %v6430_v42 = vpack.c.bf16 %v1416_v33, %v1412_v22 }
 0x335   :  { %v4247_v57 = vmul.f32 -1.442695, %v5458_v44  ;;  %v6398_v44 = vpack.c.bf16 %v1389_v40, %v1385_v47  ;;  %v1391_v53 = vld [vmem:[#allocation4 + $0xf0] sm:$0xff]  ;;  %v1409_v47 = vld [vmem:[#allocation4 + $0x180] sm:$0xff] }
 0x336   :  { %v4248_v58 = vmul.f32 -1.442695, %v5459_v54  ;;  %v4249_v4 = vmul.f32 -1.442695, %v5475_v3  ;;  %v6401_v54 = vpack.c.bf16 %v1391_v53, %v1387_v45  ;;  %v1396_v3 = vld [vmem:[#allocation4 + $0x118] sm:$0xff]  ;;  %v1413_v40 = vld [vmem:[#allocation4 + $0x1a0] sm:$0xff] }
 0x337   :  { %5624 = vpow2.f32 %v4247_v57  ;;  %v1394_v57 = vld [vmem:[#allocation4 + $0x108] sm:$0xff]  ;;  %v1411_v45 = vld [vmem:[#allocation4 + $0x190] sm:$0xff]  ;;  %v6433_v53 = vpack.c.bf16 %v1413_v40, %v1409_v47 }
 0x338   :  { %5626 = vpow2.f32 %v4248_v58  ;;  %v1398_v58 = vld [vmem:[#allocation4 + $0x128] sm:$0xff] }
 0x339   :  { %5628 = vpow2.f32 %v4249_v4  ;;  %v6406_v4 = vpack.c.bf16 %v1398_v58, %v1394_v57  ;;  %v1415_v57 = vld [vmem:[#allocation4 + $0x1b0] sm:$0xff]  ;;  %v1418_v58 = vld [vmem:[#allocation4 + $0x1c8] sm:$0xff] }
 0x33a   :  { %5630 = vtanh.f32 %v5474_v7  ;;  %v1400_v7 = vld [vmem:[#allocation4 + $0x138] sm:$0xff] }
 0x341   :  { %v5625_v8 = vpop.eup %5624 }
 0x342   :  { %v5627_v20 = vpop.eup %5626  ;;  %v1096_v21 = vadd.f32 1.0, %v5625_v8  ;;  %v1393_v8 = vld [vmem:[#allocation4 + $0x100] sm:$0xff] }
 0x343   :  { %v1102_v24 = vadd.f32 1.0, %v5627_v20  ;;  %v5629_v27 = vpop.eup %5628  ;;  %v1397_v20 = vld [vmem:[#allocation4 + $0x120] sm:$0xff] }
 0x344   :  { %5632 = vrcp.f32 %v1096_v21  ;;  %v5631_v37 = vpop.eup %5630  ;;  %v1109_v56 = vadd.f32 1.0, %v5629_v27  ;;  %v6408_v21 = vpack.c.bf16 %v1400_v7, %v1396_v3  ;;  %v1395_v27 = vld [vmem:[#allocation4 + $0x110] sm:$0xff]  ;;  %v1422_v3 = vld [vmem:[#allocation4 + $0x1e8] sm:$0xff]  ;;  %v6437_v7 = vpack.c.bf16 %v1415_v57, %v1411_v45 }
 0x345   :  { %5634 = vrcp.f32 %v1102_v24  ;;  %v6410_v24 = vpack.c.bf16 %v1397_v20, %v1393_v8  ;;  %v6439_v8 = vpack.c.bf16 %v1422_v3, %v1418_v58  ;;  %v1420_v20 = vld [vmem:[#allocation4 + $0x1d8] sm:$0xff] }
 0x346   :  { %5636 = vrcp.f32 %v1109_v56  ;;  %v1404_v56 = vld [vmem:[#allocation4 + $0x158] sm:$0xff] }
 0x34e   :  { %v5633_v38 = vpop.eup %5632 }
 0x34f   :  { %v5635_v43 = vpop.eup %5634  ;;  %v1113_v46 = vmul.f32 %v5633_v38, %v5631_v37  ;;  %v1399_v37 = vld [vmem:[#allocation4 + $0x130] sm:$0xff] }
 0x350   :  { %v1112_v59 = vmul.f32 %v5635_v43, %v6303_v50  ;;  %v5637_v61 = vpop.eup %5636  ;;  %v1378_v50 = vld [vmem:[#allocation4 + $0x88] sm:$0xff]  ;;  %v6413_v38 = vpack.c.bf16 %v1399_v37, %v1395_v27  ;;  %v1424_v27 = vld [vmem:[#allocation4 + $0x1f8] sm:$0xff]  ;;  %v1417_v37 = vld [vmem:[#allocation4 + $0x1c0] sm:$0xff] }
 0x351   :  { %v6382_v13 = vpack.c.bf16 %v1382_v52, %v1378_v50  ;;  %v1402_v43 = vld [vmem:[#allocation4 + $0x148] sm:$0xff]  ;;  %v1405_v50 = vld [vmem:[#allocation4 + $0x160] sm:$0xff] }
 0x352   :  { %v6367_v60 = vadd.f32 %v1113_v46, %v1112_v59  ;;  %v1406_v46 = vld [vmem:[#allocation4 + $0x168] sm:$0xff] }
 0x353   :  { %v6417_v59 = vpack.c.bf16 %v1406_v46, %v1402_v43  ;;  %v6442_v43 = vpack.c.bf16 %v1424_v27, %v1420_v20  ;;  %v1421_v46 = vld [vmem:[#allocation4 + $0x1e0] sm:$0xff] }
 0x354   :  { %5638 = vtanh.f32 %v6367_v60 }
 0x35e   :  { %v5639_v49 = vpop.eup %5638 }
 0x35f   :  { %v6370_v51 = vmul.f32 %v5639_v49, %v5637_v61  ;;  %v1408_v61 = vld [vmem:[#allocation4 + $0x178] sm:$0xff]  ;;  %v1401_v49 = vld [vmem:[#allocation4 + $0x140] sm:$0xff] }
 0x360   :  { %v6420_v52 = vpack.c.bf16 %v1408_v61, %v1404_v56  ;;  %v6422_v2 = vpack.c.bf16 %v1405_v50, %v1401_v49  ;;  %v1419_v56 = vld [vmem:[#allocation4 + $0x1d0] sm:$0xff]  ;;  %v6445_v49 = vpack.c.bf16 %v1421_v46, %v1417_v37 }
 0x361   :  { %1251 = vmatmul.mubr.f32.vlgmr.msra.gmra.mrb[6].mxu0 %v6370_v51  ;;  %1322 = vmatmul.mubr.f32.vlgmr.msra.gmra.mrb[6].mxu1 %v6370_v51  ;;  %v1423_v61 = vld [vmem:[#allocation4 + $0x1f0] sm:$0xff] }
 0x362   :  { %4601 = vmatpush1.bf16.msra.mxu0 %v6316_v30  ;;  %4633 = vmatpush1.bf16.msra.mxu1 %v6319_v16  ;;  %v6449_v50 = vpack.c.bf16 %v1423_v61, %v1419_v56 }
 0x363   :  { %4603 = vmatprep.subr.bf16.mxu0 %v6324_v31  ;;  %4635 = vmatprep.subr.bf16.mxu1 %v6326_v36 }
 0x364   :  { %1489 = vmatprep.mubr.f32.mxu0 %v5923_v0  ;;  %1560 = vmatprep.mubr.f32.mxu1 %v5923_v0 }
 0x366   :  { %4605 = vmatpush1.bf16.msra.mxu0 %v6328_v39  ;;  %4637 = vmatpush1.bf16.msra.mxu1 %v6331_v48 }
 0x367   :  { %4607 = vmatprep.subr.bf16.mxu0 %v6382_v13  ;;  %4639 = vmatprep.subr.bf16.mxu1 %v6384_v26 }
 0x36a   :  { %4609 = vmatpush1.bf16.msra.mxu0 %v6386_v12  ;;  %4641 = vmatpush1.bf16.msra.mxu1 %v6389_v19 }
 0x36b   :  { %4611 = vmatprep.subr.bf16.mxu0 %v6394_v35  ;;  %4643 = vmatprep.subr.bf16.mxu1 %v6396_v41 }
 0x36e   :  { %4613 = vmatpush1.bf16.msra.mxu0 %v6398_v44  ;;  %4645 = vmatpush1.bf16.msra.mxu1 %v6401_v54 }
 0x36f   :  { %4615 = vmatprep.subr.bf16.mxu0 %v6406_v4  ;;  %4647 = vmatprep.subr.bf16.mxu1 %v6408_v21 }
 0x372   :  { %4617 = vmatpush1.bf16.msra.mxu0 %v6410_v24  ;;  %4649 = vmatpush1.bf16.msra.mxu1 %v6413_v38 }
 0x373   :  { %4619 = vmatprep.subr.bf16.mxu0 %v6417_v59  ;;  %4651 = vmatprep.subr.bf16.mxu1 %v6420_v52 }
 0x376   :  { %4621 = vmatpush1.bf16.msra.mxu0 %v6422_v2  ;;  %4653 = vmatpush1.bf16.msra.mxu1 %v6425_v15 }
 0x377   :  { %4623 = vmatprep.subr.bf16.mxu0 %v6428_v34  ;;  %4655 = vmatprep.subr.bf16.mxu1 %v6430_v42 }
 0x37a   :  { %4625 = vmatpush1.bf16.msra.mxu0 %v6433_v53  ;;  %4657 = vmatpush1.bf16.msra.mxu1 %v6437_v7 }
 0x37b   :  { %4627 = vmatprep.subr.bf16.mxu0 %v6439_v8  ;;  %4659 = vmatprep.subr.bf16.mxu1 %v6442_v43 }
 0x37e   :  { %4629 = vmatpush1.bf16.msra.mxu0 %v6445_v49  ;;  %4661 = vmatpush1.bf16.msra.mxu1 %v6449_v50 }
 0x37f   :  { %4663 = vmatprep.subr.bf16.mxu0 %v6312_v14  ;;  %4695 = vmatprep.subr.bf16.mxu1 %v6314_v29 }
 0x434   :  { %v1252_v62 = vpop.f32.mrb[6].mxu0  ;;  %v1323_v17 = vpop.f32.mrb[6].mxu1 }
 0x435   :  { %v5460_v25 = vadd.f32 %v1252_v62, %v6239_v6  ;;  %v1254_v18 = vpop.f32.mrb[7].mxu0  ;;  %v1325_v22 = vpop.f32.mrb[7].mxu1  ;;  %v5476_v58 = vadd.f32 %v1323_v17, %v6256_v32 }
 0x436   :  { %v5461_v33 = vadd.f32 %v1254_v18, %v6243_v9  ;;  %v5477_v45 = vadd.f32 %v1325_v22, %v6250_v23 }
 0x437   :  { %v4250_v47 = vmul.f32 -1.442695, %v5460_v25 }
 0x438   :  { %v4251_v40 = vmul.f32 -1.442695, %v5461_v33  ;;  %v4252_v57 = vmul.f32 -1.442695, %v5477_v45 }
 0x439   :  { %5640 = vpow2.f32 %v4250_v47 }
 0x43a   :  { %5642 = vpow2.f32 %v4251_v40 }
 0x43b   :  { %5644 = vpow2.f32 %v4252_v57 }
 0x43c   :  { %5646 = vtanh.f32 %v5476_v58 }
 0x443   :  { %v5641_v3 = vpop.eup %5640 }
 0x444   :  { %v5643_v20 = vpop.eup %5642  ;;  %v1335_v27 = vadd.f32 1.0, %v5641_v3 }
 0x445   :  { %v1341_v37 = vadd.f32 1.0, %v5643_v20  ;;  %v5645_v46 = vpop.eup %5644 }
 0x446   :  { %5648 = vrcp.f32 %v1335_v27  ;;  %v5647_v56 = vpop.eup %5646  ;;  %v1348_v18 = vadd.f32 1.0, %v5645_v46 }
 0x447   :  { %5650 = vrcp.f32 %v1341_v37 }
 0x448   :  { %5652 = vrcp.f32 %v1348_v18 }
 0x450   :  { %v5649_v61 = vpop.eup %5648 }
 0x451   :  { %v5651_v62 = vpop.eup %5650  ;;  %v1352_v25 = vmul.f32 %v5649_v61, %v5647_v56 }
 0x452   :  { %v1351_v33 = vmul.f32 %v5651_v62, %v6367_v60  ;;  %v5653_v17 = vpop.eup %5652 }
 0x454   :  { %v6461_v22 = vadd.f32 %v1352_v25, %v1351_v33 }
 0x456   :  { %5654 = vtanh.f32 %v6461_v22 }
 0x460   :  { %v5655_v47 = vpop.eup %5654 }
 0x461   :  { %v6464_v40 = vmul.f32 %v5655_v47, %v5653_v17 }
 0x463   :  { %1490 = vmatmul.mubr.f32.vlgmr.msra.gmra.mrb[8].mxu0 %v6464_v40  ;;  %1561 = vmatmul.mubr.f32.vlgmr.msra.gmra.mrb[8].mxu1 %v6464_v40 }
 0x464   :  { %4665 = vmatpush1.bf16.msra.mxu0 %v6316_v30  ;;  %4697 = vmatpush1.bf16.msra.mxu1 %v6319_v16 }
 0x465   :  { %4667 = vmatprep.subr.bf16.mxu0 %v6324_v31  ;;  %4699 = vmatprep.subr.bf16.mxu1 %v6326_v36 }
 0x466   :  { %1728 = vmatprep.mubr.f32.mxu0 %v5923_v0  ;;  %1799 = vmatprep.mubr.f32.mxu1 %v5923_v0 }
 0x468   :  { %4669 = vmatpush1.bf16.msra.mxu0 %v6328_v39  ;;  %4701 = vmatpush1.bf16.msra.mxu1 %v6331_v48 }
 0x469   :  { %4671 = vmatprep.subr.bf16.mxu0 %v6382_v13  ;;  %4703 = vmatprep.subr.bf16.mxu1 %v6384_v26 }
 0x46c   :  { %4673 = vmatpush1.bf16.msra.mxu0 %v6386_v12  ;;  %4705 = vmatpush1.bf16.msra.mxu1 %v6389_v19 }
 0x46d   :  { %4675 = vmatprep.subr.bf16.mxu0 %v6394_v35  ;;  %4707 = vmatprep.subr.bf16.mxu1 %v6396_v41 }
 0x470   :  { %4677 = vmatpush1.bf16.msra.mxu0 %v6398_v44  ;;  %4709 = vmatpush1.bf16.msra.mxu1 %v6401_v54 }
 0x471   :  { %4679 = vmatprep.subr.bf16.mxu0 %v6406_v4  ;;  %4711 = vmatprep.subr.bf16.mxu1 %v6408_v21 }
 0x474   :  { %4681 = vmatpush1.bf16.msra.mxu0 %v6410_v24  ;;  %4713 = vmatpush1.bf16.msra.mxu1 %v6413_v38 }
 0x475   :  { %4683 = vmatprep.subr.bf16.mxu0 %v6417_v59  ;;  %4715 = vmatprep.subr.bf16.mxu1 %v6420_v52 }
 0x478   :  { %4685 = vmatpush1.bf16.msra.mxu0 %v6422_v2  ;;  %4717 = vmatpush1.bf16.msra.mxu1 %v6425_v15 }
 0x479   :  { %4687 = vmatprep.subr.bf16.mxu0 %v6428_v34  ;;  %4719 = vmatprep.subr.bf16.mxu1 %v6430_v42 }
 0x47c   :  { %4689 = vmatpush1.bf16.msra.mxu0 %v6433_v53  ;;  %4721 = vmatpush1.bf16.msra.mxu1 %v6437_v7 }
 0x47d   :  { %4691 = vmatprep.subr.bf16.mxu0 %v6439_v8  ;;  %4723 = vmatprep.subr.bf16.mxu1 %v6442_v43 }
 0x480   :  { %4693 = vmatpush1.bf16.msra.mxu0 %v6445_v49  ;;  %4725 = vmatpush1.bf16.msra.mxu1 %v6449_v50 }
 0x481   :  { %4727 = vmatprep.subr.bf16.mxu0 %v6312_v14  ;;  %4759 = vmatprep.subr.bf16.mxu1 %v6314_v29 }
 0x536   :  { %v1491_v60 = vpop.f32.mrb[8].mxu0  ;;  %v1562_v45 = vpop.f32.mrb[8].mxu1 }
 0x537   :  { %v5462_v57 = vadd.f32 %v1491_v60, %v6239_v6  ;;  %v1493_v58 = vpop.f32.mrb[9].mxu0  ;;  %v1564_v3 = vpop.f32.mrb[9].mxu1  ;;  %v5478_v61 = vadd.f32 %v1562_v45, %v6256_v32 }
 0x538   :  { %v5463_v20 = vadd.f32 %v1493_v58, %v6243_v9  ;;  %v5479_v46 = vadd.f32 %v1564_v3, %v6250_v23 }
 0x539   :  { %v4253_v27 = vmul.f32 -1.442695, %v5462_v57 }
 0x53a   :  { %v4254_v37 = vmul.f32 -1.442695, %v5463_v20  ;;  %v4255_v56 = vmul.f32 -1.442695, %v5479_v46 }
 0x53b   :  { %5656 = vpow2.f32 %v4253_v27 }
 0x53c   :  { %5658 = vpow2.f32 %v4254_v37 }
 0x53d   :  { %5660 = vpow2.f32 %v4255_v56 }
 0x53e   :  { %5662 = vtanh.f32 %v5478_v61 }
 0x545   :  { %v5657_v14 = vpop.eup %5656 }
 0x546   :  { %v5659_v62 = vpop.eup %5658  ;;  %v1574_v29 = vadd.f32 1.0, %v5657_v14 }
 0x547   :  { %v1580_v25 = vadd.f32 1.0, %v5659_v62  ;;  %v5661_v18 = vpop.eup %5660 }
 0x548   :  { %5664 = vrcp.f32 %v1574_v29  ;;  %v5663_v33 = vpop.eup %5662  ;;  %v1587_v57 = vadd.f32 1.0, %v5661_v18 }
 0x549   :  { %5666 = vrcp.f32 %v1580_v25 }
 0x54a   :  { %5668 = vrcp.f32 %v1587_v57 }
 0x552   :  { %v5665_v17 = vpop.eup %5664 }
 0x553   :  { %v5667_v47 = vpop.eup %5666  ;;  %v1591_v60 = vmul.f32 %v5665_v17, %v5663_v33 }
 0x554   :  { %v1590_v58 = vmul.f32 %v5667_v47, %v6461_v22  ;;  %v5669_v45 = vpop.eup %5668 }
 0x556   :  { %v6507_v3 = vadd.f32 %v1591_v60, %v1590_v58 }
 0x558   :  { %5670 = vtanh.f32 %v6507_v3 }
 0x562   :  { %v5671_v20 = vpop.eup %5670 }
 0x563   :  { %v6510_v27 = vmul.f32 %v5671_v20, %v5669_v45 }
 0x565   :  { %1729 = vmatmul.mubr.f32.vlgmr.msra.gmra.mrb[10].mxu0 %v6510_v27  ;;  %1800 = vmatmul.mubr.f32.vlgmr.msra.gmra.mrb[10].mxu1 %v6510_v27 }
 0x566   :  { %4729 = vmatpush1.bf16.msra.mxu0 %v6316_v30  ;;  %4761 = vmatpush1.bf16.msra.mxu1 %v6319_v16 }
 0x567   :  { %4731 = vmatprep.subr.bf16.mxu0 %v6324_v31  ;;  %4763 = vmatprep.subr.bf16.mxu1 %v6326_v36 }
 0x568   :  { %1967 = vmatprep.mubr.f32.mxu0 %v5923_v0  ;;  %2038 = vmatprep.mubr.f32.mxu1 %v5923_v0 }
 0x56a   :  { %4733 = vmatpush1.bf16.msra.mxu0 %v6328_v39  ;;  %4765 = vmatpush1.bf16.msra.mxu1 %v6331_v48 }
 0x56b   :  { %4735 = vmatprep.subr.bf16.mxu0 %v6382_v13  ;;  %4767 = vmatprep.subr.bf16.mxu1 %v6384_v26 }
 0x56e   :  { %4737 = vmatpush1.bf16.msra.mxu0 %v6386_v12  ;;  %4769 = vmatpush1.bf16.msra.mxu1 %v6389_v19 }
 0x56f   :  { %4739 = vmatprep.subr.bf16.mxu0 %v6394_v35  ;;  %4771 = vmatprep.subr.bf16.mxu1 %v6396_v41 }
 0x572   :  { %4741 = vmatpush1.bf16.msra.mxu0 %v6398_v44  ;;  %4773 = vmatpush1.bf16.msra.mxu1 %v6401_v54 }
 0x573   :  { %4743 = vmatprep.subr.bf16.mxu0 %v6406_v4  ;;  %4775 = vmatprep.subr.bf16.mxu1 %v6408_v21 }
 0x576   :  { %4745 = vmatpush1.bf16.msra.mxu0 %v6410_v24  ;;  %4777 = vmatpush1.bf16.msra.mxu1 %v6413_v38 }
 0x577   :  { %4747 = vmatprep.subr.bf16.mxu0 %v6417_v59  ;;  %4779 = vmatprep.subr.bf16.mxu1 %v6420_v52 }
 0x57a   :  { %4749 = vmatpush1.bf16.msra.mxu0 %v6422_v2  ;;  %4781 = vmatpush1.bf16.msra.mxu1 %v6425_v15 }
 0x57b   :  { %4751 = vmatprep.subr.bf16.mxu0 %v6428_v34  ;;  %4783 = vmatprep.subr.bf16.mxu1 %v6430_v42 }
 0x57e   :  { %4753 = vmatpush1.bf16.msra.mxu0 %v6433_v53  ;;  %4785 = vmatpush1.bf16.msra.mxu1 %v6437_v7 }
 0x57f   :  { %4755 = vmatprep.subr.bf16.mxu0 %v6439_v8  ;;  %4787 = vmatprep.subr.bf16.mxu1 %v6442_v43 }
 0x582   :  { %4757 = vmatpush1.bf16.msra.mxu0 %v6445_v49  ;;  %4789 = vmatpush1.bf16.msra.mxu1 %v6449_v50 }
 0x638   :  { %v1730_v30 = vpop.f32.mrb[10].mxu0  ;;  %v1801_v16 = vpop.f32.mrb[10].mxu1 }
 0x639   :  { %v5464_v31 = vadd.f32 %v1730_v30, %v6239_v6  ;;  %v1732_v36 = vpop.f32.mrb[11].mxu0  ;;  %v1803_v39 = vpop.f32.mrb[11].mxu1  ;;  %v5480_v61 = vadd.f32 %v1801_v16, %v6256_v32 }
 0x63a   :  { %v5465_v48 = vadd.f32 %v1732_v36, %v6243_v9  ;;  %v5481_v46 = vadd.f32 %v1803_v39, %v6250_v23  ;;  %v2083_v36 = vld [vmem:[#allocation4 + $0x28] sm:$0xff] }
 0x63b   :  { %v4256_v22 = vmul.f32 -1.442695, %v5464_v31  ;;  %v2079_v31 = vld [vmem:[#allocation4 + $0x8] sm:$0xff] }
 0x63c   :  { %v4257_v37 = vmul.f32 -1.442695, %v5465_v48  ;;  %v4258_v56 = vmul.f32 -1.442695, %v5481_v46  ;;  %v4790_v39 = vpack.c.bf16 %v2083_v36, %v2079_v31  ;;  %v2085_v48 = vld [vmem:[#allocation4 + $0x38] sm:$0xff] }
 0x63d   :  { %5672 = vpow2.f32 %v4256_v22  ;;  %v2078_v22 = vld [vmem:[#allocation4] sm:$0xff] }
 0x63e   :  { %5674 = vpow2.f32 %v4257_v37  ;;  %v2082_v37 = vld [vmem:[#allocation4 + $0x20] sm:$0xff]  ;;  %4791 = vmatprep.subr.bf16.mxu0 %v4790_v39 }
 0x63f   :  { %5676 = vpow2.f32 %v4258_v56  ;;  %v4792_v56 = vpack.c.bf16 %v2082_v37, %v2078_v22  ;;  %v2321_v37 = vld [vmem:[#allocation6] sm:$0xff] }
 0x640   :  { %5678 = vtanh.f32 %v5480_v61  ;;  %v2080_v61 = vld [vmem:[#allocation4 + $0x10] sm:$0xff] }
 0x647   :  { %v5673_v14 = vpop.eup %5672 }
 0x648   :  { %v5675_v62 = vpop.eup %5674  ;;  %v1813_v29 = vadd.f32 1.0, %v5673_v14  ;;  %v2084_v14 = vld [vmem:[#allocation4 + $0x30] sm:$0xff] }
 0x649   :  { %v1819_v25 = vadd.f32 1.0, %v5675_v62  ;;  %v5677_v18 = vpop.eup %5676  ;;  %v4824_v62 = vpack.c.bf16 %v2084_v14, %v2080_v61  ;;  %v2327_v61 = vld [vmem:[#allocation6 + $0x30] sm:$0xff]  ;;  %v2330_v14 = vld [vmem:[#allocation6 + $0x48] sm:$0xff] }
 0x64a   :  { %5680 = vrcp.f32 %v1813_v29  ;;  %v5679_v33 = vpop.eup %5678  ;;  %v1826_v57 = vadd.f32 1.0, %v5677_v18  ;;  %v2087_v29 = vld [vmem:[#allocation4 + $0x48] sm:$0xff]  ;;  %v2089_v18 = vld [vmem:[#allocation4 + $0x58] sm:$0xff] }
 0x64b   :  { %5682 = vrcp.f32 %v1819_v25  ;;  %v2091_v25 = vld [vmem:[#allocation4 + $0x68] sm:$0xff] }
 0x64c   :  { %5684 = vrcp.f32 %v1826_v57 }
 0x654   :  { %v5681_v17 = vpop.eup %5680 }
 0x655   :  { %v5683_v47 = vpop.eup %5682  ;;  %v1830_v60 = vmul.f32 %v5681_v17, %v5679_v33  ;;  %v4794_v33 = vpack.c.bf16 %v2091_v25, %v2087_v29  ;;  %v2093_v17 = vld [vmem:[#allocation4 + $0x78] sm:$0xff] }
 0x656   :  { %v1829_v58 = vmul.f32 %v5683_v47, %v6507_v3  ;;  %v5685_v20 = vpop.eup %5684  ;;  %v2081_v3 = vld [vmem:[#allocation4 + $0x18] sm:$0xff]  ;;  %v2086_v47 = vld [vmem:[#allocation4 + $0x40] sm:$0xff]  ;;  %v4826_v57 = vpack.c.bf16 %v2093_v17, %v2089_v18 }
 0x657   :  { %v4822_v46 = vpack.c.bf16 %v2085_v48, %v2081_v3  ;;  %v2332_v29 = vld [vmem:[#allocation6 + $0x58] sm:$0xff] }
 0x658   :  { %v6551_v45 = vadd.f32 %v1830_v60, %v1829_v58  ;;  %v2090_v60 = vld [vmem:[#allocation4 + $0x60] sm:$0xff]  ;;  %v2336_v25 = vld [vmem:[#allocation6 + $0x78] sm:$0xff] }
 0x659   :  { %4823 = vmatprep.subr.bf16.mxu1 %v4822_v46  ;;  %v4796_v58 = vpack.c.bf16 %v2090_v60, %v2086_v47  ;;  %v2325_v46 = vld [vmem:[#allocation6 + $0x20] sm:$0xff] }
 0x65a   :  { %5686 = vtanh.f32 %v6551_v45  ;;  %v4856_v17 = vpack.c.bf16 %v2325_v46, %v2321_v37  ;;  %v2329_v60 = vld [vmem:[#allocation6 + $0x40] sm:$0xff] }
 0x664   :  { %v5687_v30 = vpop.eup %5686 }
 0x665   :  { %v6554_v16 = vmul.f32 %v5687_v30, %v5685_v20  ;;  %v2088_v20 = vld [vmem:[#allocation4 + $0x50] sm:$0xff] }
 0x666   :  { %v2092_v30 = vld [vmem:[#allocation4 + $0x70] sm:$0xff] }
 0x667   :  { %1968 = vmatmul.mubr.f32.vlgmr.msra.gmra.mrb[12].mxu0 %v6554_v16  ;;  %2039 = vmatmul.mubr.f32.vlgmr.msra.gmra.mrb[12].mxu1 %v6554_v16  ;;  %v4828_v31 = vpack.c.bf16 %v2092_v30, %v2088_v20  ;;  %v4890_v20 = vpack.c.bf16 %v2336_v25, %v2332_v29  ;;  %v2331_v30 = vld [vmem:[#allocation6 + $0x50] sm:$0xff] }
 0x668   :  { %2206 = vmatprep.mubr.f32.mxu0 %v5923_v0  ;;  %2277 = vmatprep.mubr.f32.mxu1 %v5923_v0  ;;  %v2355_v29 = vld [vmem:[#allocation6 + $0x110] sm:$0xff] }
 0x669   :  { %4793 = vmatpush1.bf16.msra.mxu0 %v4792_v56  ;;  %4825 = vmatpush1.bf16.msra.mxu1 %v4824_v62  ;;  %v2323_v56 = vld [vmem:[#allocation6 + $0x10] sm:$0xff]  ;;  %v2334_v62 = vld [vmem:[#allocation6 + $0x68] sm:$0xff] }
 0x66a   :  { %4795 = vmatprep.subr.bf16.mxu0 %v4794_v33  ;;  %4827 = vmatprep.subr.bf16.mxu1 %v4826_v57  ;;  %v4888_v47 = vpack.c.bf16 %v2327_v61, %v2323_v56  ;;  %v2333_v57 = vld [vmem:[#allocation6 + $0x60] sm:$0xff]  ;;  %v2359_v25 = vld [vmem:[#allocation6 + $0x130] sm:$0xff] }
 0x66b   :  { %v2353_v56 = vld [vmem:[#allocation6 + $0x100] sm:$0xff] }
 0x66c   :  { %v2357_v61 = vld [vmem:[#allocation6 + $0x120] sm:$0xff] }
 0x66d   :  { %4797 = vmatpush1.bf16.msra.mxu0 %v4796_v58  ;;  %4829 = vmatpush1.bf16.msra.mxu1 %v4828_v31  ;;  %v4858_v58 = vpack.c.bf16 %v2334_v62, %v2330_v14  ;;  %v2335_v31 = vld [vmem:[#allocation6 + $0x70] sm:$0xff] }
 0x66e   :  { %4799 = vmatprep.subr.bf16.mxu0 %v6382_v13  ;;  %4831 = vmatprep.subr.bf16.mxu1 %v6384_v26  ;;  %v2322_v13 = vld [vmem:[#allocation6 + $0x8] sm:$0xff] }
 0x66f   :  { %v2326_v26 = vld [vmem:[#allocation6 + $0x28] sm:$0xff] }
 0x671   :  { %4801 = vmatpush1.bf16.msra.mxu0 %v6386_v12  ;;  %4833 = vmatpush1.bf16.msra.mxu1 %v6389_v19  ;;  %v2324_v12 = vld [vmem:[#allocation6 + $0x18] sm:$0xff] }
 0x672   :  { %4803 = vmatprep.subr.bf16.mxu0 %v6394_v35  ;;  %4835 = vmatprep.subr.bf16.mxu1 %v6396_v41  ;;  %v2328_v19 = vld [vmem:[#allocation6 + $0x38] sm:$0xff]  ;;  %v4854_v35 = vpack.c.bf16 %v2326_v26, %v2322_v13  ;;  %v2338_v13 = vld [vmem:[#allocation6 + $0x88] sm:$0xff] }
 0x673   :  { %v4886_v41 = vpack.c.bf16 %v2328_v19, %v2324_v12  ;;  %v2342_v26 = vld [vmem:[#allocation6 + $0xa8] sm:$0xff]  ;;  %v2340_v12 = vld [vmem:[#allocation6 + $0x98] sm:$0xff] }
 0x674   :  { %v2344_v19 = vld [vmem:[#allocation6 + $0xb8] sm:$0xff] }
 0x675   :  { %4805 = vmatpush1.bf16.msra.mxu0 %v6398_v44  ;;  %4837 = vmatpush1.bf16.msra.mxu1 %v6401_v54 }
 0x676   :  { %4807 = vmatprep.subr.bf16.mxu0 %v6406_v4  ;;  %4839 = vmatprep.subr.bf16.mxu1 %v6408_v21 }
 0x679   :  { %4809 = vmatpush1.bf16.msra.mxu0 %v6410_v24  ;;  %4841 = vmatpush1.bf16.msra.mxu1 %v6413_v38 }
 0x67a   :  { %4811 = vmatprep.subr.bf16.mxu0 %v6417_v59  ;;  %4843 = vmatprep.subr.bf16.mxu1 %v6420_v52 }
 0x67d   :  { %4813 = vmatpush1.bf16.msra.mxu0 %v6422_v2  ;;  %4845 = vmatpush1.bf16.msra.mxu1 %v6425_v15 }
 0x67e   :  { %4815 = vmatprep.subr.bf16.mxu0 %v6428_v34  ;;  %4847 = vmatprep.subr.bf16.mxu1 %v6430_v42 }
 0x681   :  { %4817 = vmatpush1.bf16.msra.mxu0 %v6433_v53  ;;  %4849 = vmatpush1.bf16.msra.mxu1 %v6437_v7 }
 0x682   :  { %4819 = vmatprep.subr.bf16.mxu0 %v6439_v8  ;;  %4851 = vmatprep.subr.bf16.mxu1 %v6442_v43 }
 0x685   :  { %4821 = vmatpush1.bf16.msra.mxu0 %v6445_v49  ;;  %4853 = vmatpush1.bf16.msra.mxu1 %v6449_v50 }
 0x686   :  { %4855 = vmatprep.subr.bf16.mxu0 %v4854_v35  ;;  %4887 = vmatprep.subr.bf16.mxu1 %v4886_v41  ;;  %v4860_v35 = vpack.c.bf16 %v2333_v57, %v2329_v60  ;;  %v4892_v41 = vpack.c.bf16 %v2335_v31, %v2331_v30  ;;  %v4872_v60 = vpack.c.bf16 %v2357_v61, %v2353_v56  ;;  %v2671_v61 = vld [vmem:[#allocation8 + $0x10] sm:$0xff] }
 0x687   :  { %v4904_v57 = vpack.c.bf16 %v2359_v25, %v2355_v29  ;;  %v2682_v29 = vld [vmem:[#allocation8 + $0x68] sm:$0xff]  ;;  %v2680_v25 = vld [vmem:[#allocation8 + $0x58] sm:$0xff] }
 0x73a   :  { %v1969_v44 = vpop.f32.mrb[12].mxu0  ;;  %v2040_v54 = vpop.f32.mrb[12].mxu1 }
 0x73b   :  { %v5466_v4 = vadd.f32 %v1969_v44, %v6239_v6  ;;  %v1971_v21 = vpop.f32.mrb[13].mxu0  ;;  %v2042_v24 = vpop.f32.mrb[13].mxu1  ;;  %v5482_v34 = vadd.f32 %v2040_v54, %v6256_v32  ;;  %v2337_v44 = vld [vmem:[#allocation6 + $0x80] sm:$0xff] }
 0x73c   :  { %v5467_v38 = vadd.f32 %v1971_v21, %v6243_v9  ;;  %v5483_v2 = vadd.f32 %v2042_v24, %v6250_v23  ;;  %v2341_v54 = vld [vmem:[#allocation6 + $0xa0] sm:$0xff]  ;;  %v4894_v21 = vpack.c.bf16 %v2344_v19, %v2340_v12  ;;  %v2339_v24 = vld [vmem:[#allocation6 + $0x90] sm:$0xff]  ;;  %v2370_v12 = vld [vmem:[#allocation6 + $0x188] sm:$0xff] }
 0x73d   :  { %v4259_v59 = vmul.f32 -1.442695, %v5466_v4  ;;  %v4862_v4 = vpack.c.bf16 %v2342_v26, %v2338_v13  ;;  %v2363_v13 = vld [vmem:[#allocation6 + $0x150] sm:$0xff]  ;;  %v2374_v19 = vld [vmem:[#allocation6 + $0x1a8] sm:$0xff] }
 0x73e   :  { %v4260_v52 = vmul.f32 -1.442695, %v5467_v38  ;;  %v4261_v15 = vmul.f32 -1.442695, %v5483_v2  ;;  %v2343_v38 = vld [vmem:[#allocation6 + $0xb0] sm:$0xff]  ;;  %v2348_v2 = vld [vmem:[#allocation6 + $0xd8] sm:$0xff] }
 0x73f   :  { %5688 = vpow2.f32 %v4259_v59  ;;  %v2346_v59 = vld [vmem:[#allocation6 + $0xc8] sm:$0xff]  ;;  %v2367_v26 = vld [vmem:[#allocation6 + $0x170] sm:$0xff] }
 0x740   :  { %5690 = vpow2.f32 %v4260_v52  ;;  %v2350_v52 = vld [vmem:[#allocation6 + $0xe8] sm:$0xff] }
 0x741   :  { %5692 = vpow2.f32 %v4261_v15  ;;  %v2352_v15 = vld [vmem:[#allocation6 + $0xf8] sm:$0xff] }
 0x742   :  { %5694 = vtanh.f32 %v5482_v34  ;;  %v4864_v34 = vpack.c.bf16 %v2341_v54, %v2337_v44  ;;  %v4908_v54 = vpack.c.bf16 %v2367_v26, %v2363_v13  ;;  %v2690_v13 = vld [vmem:[#allocation8 + $0xa8] sm:$0xff]  ;;  %v2688_v26 = vld [vmem:[#allocation8 + $0x98] sm:$0xff] }
 0x749   :  { %v5689_v42 = vpop.eup %5688 }
 0x74a   :  { %v5691_v53 = vpop.eup %5690  ;;  %v2052_v7 = vadd.f32 1.0, %v5689_v42  ;;  %v4896_v42 = vpack.c.bf16 %v2343_v38, %v2339_v24  ;;  %v4878_v24 = vpack.c.bf16 %v2374_v19, %v2370_v12  ;;  %v2692_v19 = vld [vmem:[#allocation8 + $0xb8] sm:$0xff] }
 0x74b   :  { %v2058_v8 = vadd.f32 1.0, %v5691_v53  ;;  %v5693_v43 = vpop.eup %5692  ;;  %v2345_v53 = vld [vmem:[#allocation6 + $0xc0] sm:$0xff] }
 0x74c   :  { %5696 = vrcp.f32 %v2052_v7  ;;  %v5695_v49 = vpop.eup %5694  ;;  %v2065_v39 = vadd.f32 1.0, %v5693_v43  ;;  %v2349_v7 = vld [vmem:[#allocation6 + $0xe0] sm:$0xff]  ;;  %v4898_v43 = vpack.c.bf16 %v2352_v15, %v2348_v2  ;;  %v2378_v2 = vld [vmem:[#allocation6 + $0x1c8] sm:$0xff] }
 0x74d   :  { %5698 = vrcp.f32 %v2058_v8  ;;  %v4866_v8 = vpack.c.bf16 %v2350_v52, %v2346_v59  ;;  %v4868_v37 = vpack.c.bf16 %v2349_v7, %v2345_v53  ;;  %v2371_v59 = vld [vmem:[#allocation6 + $0x190] sm:$0xff]  ;;  %v2382_v15 = vld [vmem:[#allocation6 + $0x1e8] sm:$0xff] }
 0x74e   :  { %5700 = vrcp.f32 %v2065_v39  ;;  %v2356_v39 = vld [vmem:[#allocation6 + $0x118] sm:$0xff]  ;;  %v2375_v52 = vld [vmem:[#allocation6 + $0x1b0] sm:$0xff] }
 0x74f   :  { %v4912_v7 = vpack.c.bf16 %v2375_v52, %v2371_v59  ;;  %v2698_v59 = vld [vmem:[#allocation8 + $0xe8] sm:$0xff]  ;;  %v2696_v52 = vld [vmem:[#allocation8 + $0xd8] sm:$0xff] }
 0x756   :  { %v5697_v50 = vpop.eup %5696 }
 0x757   :  { %v5699_v36 = vpop.eup %5698  ;;  %v2069_v3 = vmul.f32 %v5697_v50, %v5695_v49  ;;  %v2347_v49 = vld [vmem:[#allocation6 + $0xd0] sm:$0xff] }
 0x758   :  { %v2068_v48 = vmul.f32 %v5699_v36, %v6551_v45  ;;  %v5701_v18 = vpop.eup %5700  ;;  %v2351_v50 = vld [vmem:[#allocation6 + $0xf0] sm:$0xff]  ;;  %v2354_v36 = vld [vmem:[#allocation6 + $0x108] sm:$0xff] }
 0x759   :  { %v4900_v46 = vpack.c.bf16 %v2351_v50, %v2347_v49  ;;  %v2381_v50 = vld [vmem:[#allocation6 + $0x1e0] sm:$0xff] }
 0x75a   :  { %v6589_v22 = vadd.f32 %v2069_v3, %v2068_v48  ;;  %v2358_v3 = vld [vmem:[#allocation6 + $0x128] sm:$0xff]  ;;  %v2360_v48 = vld [vmem:[#allocation6 + $0x138] sm:$0xff] }
 0x75b   :  { %v4870_v14 = vpack.c.bf16 %v2358_v3, %v2354_v36  ;;  %v4902_v62 = vpack.c.bf16 %v2360_v48, %v2356_v39  ;;  %v2379_v36 = vld [vmem:[#allocation6 + $0x1d0] sm:$0xff] }
 0x75c   :  { %5702 = vtanh.f32 %v6589_v22  ;;  %v2383_v3 = vld [vmem:[#allocation6 + $0x1f0] sm:$0xff] }
 0x75d   :  { %v4916_v48 = vpack.c.bf16 %v2383_v3, %v2379_v36  ;;  %v2706_v36 = vld [vmem:[#allocation8 + $0x128] sm:$0xff]  ;;  %v2704_v3 = vld [vmem:[#allocation8 + $0x118] sm:$0xff] }
 0x766   :  { %v5703_v33 = vpop.eup %5702 }
 0x767   :  { %v6592_v45 = vmul.f32 %v5703_v33, %v5701_v18  ;;  %v2362_v18 = vld [vmem:[#allocation6 + $0x148] sm:$0xff] }
 0x768   :  { %v2366_v33 = vld [vmem:[#allocation6 + $0x168] sm:$0xff] }
 0x769   :  { %2207 = vmatmul.mubr.f32.vlgmr.msra.gmra.mrb[14].mxu0 %v6592_v45  ;;  %2278 = vmatmul.mubr.f32.vlgmr.msra.gmra.mrb[14].mxu1 %v6592_v45  ;;  %v4874_v30 = vpack.c.bf16 %v2366_v33, %v2362_v18  ;;  %v2684_v33 = vld [vmem:[#allocation8 + $0x78] sm:$0xff] }
 0x76a   :  { %4857 = vmatpush1.bf16.msra.mxu0 %v4856_v17  ;;  %4889 = vmatpush1.bf16.msra.mxu1 %v4888_v47  ;;  %v2364_v17 = vld [vmem:[#allocation6 + $0x158] sm:$0xff] }
 0x76b   :  { %4859 = vmatprep.subr.bf16.mxu0 %v4858_v58  ;;  %4891 = vmatprep.subr.bf16.mxu1 %v4890_v20  ;;  %v2368_v47 = vld [vmem:[#allocation6 + $0x178] sm:$0xff]  ;;  %v2361_v58 = vld [vmem:[#allocation6 + $0x140] sm:$0xff] }
 0x76c   :  { %2471 = vmatprep.mubr.f32.mxu0 %v5923_v0  ;;  %2584 = vmatprep.mubr.f32.mxu1 %v5923_v0  ;;  %v2365_v20 = vld [vmem:[#allocation6 + $0x160] sm:$0xff]  ;;  %v4906_v31 = vpack.c.bf16 %v2368_v47, %v2364_v17 }
 0x76d   :  { %v4876_v44 = vpack.c.bf16 %v2365_v20, %v2361_v58  ;;  %v2677_v17 = vld [vmem:[#allocation8 + $0x40] sm:$0xff]  ;;  %v2679_v58 = vld [vmem:[#allocation8 + $0x50] sm:$0xff] }
 0x76e   :  { %4861 = vmatpush1.bf16.msra.mxu0 %v4860_v35  ;;  %4893 = vmatpush1.bf16.msra.mxu1 %v4892_v41  ;;  %v2372_v35 = vld [vmem:[#allocation6 + $0x198] sm:$0xff]  ;;  %v2681_v47 = vld [vmem:[#allocation8 + $0x60] sm:$0xff]  ;;  %v2683_v20 = vld [vmem:[#allocation8 + $0x70] sm:$0xff] }
 0x76f   :  { %4863 = vmatprep.subr.bf16.mxu0 %v4862_v4  ;;  %4895 = vmatprep.subr.bf16.mxu1 %v4894_v21  ;;  %v2376_v41 = vld [vmem:[#allocation6 + $0x1b8] sm:$0xff]  ;;  %v2369_v4 = vld [vmem:[#allocation6 + $0x180] sm:$0xff] }
 0x770   :  { %v2373_v21 = vld [vmem:[#allocation6 + $0x1a0] sm:$0xff]  ;;  %v4910_v38 = vpack.c.bf16 %v2376_v41, %v2372_v35 }
 0x771   :  { %v4880_v53 = vpack.c.bf16 %v2373_v21, %v2369_v4  ;;  %v2685_v35 = vld [vmem:[#allocation8 + $0x80] sm:$0xff]  ;;  %v2687_v4 = vld [vmem:[#allocation8 + $0x90] sm:$0xff] }
 0x772   :  { %4865 = vmatpush1.bf16.msra.mxu0 %v4864_v34  ;;  %4897 = vmatpush1.bf16.msra.mxu1 %v4896_v42  ;;  %v2380_v34 = vld [vmem:[#allocation6 + $0x1d8] sm:$0xff]  ;;  %v2689_v41 = vld [vmem:[#allocation8 + $0xa0] sm:$0xff]  ;;  %v2691_v21 = vld [vmem:[#allocation8 + $0xb0] sm:$0xff] }
 0x773   :  { %4867 = vmatprep.subr.bf16.mxu0 %v4866_v8  ;;  %4899 = vmatprep.subr.bf16.mxu1 %v4898_v43  ;;  %v2384_v42 = vld [vmem:[#allocation6 + $0x1f8] sm:$0xff]  ;;  %v2377_v8 = vld [vmem:[#allocation6 + $0x1c0] sm:$0xff]  ;;  %v4882_v43 = vpack.c.bf16 %v2382_v15, %v2378_v2 }
 0x774   :  { %v4914_v49 = vpack.c.bf16 %v2384_v42, %v2380_v34  ;;  %v4884_v39 = vpack.c.bf16 %v2381_v50, %v2377_v8  ;;  %v2700_v15 = vld [vmem:[#allocation8 + $0xf8] sm:$0xff]  ;;  %v2693_v34 = vld [vmem:[#allocation8 + $0xc0] sm:$0xff]  ;;  %v2695_v8 = vld [vmem:[#allocation8 + $0xd0] sm:$0xff] }
 0x775   :  { %v2697_v42 = vld [vmem:[#allocation8 + $0xe0] sm:$0xff] }
 0x776   :  { %4869 = vmatpush1.bf16.msra.mxu0 %v4868_v37  ;;  %4901 = vmatpush1.bf16.msra.mxu1 %v4900_v46  ;;  %v2669_v37 = vld [vmem:[#allocation8] sm:$0xff] }
 0x777   :  { %4871 = vmatprep.subr.bf16.mxu0 %v4870_v14  ;;  %4903 = vmatprep.subr.bf16.mxu1 %v4902_v62  ;;  %v2675_v14 = vld [vmem:[#allocation8 + $0x30] sm:$0xff]  ;;  %v2678_v62 = vld [vmem:[#allocation8 + $0x48] sm:$0xff] }
 0x778   :  { %v6638_v18 = vpack.c.bf16 %v2682_v29, %v2678_v62 }
 0x77a   :  { %4873 = vmatpush1.bf16.msra.mxu0 %v4872_v60  ;;  %4905 = vmatpush1.bf16.msra.mxu1 %v4904_v57  ;;  %v6640_v60 = vpack.c.bf16 %v2684_v33, %v2680_v25  ;;  %v6642_v57 = vpack.c.bf16 %v2681_v47, %v2677_v17  ;;  %v2712_v25 = vld [vmem:[#allocation8 + $0x158] sm:$0xff]  ;;  %v2709_v17 = vld [vmem:[#allocation8 + $0x140] sm:$0xff] }
 0x77b   :  { %4875 = vmatprep.subr.bf16.mxu0 %v4874_v30  ;;  %4907 = vmatprep.subr.bf16.mxu1 %v4906_v31  ;;  %v6645_v30 = vpack.c.bf16 %v2683_v20, %v2679_v58  ;;  %v2686_v31 = vld [vmem:[#allocation8 + $0x88] sm:$0xff]  ;;  %v2716_v33 = vld [vmem:[#allocation8 + $0x178] sm:$0xff]  ;;  %v2713_v58 = vld [vmem:[#allocation8 + $0x160] sm:$0xff] }
 0x77c   :  { %v6650_v12 = vpack.c.bf16 %v2690_v13, %v2686_v31  ;;  %v6686_v47 = vpack.c.bf16 %v2716_v33, %v2712_v25  ;;  %v2711_v20 = vld [vmem:[#allocation8 + $0x150] sm:$0xff]  ;;  %v6689_v13 = vpack.c.bf16 %v2713_v58, %v2709_v17 }
 0x77d   :  { %v2715_v31 = vld [vmem:[#allocation8 + $0x170] sm:$0xff] }
 0x77e   :  { %4877 = vmatpush1.bf16.msra.mxu0 %v4876_v44  ;;  %4909 = vmatpush1.bf16.msra.mxu1 %v4908_v54  ;;  %v6652_v44 = vpack.c.bf16 %v2692_v19, %v2688_v26  ;;  %v6654_v54 = vpack.c.bf16 %v2689_v41, %v2685_v35  ;;  %v2718_v26 = vld [vmem:[#allocation8 + $0x188] sm:$0xff]  ;;  %v2720_v35 = vld [vmem:[#allocation8 + $0x198] sm:$0xff]  ;;  %v6693_v41 = vpack.c.bf16 %v2715_v31, %v2711_v20 }
 0x77f   :  { %4879 = vmatprep.subr.bf16.mxu0 %v4878_v24  ;;  %4911 = vmatprep.subr.bf16.mxu1 %v4910_v38  ;;  %v6657_v24 = vpack.c.bf16 %v2691_v21, %v2687_v4  ;;  %v2694_v38 = vld [vmem:[#allocation8 + $0xc8] sm:$0xff]  ;;  %v2724_v21 = vld [vmem:[#allocation8 + $0x1b8] sm:$0xff] }
 0x780   :  { %v6662_v2 = vpack.c.bf16 %v2698_v59, %v2694_v38  ;;  %v2722_v19 = vld [vmem:[#allocation8 + $0x1a8] sm:$0xff]  ;;  %v2717_v38 = vld [vmem:[#allocation8 + $0x180] sm:$0xff] }
 0x781   :  { %v6695_v4 = vpack.c.bf16 %v2722_v19, %v2718_v26  ;;  %v2721_v59 = vld [vmem:[#allocation8 + $0x1a0] sm:$0xff] }
 0x782   :  { %4881 = vmatpush1.bf16.msra.mxu0 %v4880_v53  ;;  %4913 = vmatpush1.bf16.msra.mxu1 %v4912_v7  ;;  %v6664_v53 = vpack.c.bf16 %v2700_v15, %v2696_v52  ;;  %v6666_v7 = vpack.c.bf16 %v2697_v42, %v2693_v34  ;;  %v6698_v52 = vpack.c.bf16 %v2724_v21, %v2720_v35  ;;  %v2719_v15 = vld [vmem:[#allocation8 + $0x190] sm:$0xff] }
 0x783   :  { %4883 = vmatprep.subr.bf16.mxu0 %v4882_v43  ;;  %4915 = vmatprep.subr.bf16.mxu1 %v4914_v49  ;;  %v2699_v43 = vld [vmem:[#allocation8 + $0xf0] sm:$0xff]  ;;  %v2702_v49 = vld [vmem:[#allocation8 + $0x108] sm:$0xff]  ;;  %v6701_v42 = vpack.c.bf16 %v2721_v59, %v2717_v38 }
 0x784   :  { %v6669_v50 = vpack.c.bf16 %v2699_v43, %v2695_v8  ;;  %v2723_v34 = vld [vmem:[#allocation8 + $0x1b0] sm:$0xff]  ;;  %v2726_v43 = vld [vmem:[#allocation8 + $0x1c8] sm:$0xff] }
 0x785   :  { %v6705_v8 = vpack.c.bf16 %v2723_v34, %v2719_v15 }
 0x786   :  { %4885 = vmatpush1.bf16.msra.mxu0 %v4884_v39  ;;  %4917 = vmatpush1.bf16.msra.mxu1 %v4916_v48  ;;  %v2708_v39 = vld [vmem:[#allocation8 + $0x138] sm:$0xff]  ;;  %v6673_v48 = vpack.c.bf16 %v2706_v36, %v2702_v49  ;;  %v2730_v49 = vld [vmem:[#allocation8 + $0x1e8] sm:$0xff] }
 0x787   :  { %v2728_v36 = vld [vmem:[#allocation8 + $0x1d8] sm:$0xff] }
 0x789   :  { %2472 = vmatmul.mubr.f32.vlgmr.msra.gmra.mrb[16].mxu0 %v6262_v10  ;;  %2585 = vmatmul.mubr.f32.vlgmr.msra.gmra.mrb[16].mxu1 %v6262_v10  ;;  %v2670_v10 = vld [vmem:[#allocation8 + $0x8] sm:$0xff] }
 0x78a   :  { %2477 = vmatprep.mubr.f32.mxu0 %v5923_v0  ;;  %2590 = vmatprep.mubr.f32.mxu1 %v5923_v0 }
 0x78d   :  { %2478 = vmatmul.mubr.f32.gmra.mrb[18].mxu0 %v6306_v55  ;;  %2591 = vmatmul.mubr.f32.gmra.mrb[18].mxu1 %v6306_v55  ;;  %v2674_v55 = vld [vmem:[#allocation8 + $0x28] sm:$0xff] }
 0x78e   :  { %2483 = vmatprep.mubr.f32.mxu0 %v5923_v0  ;;  %2596 = vmatprep.mubr.f32.mxu1 %v5923_v0 }
 0x791   :  { %2484 = vmatmul.mubr.f32.gmra.mrb[20].mxu0 %v6370_v51  ;;  %2597 = vmatmul.mubr.f32.gmra.mrb[20].mxu1 %v6370_v51  ;;  %v2672_v51 = vld [vmem:[#allocation8 + $0x18] sm:$0xff] }
 0x792   :  { %2489 = vmatprep.mubr.f32.mxu0 %v5923_v0  ;;  %2602 = vmatprep.mubr.f32.mxu1 %v5923_v0 }
 0x795   :  { %2490 = vmatmul.mubr.f32.gmra.mrb[22].mxu0 %v6464_v40  ;;  %2603 = vmatmul.mubr.f32.gmra.mrb[22].mxu1 %v6464_v40  ;;  %v6626_v40 = vpack.c.bf16 %v2674_v55, %v2670_v10  ;;  %v6675_v10 = vpack.c.bf16 %v2708_v39, %v2704_v3  ;;  %v2701_v55 = vld [vmem:[#allocation8 + $0x100] sm:$0xff]  ;;  %v6710_v3 = vpack.c.bf16 %v2730_v49, %v2726_v43  ;;  %v2732_v39 = vld [vmem:[#allocation8 + $0x1f8] sm:$0xff] }
 0x796   :  { %2495 = vmatprep.mubr.f32.mxu0 %v5923_v0  ;;  %2608 = vmatprep.mubr.f32.mxu1 %v5923_v0 }
 0x797   :  { %4919 = vmatprep.subr.bf16.mxu0 %v6626_v40 }
 0x799   :  { %2496 = vmatmul.mubr.f32.gmra.mrb[24].mxu0 %v6510_v27  ;;  %2609 = vmatmul.mubr.f32.gmra.mrb[24].mxu1 %v6510_v27  ;;  %v2676_v27 = vld [vmem:[#allocation8 + $0x38] sm:$0xff] }
 0x79a   :  { %2501 = vmatprep.mubr.f32.mxu0 %v5923_v0  ;;  %2614 = vmatprep.mubr.f32.mxu1 %v5923_v0  ;;  %v6628_v46 = vpack.c.bf16 %v2676_v27, %v2672_v51  ;;  %v2705_v51 = vld [vmem:[#allocation8 + $0x120] sm:$0xff]  ;;  %v2703_v27 = vld [vmem:[#allocation8 + $0x110] sm:$0xff] }
 0x79c   :  { %4951 = vmatprep.subr.bf16.mxu1 %v6628_v46 }
 0x79d   :  { %2502 = vmatmul.mubr.f32.gmra.mrb[26].mxu0 %v6554_v16  ;;  %2615 = vmatmul.mubr.f32.gmra.mrb[26].mxu1 %v6554_v16  ;;  %v2673_v16 = vld [vmem:[#allocation8 + $0x20] sm:$0xff] }
 0x79e   :  { %2507 = vmatprep.mubr.f32.mxu0 %v5923_v0  ;;  %2620 = vmatprep.mubr.f32.mxu1 %v5923_v0  ;;  %v6630_v56 = vpack.c.bf16 %v2673_v16, %v2669_v37  ;;  %v6678_v37 = vpack.c.bf16 %v2705_v51, %v2701_v55  ;;  %v2707_v16 = vld [vmem:[#allocation8 + $0x130] sm:$0xff]  ;;  %v2725_v55 = vld [vmem:[#allocation8 + $0x1c0] sm:$0xff] }
 0x79f   :  { %v6682_v62 = vpack.c.bf16 %v2707_v16, %v2703_v27  ;;  %v2729_v51 = vld [vmem:[#allocation8 + $0x1e0] sm:$0xff]  ;;  %v6712_v27 = vpack.c.bf16 %v2732_v39, %v2728_v36 }
 0x7a0   :  { %4921 = vmatpush1.bf16.msra.mxu0 %v6630_v56  ;;  %v6714_v16 = vpack.c.bf16 %v2729_v51, %v2725_v55 }
 0x7a1   :  { %2508 = vmatmul.mubr.f32.gmra.mrb[28].mxu0 %v6592_v45  ;;  %2621 = vmatmul.mubr.f32.gmra.mrb[28].mxu1 %v6592_v45  ;;  %v6633_v45 = vpack.c.bf16 %v2675_v14, %v2671_v61  ;;  %v2710_v61 = vld [vmem:[#allocation8 + $0x148] sm:$0xff] }
 0x7a2   :  { %2513 = vmatprep.mubr.f32.mxu0 %v5923_v0  ;;  %2626 = vmatprep.mubr.f32.mxu1 %v5923_v0  ;;  %v2714_v14 = vld [vmem:[#allocation8 + $0x168] sm:$0xff] }
 0x7a3   :  { %4953 = vmatpush1.bf16.msra.mxu1 %v6633_v45  ;;  %4923 = vmatprep.subr.bf16.mxu0 %v6638_v18  ;;  %v6684_v29 = vpack.c.bf16 %v2714_v14, %v2710_v61  ;;  %v2727_v61 = vld [vmem:[#allocation8 + $0x1d0] sm:$0xff] }
 0x7a4   :  { %4955 = vmatprep.subr.bf16.mxu1 %v6640_v60  ;;  %4925 = vmatpush1.bf16.msra.mxu0 %v6642_v57  ;;  %v2731_v14 = vld [vmem:[#allocation8 + $0x1f0] sm:$0xff] }
 0x7a5   :  { %4927 = vmatprep.subr.bf16.mxu0 %v6650_v12  ;;  %v6717_v25 = vpack.c.bf16 %v2731_v14, %v2727_v61 }
 0x7a7   :  { %4957 = vmatpush1.bf16.msra.mxu1 %v6645_v30 }
 0x7a8   :  { %4959 = vmatprep.subr.bf16.mxu1 %v6652_v44  ;;  %4929 = vmatpush1.bf16.msra.mxu0 %v6654_v54 }
 0x7a9   :  { %4931 = vmatprep.subr.bf16.mxu0 %v6662_v2 }
 0x7ab   :  { %4961 = vmatpush1.bf16.msra.mxu1 %v6657_v24 }
 0x7ac   :  { %4963 = vmatprep.subr.bf16.mxu1 %v6664_v53  ;;  %4933 = vmatpush1.bf16.msra.mxu0 %v6666_v7 }
 0x7ad   :  { %4935 = vmatprep.subr.bf16.mxu0 %v6673_v48 }
 0x7af   :  { %4965 = vmatpush1.bf16.msra.mxu1 %v6669_v50 }
 0x7b0   :  { %4967 = vmatprep.subr.bf16.mxu1 %v6675_v10  ;;  %4937 = vmatpush1.bf16.msra.mxu0 %v6678_v37 }
 0x7b1   :  { %4939 = vmatprep.subr.bf16.mxu0 %v6684_v29 }
 0x7b3   :  { %4969 = vmatpush1.bf16.msra.mxu1 %v6682_v62 }
 0x7b4   :  { %4971 = vmatprep.subr.bf16.mxu1 %v6686_v47  ;;  %4941 = vmatpush1.bf16.msra.mxu0 %v6689_v13 }
 0x7b5   :  { %4943 = vmatprep.subr.bf16.mxu0 %v6695_v4 }
 0x7b7   :  { %4973 = vmatpush1.bf16.msra.mxu1 %v6693_v41 }
 0x7b8   :  { %4975 = vmatprep.subr.bf16.mxu1 %v6698_v52  ;;  %4945 = vmatpush1.bf16.msra.mxu0 %v6701_v42 }
 0x7b9   :  { %4947 = vmatprep.subr.bf16.mxu0 %v6710_v3 }
 0x7bb   :  { %4977 = vmatpush1.bf16.msra.mxu1 %v6705_v8 }
 0x7bc   :  { %4979 = vmatprep.subr.bf16.mxu1 %v6712_v27  ;;  %4949 = vmatpush1.bf16.msra.mxu0 %v6714_v16 }
 0x7bd   :  { %4983 = vmatprep.subr.bf16.mxu0 %v6626_v40 }
 0x7bf   :  { %4981 = vmatpush1.bf16.msra.mxu1 %v6717_v25 }
 0x7c0   :  { %5015 = vmatprep.subr.bf16.mxu1 %v6628_v46 }
 0x83c   :  { %v2208_v33 = vpop.f32.mrb[14].mxu0  ;;  %v2279_v17 = vpop.f32.mrb[14].mxu1 }
 0x83d   :  { %v5468_v58 = vadd.f32 %v2208_v33, %v6239_v6  ;;  %v2210_v20 = vpop.f32.mrb[15].mxu0  ;;  %v2281_v31 = vpop.f32.mrb[15].mxu1  ;;  %v5484_v59 = vadd.f32 %v2279_v17, %v6256_v32 }
 0x83e   :  { %v5469_v26 = vadd.f32 %v2210_v20, %v6243_v9  ;;  %v5485_v21 = vadd.f32 %v2281_v31, %v6250_v23 }
 0x83f   :  { %v4262_v19 = vmul.f32 -1.442695, %v5468_v58 }
 0x840   :  { %v4263_v35 = vmul.f32 -1.442695, %v5469_v26  ;;  %v4264_v38 = vmul.f32 -1.442695, %v5485_v21 }
 0x841   :  { %5704 = vpow2.f32 %v4262_v19 }
 0x842   :  { %5706 = vpow2.f32 %v4263_v35 }
 0x843   :  { %5708 = vpow2.f32 %v4264_v38 }
 0x844   :  { %5710 = vtanh.f32 %v5484_v59 }
 0x84b   :  { %v5705_v15 = vpop.eup %5704 }
 0x84c   :  { %v5707_v34 = vpop.eup %5706  ;;  %v2291_v43 = vadd.f32 1.0, %v5705_v15 }
 0x84d   :  { %v2297_v49 = vadd.f32 1.0, %v5707_v34  ;;  %v5709_v6 = vpop.eup %5708 }
 0x84e   :  { %5712 = vrcp.f32 %v2291_v43  ;;  %v5711_v36 = vpop.eup %5710  ;;  %v2304_v51 = vadd.f32 1.0, %v5709_v6 }
 0x84f   :  { %5714 = vrcp.f32 %v2297_v49 }
 0x850   :  { %5716 = vrcp.f32 %v2304_v51 }
 0x858   :  { %v5713_v9 = vpop.eup %5712 }
 0x859   :  { %v5715_v39 = vpop.eup %5714  ;;  %v2308_v55 = vmul.f32 %v5713_v9, %v5711_v36 }
 0x85a   :  { %v2307_v61 = vmul.f32 %v5715_v39, %v6589_v22  ;;  %v5717_v32 = vpop.eup %5716  ;;  %v2385_v22 = vld [vmem:[%s7110_s6] sm:$0xf] }
 0x85b   :  { %v6772_v17 = vrot.slane %v2385_v22, %v87_v1  ;;  %v6776_v58 = vrot.slane %v2385_v22, %v91_v5  ;;  %v6782_v15 = vrot.slane %v2385_v22, %v99_v11  ;;  %v6787_v5 = vrot.slane %v2385_v22, %v95_v28 }
 0x85c   :  { %v2309_v23 = vadd.f32 %v2308_v55, %v2307_v61 }
 0x85e   :  { %5718 = vtanh.f32 %v2309_v23 }
 0x868   :  { %v5719_v14 = vpop.eup %5718 }
 0x869   :  { %v2311_v33 = vmul.f32 %v5719_v14, %v5717_v32 }
 0x86b   :  { %2514 = vmatmul.mubr.f32.gmra.mrb[30].mxu0 %v2311_v33  ;;  %2627 = vmatmul.mubr.f32.gmra.mrb[30].mxu1 %v2311_v33 }
 0x86c   :  { %2797 = vmatprep.mubr.f32.mxu0 %v5923_v0  ;;  %2868 = vmatprep.mubr.f32.mxu1 %v5923_v0 }
 0x86f   :  { %2798 = vmatmul.mubr.f32.vlgmr.msra.gmra.mrb[16].mxu0 %v5923_v0  ;;  %2869 = vmatmul.mubr.f32.vlgmr.msra.gmra.mrb[16].mxu1 %v5923_v0 }
 0x870   :  { %4985 = vmatpush1.bf16.msra.mxu0 %v6630_v56  ;;  %5017 = vmatpush1.bf16.msra.mxu1 %v6633_v45 }
 0x871   :  { %4987 = vmatprep.subr.bf16.mxu0 %v6638_v18  ;;  %5019 = vmatprep.subr.bf16.mxu1 %v6640_v60 }
 0x872   :  { %2971 = vmatprep.mubr.f32.mxu0 %v5923_v0  ;;  %3042 = vmatprep.mubr.f32.mxu1 %v5923_v0 }
 0x874   :  { %4989 = vmatpush1.bf16.msra.mxu0 %v6642_v57  ;;  %5021 = vmatpush1.bf16.msra.mxu1 %v6645_v30 }
 0x875   :  { %4991 = vmatprep.subr.bf16.mxu0 %v6650_v12  ;;  %5023 = vmatprep.subr.bf16.mxu1 %v6652_v44 }
 0x878   :  { %4993 = vmatpush1.bf16.msra.mxu0 %v6654_v54  ;;  %5025 = vmatpush1.bf16.msra.mxu1 %v6657_v24 }
 0x879   :  { %4995 = vmatprep.subr.bf16.mxu0 %v6662_v2  ;;  %5027 = vmatprep.subr.bf16.mxu1 %v6664_v53 }
 0x87c   :  { %4997 = vmatpush1.bf16.msra.mxu0 %v6666_v7  ;;  %5029 = vmatpush1.bf16.msra.mxu1 %v6669_v50 }
 0x87d   :  { %4999 = vmatprep.subr.bf16.mxu0 %v6673_v48  ;;  %5031 = vmatprep.subr.bf16.mxu1 %v6675_v10 }
 0x880   :  { %5001 = vmatpush1.bf16.msra.mxu0 %v6678_v37  ;;  %5033 = vmatpush1.bf16.msra.mxu1 %v6682_v62 }
 0x881   :  { %5003 = vmatprep.subr.bf16.mxu0 %v6684_v29  ;;  %5035 = vmatprep.subr.bf16.mxu1 %v6686_v47 }
 0x884   :  { %5005 = vmatpush1.bf16.msra.mxu0 %v6689_v13  ;;  %5037 = vmatpush1.bf16.msra.mxu1 %v6693_v41 }
 0x885   :  { %5007 = vmatprep.subr.bf16.mxu0 %v6695_v4  ;;  %5039 = vmatprep.subr.bf16.mxu1 %v6698_v52 }
 0x888   :  { %5009 = vmatpush1.bf16.msra.mxu0 %v6701_v42  ;;  %5041 = vmatpush1.bf16.msra.mxu1 %v6705_v8 }
 0x889   :  { %5011 = vmatprep.subr.bf16.mxu0 %v6710_v3  ;;  %5043 = vmatprep.subr.bf16.mxu1 %v6712_v27 }
 0x88c   :  { %5013 = vmatpush1.bf16.msra.mxu0 %v6714_v16  ;;  %5045 = vmatpush1.bf16.msra.mxu1 %v6717_v25 }
 0x88d   :  { %5047 = vmatprep.subr.bf16.mxu0 %v6626_v40  ;;  %5079 = vmatprep.subr.bf16.mxu1 %v6628_v46 }
 0x942   :  { %v2799_v20 = vpop.f32.mrb[16].mxu0  ;;  %v2870_v31 = vpop.f32.mrb[16].mxu1 }
 0x943   :  { %v5486_v26 = vadd.f32 %v2799_v20, %v6772_v17  ;;  %v2801_v19 = vpop.f32.mrb[17].mxu0  ;;  %v2872_v35 = vpop.f32.mrb[17].mxu1  ;;  %v5502_v43 = vadd.f32 %v2870_v31, %v6787_v5 }
 0x944   :  { %v5487_v21 = vadd.f32 %v2801_v19, %v6776_v58  ;;  %v5503_v1 = vadd.f32 %v2872_v35, %v6782_v15 }
 0x945   :  { %v4265_v38 = vmul.f32 -1.442695, %v5486_v26 }
 0x946   :  { %v4266_v59 = vmul.f32 -1.442695, %v5487_v21  ;;  %v4267_v34 = vmul.f32 -1.442695, %v5503_v1 }
 0x947   :  { %5720 = vpow2.f32 %v4265_v38 }
 0x948   :  { %5722 = vpow2.f32 %v4266_v59 }
 0x949   :  { %5724 = vpow2.f32 %v4267_v34 }
 0x94a   :  { %5726 = vtanh.f32 %v5502_v43 }
 0x951   :  { %v5721_v49 = vpop.eup %5720 }
 0x952   :  { %v5723_v6 = vpop.eup %5722  ;;  %v2882_v36 = vadd.f32 1.0, %v5721_v49 }
 0x953   :  { %v2888_v9 = vadd.f32 1.0, %v5723_v6  ;;  %v5725_v11 = vpop.eup %5724 }
 0x954   :  { %5728 = vrcp.f32 %v2882_v36  ;;  %v5727_v39 = vpop.eup %5726  ;;  %v2895_v23 = vadd.f32 1.0, %v5725_v11 }
 0x955   :  { %5730 = vrcp.f32 %v2888_v9 }
 0x956   :  { %5732 = vrcp.f32 %v2895_v23 }
 0x95e   :  { %v5729_v55 = vpop.eup %5728 }
 0x95f   :  { %v5731_v51 = vpop.eup %5730  ;;  %v2899_v61 = vmul.f32 %v5729_v55, %v5727_v39 }
 0x960   :  { %v2898_v63 = vmul.f32 0.0, %v5731_v51  ;;  %v5733_v32 = vpop.eup %5732 }
 0x962   :  { %v6790_v28 = vadd.f32 %v2899_v61, %v2898_v63 }
 0x964   :  { %5734 = vtanh.f32 %v6790_v28 }
 0x96e   :  { %v5735_v14 = vpop.eup %5734 }
 0x96f   :  { %v2902_v33 = vmul.f32 %v5735_v14, %v5733_v32 }
 0x971   :  { %2972 = vmatmul.mubr.f32.vlgmr.msra.gmra.mrb[18].mxu0 %v2902_v33  ;;  %3043 = vmatmul.mubr.f32.vlgmr.msra.gmra.mrb[18].mxu1 %v2902_v33 }
 0x972   :  { %5049 = vmatpush1.bf16.msra.mxu0 %v6630_v56  ;;  %5081 = vmatpush1.bf16.msra.mxu1 %v6633_v45 }
 0x973   :  { %5051 = vmatprep.subr.bf16.mxu0 %v6638_v18  ;;  %5083 = vmatprep.subr.bf16.mxu1 %v6640_v60 }
 0x974   :  { %3145 = vmatprep.mubr.f32.mxu0 %v5923_v0  ;;  %3216 = vmatprep.mubr.f32.mxu1 %v5923_v0 }
 0x976   :  { %5053 = vmatpush1.bf16.msra.mxu0 %v6642_v57  ;;  %5085 = vmatpush1.bf16.msra.mxu1 %v6645_v30 }
 0x977   :  { %5055 = vmatprep.subr.bf16.mxu0 %v6650_v12  ;;  %5087 = vmatprep.subr.bf16.mxu1 %v6652_v44 }
 0x97a   :  { %5057 = vmatpush1.bf16.msra.mxu0 %v6654_v54  ;;  %5089 = vmatpush1.bf16.msra.mxu1 %v6657_v24 }
 0x97b   :  { %5059 = vmatprep.subr.bf16.mxu0 %v6662_v2  ;;  %5091 = vmatprep.subr.bf16.mxu1 %v6664_v53 }
 0x97e   :  { %5061 = vmatpush1.bf16.msra.mxu0 %v6666_v7  ;;  %5093 = vmatpush1.bf16.msra.mxu1 %v6669_v50 }
 0x97f   :  { %5063 = vmatprep.subr.bf16.mxu0 %v6673_v48  ;;  %5095 = vmatprep.subr.bf16.mxu1 %v6675_v10 }
 0x982   :  { %5065 = vmatpush1.bf16.msra.mxu0 %v6678_v37  ;;  %5097 = vmatpush1.bf16.msra.mxu1 %v6682_v62 }
 0x983   :  { %5067 = vmatprep.subr.bf16.mxu0 %v6684_v29  ;;  %5099 = vmatprep.subr.bf16.mxu1 %v6686_v47 }
 0x986   :  { %5069 = vmatpush1.bf16.msra.mxu0 %v6689_v13  ;;  %5101 = vmatpush1.bf16.msra.mxu1 %v6693_v41 }
 0x987   :  { %5071 = vmatprep.subr.bf16.mxu0 %v6695_v4  ;;  %5103 = vmatprep.subr.bf16.mxu1 %v6698_v52 }
 0x98a   :  { %5073 = vmatpush1.bf16.msra.mxu0 %v6701_v42  ;;  %5105 = vmatpush1.bf16.msra.mxu1 %v6705_v8 }
 0x98b   :  { %5075 = vmatprep.subr.bf16.mxu0 %v6710_v3  ;;  %5107 = vmatprep.subr.bf16.mxu1 %v6712_v27 }
 0x98e   :  { %5077 = vmatpush1.bf16.msra.mxu0 %v6714_v16  ;;  %5109 = vmatpush1.bf16.msra.mxu1 %v6717_v25 }
 0x98f   :  { %5111 = vmatprep.subr.bf16.mxu0 %v6626_v40  ;;  %5143 = vmatprep.subr.bf16.mxu1 %v6628_v46 }
 0xa44   :  { %v2973_v22 = vpop.f32.mrb[18].mxu0  ;;  %v3044_v20 = vpop.f32.mrb[18].mxu1 }
 0xa45   :  { %v5488_v31 = vadd.f32 %v2973_v22, %v6772_v17  ;;  %v2975_v26 = vpop.f32.mrb[19].mxu0  ;;  %v3046_v19 = vpop.f32.mrb[19].mxu1  ;;  %v5504_v34 = vadd.f32 %v3044_v20, %v6787_v5 }
 0xa46   :  { %v5489_v35 = vadd.f32 %v2975_v26, %v6776_v58  ;;  %v5505_v59 = vadd.f32 %v3046_v19, %v6782_v15 }
 0xa47   :  { %v4268_v21 = vmul.f32 -1.442695, %v5488_v31 }
 0xa48   :  { %v4269_v38 = vmul.f32 -1.442695, %v5489_v35  ;;  %v4270_v1 = vmul.f32 -1.442695, %v5505_v59 }
 0xa49   :  { %5736 = vpow2.f32 %v4268_v21 }
 0xa4a   :  { %5738 = vpow2.f32 %v4269_v38 }
 0xa4b   :  { %5740 = vpow2.f32 %v4270_v1 }
 0xa4c   :  { %5742 = vtanh.f32 %v5504_v34 }
 0xa53   :  { %v5737_v43 = vpop.eup %5736 }
 0xa54   :  { %v5739_v49 = vpop.eup %5738  ;;  %v3056_v6 = vadd.f32 1.0, %v5737_v43 }
 0xa55   :  { %v3062_v36 = vadd.f32 1.0, %v5739_v49  ;;  %v5741_v9 = vpop.eup %5740 }
 0xa56   :  { %5744 = vrcp.f32 %v3056_v6  ;;  %v5743_v11 = vpop.eup %5742  ;;  %v3069_v61 = vadd.f32 1.0, %v5741_v9 }
 0xa57   :  { %5746 = vrcp.f32 %v3062_v36 }
 0xa58   :  { %5748 = vrcp.f32 %v3069_v61 }
 0xa60   :  { %v5745_v39 = vpop.eup %5744 }
 0xa61   :  { %v5747_v55 = vpop.eup %5746  ;;  %v3073_v51 = vmul.f32 %v5745_v39, %v5743_v11 }
 0xa62   :  { %v3072_v23 = vmul.f32 %v5747_v55, %v6790_v28  ;;  %v5749_v32 = vpop.eup %5748 }
 0xa64   :  { %v6832_v63 = vadd.f32 %v3073_v51, %v3072_v23 }
 0xa66   :  { %5750 = vtanh.f32 %v6832_v63 }
 0xa70   :  { %v5751_v14 = vpop.eup %5750 }
 0xa71   :  { %v3076_v33 = vmul.f32 %v5751_v14, %v5749_v32 }
 0xa73   :  { %3146 = vmatmul.mubr.f32.vlgmr.msra.gmra.mrb[20].mxu0 %v3076_v33  ;;  %3217 = vmatmul.mubr.f32.vlgmr.msra.gmra.mrb[20].mxu1 %v3076_v33 }
 0xa74   :  { %5113 = vmatpush1.bf16.msra.mxu0 %v6630_v56  ;;  %5145 = vmatpush1.bf16.msra.mxu1 %v6633_v45 }
 0xa75   :  { %5115 = vmatprep.subr.bf16.mxu0 %v6638_v18  ;;  %5147 = vmatprep.subr.bf16.mxu1 %v6640_v60 }
 0xa76   :  { %3319 = vmatprep.mubr.f32.mxu0 %v5923_v0  ;;  %3390 = vmatprep.mubr.f32.mxu1 %v5923_v0 }
 0xa78   :  { %5117 = vmatpush1.bf16.msra.mxu0 %v6642_v57  ;;  %5149 = vmatpush1.bf16.msra.mxu1 %v6645_v30 }
 0xa79   :  { %5119 = vmatprep.subr.bf16.mxu0 %v6650_v12  ;;  %5151 = vmatprep.subr.bf16.mxu1 %v6652_v44 }
 0xa7c   :  { %5121 = vmatpush1.bf16.msra.mxu0 %v6654_v54  ;;  %5153 = vmatpush1.bf16.msra.mxu1 %v6657_v24 }
 0xa7d   :  { %5123 = vmatprep.subr.bf16.mxu0 %v6662_v2  ;;  %5155 = vmatprep.subr.bf16.mxu1 %v6664_v53 }
 0xa80   :  { %5125 = vmatpush1.bf16.msra.mxu0 %v6666_v7  ;;  %5157 = vmatpush1.bf16.msra.mxu1 %v6669_v50 }
 0xa81   :  { %5127 = vmatprep.subr.bf16.mxu0 %v6673_v48  ;;  %5159 = vmatprep.subr.bf16.mxu1 %v6675_v10 }
 0xa84   :  { %5129 = vmatpush1.bf16.msra.mxu0 %v6678_v37  ;;  %5161 = vmatpush1.bf16.msra.mxu1 %v6682_v62 }
 0xa85   :  { %5131 = vmatprep.subr.bf16.mxu0 %v6684_v29  ;;  %5163 = vmatprep.subr.bf16.mxu1 %v6686_v47 }
 0xa88   :  { %5133 = vmatpush1.bf16.msra.mxu0 %v6689_v13  ;;  %5165 = vmatpush1.bf16.msra.mxu1 %v6693_v41 }
 0xa89   :  { %5135 = vmatprep.subr.bf16.mxu0 %v6695_v4  ;;  %5167 = vmatprep.subr.bf16.mxu1 %v6698_v52 }
 0xa8c   :  { %5137 = vmatpush1.bf16.msra.mxu0 %v6701_v42  ;;  %5169 = vmatpush1.bf16.msra.mxu1 %v6705_v8 }
 0xa8d   :  { %5139 = vmatprep.subr.bf16.mxu0 %v6710_v3  ;;  %5171 = vmatprep.subr.bf16.mxu1 %v6712_v27 }
 0xa90   :  { %5141 = vmatpush1.bf16.msra.mxu0 %v6714_v16  ;;  %5173 = vmatpush1.bf16.msra.mxu1 %v6717_v25 }
 0xa91   :  { %5175 = vmatprep.subr.bf16.mxu0 %v6626_v40  ;;  %5207 = vmatprep.subr.bf16.mxu1 %v6628_v46 }
 0xb46   :  { %v3147_v28 = vpop.f32.mrb[20].mxu0  ;;  %v3218_v22 = vpop.f32.mrb[20].mxu1 }
 0xb47   :  { %v5490_v20 = vadd.f32 %v3147_v28, %v6772_v17  ;;  %v3149_v31 = vpop.f32.mrb[21].mxu0  ;;  %v3220_v26 = vpop.f32.mrb[21].mxu1  ;;  %v5506_v1 = vadd.f32 %v3218_v22, %v6787_v5 }
 0xb48   :  { %v5491_v19 = vadd.f32 %v3149_v31, %v6776_v58  ;;  %v5507_v38 = vadd.f32 %v3220_v26, %v6782_v15 }
 0xb49   :  { %v4271_v35 = vmul.f32 -1.442695, %v5490_v20 }
 0xb4a   :  { %v4272_v21 = vmul.f32 -1.442695, %v5491_v19  ;;  %v4273_v59 = vmul.f32 -1.442695, %v5507_v38 }
 0xb4b   :  { %5752 = vpow2.f32 %v4271_v35 }
 0xb4c   :  { %5754 = vpow2.f32 %v4272_v21 }
 0xb4d   :  { %5756 = vpow2.f32 %v4273_v59 }
 0xb4e   :  { %5758 = vtanh.f32 %v5506_v1 }
 0xb55   :  { %v5753_v34 = vpop.eup %5752 }
 0xb56   :  { %v5755_v43 = vpop.eup %5754  ;;  %v3230_v49 = vadd.f32 1.0, %v5753_v34 }
 0xb57   :  { %v3236_v6 = vadd.f32 1.0, %v5755_v43  ;;  %v5757_v36 = vpop.eup %5756 }
 0xb58   :  { %5760 = vrcp.f32 %v3230_v49  ;;  %v5759_v9 = vpop.eup %5758  ;;  %v3243_v51 = vadd.f32 1.0, %v5757_v36 }
 0xb59   :  { %5762 = vrcp.f32 %v3236_v6 }
 0xb5a   :  { %5764 = vrcp.f32 %v3243_v51 }
 0xb62   :  { %v5761_v11 = vpop.eup %5760 }
 0xb63   :  { %v5763_v39 = vpop.eup %5762  ;;  %v3247_v55 = vmul.f32 %v5761_v11, %v5759_v9 }
 0xb64   :  { %v3246_v61 = vmul.f32 %v5763_v39, %v6832_v63  ;;  %v5765_v32 = vpop.eup %5764 }
 0xb66   :  { %v6874_v23 = vadd.f32 %v3247_v55, %v3246_v61 }
 0xb68   :  { %5766 = vtanh.f32 %v6874_v23 }
 0xb72   :  { %v5767_v14 = vpop.eup %5766 }
 0xb73   :  { %v3250_v33 = vmul.f32 %v5767_v14, %v5765_v32 }
 0xb75   :  { %3320 = vmatmul.mubr.f32.vlgmr.msra.gmra.mrb[22].mxu0 %v3250_v33  ;;  %3391 = vmatmul.mubr.f32.vlgmr.msra.gmra.mrb[22].mxu1 %v3250_v33 }
 0xb76   :  { %5177 = vmatpush1.bf16.msra.mxu0 %v6630_v56  ;;  %5209 = vmatpush1.bf16.msra.mxu1 %v6633_v45 }
 0xb77   :  { %5179 = vmatprep.subr.bf16.mxu0 %v6638_v18  ;;  %5211 = vmatprep.subr.bf16.mxu1 %v6640_v60 }
 0xb78   :  { %3493 = vmatprep.mubr.f32.mxu0 %v5923_v0  ;;  %3564 = vmatprep.mubr.f32.mxu1 %v5923_v0 }
 0xb7a   :  { %5181 = vmatpush1.bf16.msra.mxu0 %v6642_v57  ;;  %5213 = vmatpush1.bf16.msra.mxu1 %v6645_v30 }
 0xb7b   :  { %5183 = vmatprep.subr.bf16.mxu0 %v6650_v12  ;;  %5215 = vmatprep.subr.bf16.mxu1 %v6652_v44 }
 0xb7e   :  { %5185 = vmatpush1.bf16.msra.mxu0 %v6654_v54  ;;  %5217 = vmatpush1.bf16.msra.mxu1 %v6657_v24 }
 0xb7f   :  { %5187 = vmatprep.subr.bf16.mxu0 %v6662_v2  ;;  %5219 = vmatprep.subr.bf16.mxu1 %v6664_v53 }
 0xb82   :  { %5189 = vmatpush1.bf16.msra.mxu0 %v6666_v7  ;;  %5221 = vmatpush1.bf16.msra.mxu1 %v6669_v50 }
 0xb83   :  { %5191 = vmatprep.subr.bf16.mxu0 %v6673_v48  ;;  %5223 = vmatprep.subr.bf16.mxu1 %v6675_v10 }
 0xb86   :  { %5193 = vmatpush1.bf16.msra.mxu0 %v6678_v37  ;;  %5225 = vmatpush1.bf16.msra.mxu1 %v6682_v62 }
 0xb87   :  { %5195 = vmatprep.subr.bf16.mxu0 %v6684_v29  ;;  %5227 = vmatprep.subr.bf16.mxu1 %v6686_v47 }
 0xb8a   :  { %5197 = vmatpush1.bf16.msra.mxu0 %v6689_v13  ;;  %5229 = vmatpush1.bf16.msra.mxu1 %v6693_v41 }
 0xb8b   :  { %5199 = vmatprep.subr.bf16.mxu0 %v6695_v4  ;;  %5231 = vmatprep.subr.bf16.mxu1 %v6698_v52 }
 0xb8e   :  { %5201 = vmatpush1.bf16.msra.mxu0 %v6701_v42  ;;  %5233 = vmatpush1.bf16.msra.mxu1 %v6705_v8 }
 0xb8f   :  { %5203 = vmatprep.subr.bf16.mxu0 %v6710_v3  ;;  %5235 = vmatprep.subr.bf16.mxu1 %v6712_v27 }
 0xb92   :  { %5205 = vmatpush1.bf16.msra.mxu0 %v6714_v16  ;;  %5237 = vmatpush1.bf16.msra.mxu1 %v6717_v25 }
 0xb93   :  { %5239 = vmatprep.subr.bf16.mxu0 %v6626_v40  ;;  %5271 = vmatprep.subr.bf16.mxu1 %v6628_v46 }
 0xc48   :  { %v3321_v63 = vpop.f32.mrb[22].mxu0  ;;  %v3392_v28 = vpop.f32.mrb[22].mxu1 }
 0xc49   :  { %v5492_v22 = vadd.f32 %v3321_v63, %v6772_v17  ;;  %v3323_v20 = vpop.f32.mrb[23].mxu0  ;;  %v3394_v31 = vpop.f32.mrb[23].mxu1  ;;  %v5508_v59 = vadd.f32 %v3392_v28, %v6787_v5 }
 0xc4a   :  { %v5493_v26 = vadd.f32 %v3323_v20, %v6776_v58  ;;  %v5509_v21 = vadd.f32 %v3394_v31, %v6782_v15 }
 0xc4b   :  { %v4274_v19 = vmul.f32 -1.442695, %v5492_v22 }
 0xc4c   :  { %v4275_v35 = vmul.f32 -1.442695, %v5493_v26  ;;  %v4276_v38 = vmul.f32 -1.442695, %v5509_v21 }
 0xc4d   :  { %5768 = vpow2.f32 %v4274_v19 }
 0xc4e   :  { %5770 = vpow2.f32 %v4275_v35 }
 0xc4f   :  { %5772 = vpow2.f32 %v4276_v38 }
 0xc50   :  { %5774 = vtanh.f32 %v5508_v59 }
 0xc57   :  { %v5769_v1 = vpop.eup %5768 }
 0xc58   :  { %v5771_v34 = vpop.eup %5770  ;;  %v3404_v43 = vadd.f32 1.0, %v5769_v1 }
 0xc59   :  { %v3410_v49 = vadd.f32 1.0, %v5771_v34  ;;  %v5773_v6 = vpop.eup %5772 }
 0xc5a   :  { %5776 = vrcp.f32 %v3404_v43  ;;  %v5775_v36 = vpop.eup %5774  ;;  %v3417_v55 = vadd.f32 1.0, %v5773_v6 }
 0xc5b   :  { %5778 = vrcp.f32 %v3410_v49 }
 0xc5c   :  { %5780 = vrcp.f32 %v3417_v55 }
 0xc64   :  { %v5777_v9 = vpop.eup %5776 }
 0xc65   :  { %v5779_v11 = vpop.eup %5778  ;;  %v3421_v39 = vmul.f32 %v5777_v9, %v5775_v36 }
 0xc66   :  { %v3420_v51 = vmul.f32 %v5779_v11, %v6874_v23  ;;  %v5781_v32 = vpop.eup %5780 }
 0xc68   :  { %v6916_v61 = vadd.f32 %v3421_v39, %v3420_v51 }
 0xc6a   :  { %5782 = vtanh.f32 %v6916_v61 }
 0xc74   :  { %v5783_v14 = vpop.eup %5782 }
 0xc75   :  { %v3424_v33 = vmul.f32 %v5783_v14, %v5781_v32 }
 0xc77   :  { %3494 = vmatmul.mubr.f32.vlgmr.msra.gmra.mrb[24].mxu0 %v3424_v33  ;;  %3565 = vmatmul.mubr.f32.vlgmr.msra.gmra.mrb[24].mxu1 %v3424_v33 }
 0xc78   :  { %5241 = vmatpush1.bf16.msra.mxu0 %v6630_v56  ;;  %5273 = vmatpush1.bf16.msra.mxu1 %v6633_v45 }
 0xc79   :  { %5243 = vmatprep.subr.bf16.mxu0 %v6638_v18  ;;  %5275 = vmatprep.subr.bf16.mxu1 %v6640_v60 }
 0xc7a   :  { %3667 = vmatprep.mubr.f32.mxu0 %v5923_v0  ;;  %3738 = vmatprep.mubr.f32.mxu1 %v5923_v0 }
 0xc7c   :  { %5245 = vmatpush1.bf16.msra.mxu0 %v6642_v57  ;;  %5277 = vmatpush1.bf16.msra.mxu1 %v6645_v30 }
 0xc7d   :  { %5247 = vmatprep.subr.bf16.mxu0 %v6650_v12  ;;  %5279 = vmatprep.subr.bf16.mxu1 %v6652_v44 }
 0xc80   :  { %5249 = vmatpush1.bf16.msra.mxu0 %v6654_v54  ;;  %5281 = vmatpush1.bf16.msra.mxu1 %v6657_v24 }
 0xc81   :  { %5251 = vmatprep.subr.bf16.mxu0 %v6662_v2  ;;  %5283 = vmatprep.subr.bf16.mxu1 %v6664_v53 }
 0xc84   :  { %5253 = vmatpush1.bf16.msra.mxu0 %v6666_v7  ;;  %5285 = vmatpush1.bf16.msra.mxu1 %v6669_v50 }
 0xc85   :  { %5255 = vmatprep.subr.bf16.mxu0 %v6673_v48  ;;  %5287 = vmatprep.subr.bf16.mxu1 %v6675_v10 }
 0xc88   :  { %5257 = vmatpush1.bf16.msra.mxu0 %v6678_v37  ;;  %5289 = vmatpush1.bf16.msra.mxu1 %v6682_v62 }
 0xc89   :  { %5259 = vmatprep.subr.bf16.mxu0 %v6684_v29  ;;  %5291 = vmatprep.subr.bf16.mxu1 %v6686_v47 }
 0xc8c   :  { %5261 = vmatpush1.bf16.msra.mxu0 %v6689_v13  ;;  %5293 = vmatpush1.bf16.msra.mxu1 %v6693_v41 }
 0xc8d   :  { %5263 = vmatprep.subr.bf16.mxu0 %v6695_v4  ;;  %5295 = vmatprep.subr.bf16.mxu1 %v6698_v52 }
 0xc90   :  { %5265 = vmatpush1.bf16.msra.mxu0 %v6701_v42  ;;  %5297 = vmatpush1.bf16.msra.mxu1 %v6705_v8 }
 0xc91   :  { %5267 = vmatprep.subr.bf16.mxu0 %v6710_v3  ;;  %5299 = vmatprep.subr.bf16.mxu1 %v6712_v27 }
 0xc94   :  { %5269 = vmatpush1.bf16.msra.mxu0 %v6714_v16  ;;  %5301 = vmatpush1.bf16.msra.mxu1 %v6717_v25 }
 0xc95   :  { %5303 = vmatprep.subr.bf16.mxu0 %v6626_v40  ;;  %5335 = vmatprep.subr.bf16.mxu1 %v6628_v46 }
 0xd4a   :  { %v3495_v23 = vpop.f32.mrb[24].mxu0  ;;  %v3566_v63 = vpop.f32.mrb[24].mxu1 }
 0xd4b   :  { %v5494_v28 = vadd.f32 %v3495_v23, %v6772_v17  ;;  %v3497_v22 = vpop.f32.mrb[25].mxu0  ;;  %v3568_v20 = vpop.f32.mrb[25].mxu1  ;;  %v5510_v38 = vadd.f32 %v3566_v63, %v6787_v5 }
 0xd4c   :  { %v5495_v31 = vadd.f32 %v3497_v22, %v6776_v58  ;;  %v5511_v35 = vadd.f32 %v3568_v20, %v6782_v15 }
 0xd4d   :  { %v4277_v26 = vmul.f32 -1.442695, %v5494_v28 }
 0xd4e   :  { %v4278_v19 = vmul.f32 -1.442695, %v5495_v31  ;;  %v4279_v21 = vmul.f32 -1.442695, %v5511_v35 }
 0xd4f   :  { %5784 = vpow2.f32 %v4277_v26 }
 0xd50   :  { %5786 = vpow2.f32 %v4278_v19 }
 0xd51   :  { %5788 = vpow2.f32 %v4279_v21 }
 0xd52   :  { %5790 = vtanh.f32 %v5510_v38 }
 0xd59   :  { %v5785_v59 = vpop.eup %5784 }
 0xd5a   :  { %v5787_v1 = vpop.eup %5786  ;;  %v3578_v34 = vadd.f32 1.0, %v5785_v59 }
 0xd5b   :  { %v3584_v43 = vadd.f32 1.0, %v5787_v1  ;;  %v5789_v49 = vpop.eup %5788 }
 0xd5c   :  { %5792 = vrcp.f32 %v3578_v34  ;;  %v5791_v6 = vpop.eup %5790  ;;  %v3591_v39 = vadd.f32 1.0, %v5789_v49 }
 0xd5d   :  { %5794 = vrcp.f32 %v3584_v43 }
 0xd5e   :  { %5796 = vrcp.f32 %v3591_v39 }
 0xd66   :  { %v5793_v36 = vpop.eup %5792 }
 0xd67   :  { %v5795_v9 = vpop.eup %5794  ;;  %v3595_v11 = vmul.f32 %v5793_v36, %v5791_v6 }
 0xd68   :  { %v3594_v55 = vmul.f32 %v5795_v9, %v6916_v61  ;;  %v5797_v32 = vpop.eup %5796 }
 0xd6a   :  { %v6958_v51 = vadd.f32 %v3595_v11, %v3594_v55 }
 0xd6c   :  { %5798 = vtanh.f32 %v6958_v51 }
 0xd76   :  { %v5799_v14 = vpop.eup %5798 }
 0xd77   :  { %v3598_v33 = vmul.f32 %v5799_v14, %v5797_v32  ;;  %v4124_v14 = vld [vmem:[%s7111_s7 + $0x18] sm:$0xff] }
 0xd79   :  { %3668 = vmatmul.mubr.f32.vlgmr.msra.gmra.mrb[26].mxu0 %v3598_v33  ;;  %3739 = vmatmul.mubr.f32.vlgmr.msra.gmra.mrb[26].mxu1 %v3598_v33 }
 0xd7a   :  { %5305 = vmatpush1.bf16.msra.mxu0 %v6630_v56  ;;  %5337 = vmatpush1.bf16.msra.mxu1 %v6633_v45 }
 0xd7b   :  { %5307 = vmatprep.subr.bf16.mxu0 %v6638_v18  ;;  %5339 = vmatprep.subr.bf16.mxu1 %v6640_v60 }
 0xd7c   :  { %3841 = vmatprep.mubr.f32.mxu0 %v5923_v0  ;;  %3912 = vmatprep.mubr.f32.mxu1 %v5923_v0 }
 0xd7e   :  { %5309 = vmatpush1.bf16.msra.mxu0 %v6642_v57  ;;  %5341 = vmatpush1.bf16.msra.mxu1 %v6645_v30 }
 0xd7f   :  { %5311 = vmatprep.subr.bf16.mxu0 %v6650_v12  ;;  %5343 = vmatprep.subr.bf16.mxu1 %v6652_v44 }
 0xd82   :  { %5313 = vmatpush1.bf16.msra.mxu0 %v6654_v54  ;;  %5345 = vmatpush1.bf16.msra.mxu1 %v6657_v24 }
 0xd83   :  { %5315 = vmatprep.subr.bf16.mxu0 %v6662_v2  ;;  %5347 = vmatprep.subr.bf16.mxu1 %v6664_v53 }
 0xd86   :  { %5317 = vmatpush1.bf16.msra.mxu0 %v6666_v7  ;;  %5349 = vmatpush1.bf16.msra.mxu1 %v6669_v50 }
 0xd87   :  { %5319 = vmatprep.subr.bf16.mxu0 %v6673_v48  ;;  %5351 = vmatprep.subr.bf16.mxu1 %v6675_v10 }
 0xd8a   :  { %5321 = vmatpush1.bf16.msra.mxu0 %v6678_v37  ;;  %5353 = vmatpush1.bf16.msra.mxu1 %v6682_v62 }
 0xd8b   :  { %5323 = vmatprep.subr.bf16.mxu0 %v6684_v29  ;;  %5355 = vmatprep.subr.bf16.mxu1 %v6686_v47 }
 0xd8e   :  { %5325 = vmatpush1.bf16.msra.mxu0 %v6689_v13  ;;  %5357 = vmatpush1.bf16.msra.mxu1 %v6693_v41 }
 0xd8f   :  { %5327 = vmatprep.subr.bf16.mxu0 %v6695_v4  ;;  %5359 = vmatprep.subr.bf16.mxu1 %v6698_v52 }
 0xd92   :  { %5329 = vmatpush1.bf16.msra.mxu0 %v6701_v42  ;;  %5361 = vmatpush1.bf16.msra.mxu1 %v6705_v8 }
 0xd93   :  { %5331 = vmatprep.subr.bf16.mxu0 %v6710_v3  ;;  %5363 = vmatprep.subr.bf16.mxu1 %v6712_v27 }
 0xd96   :  { %5333 = vmatpush1.bf16.msra.mxu0 %v6714_v16  ;;  %5365 = vmatpush1.bf16.msra.mxu1 %v6717_v25 }
 0xd97   :  { %5367 = vmatprep.subr.bf16.mxu0 %v6626_v40  ;;  %5399 = vmatprep.subr.bf16.mxu1 %v6628_v46 }
 0xe4c   :  { %v3669_v61 = vpop.f32.mrb[26].mxu0  ;;  %v3740_v23 = vpop.f32.mrb[26].mxu1 }
 0xe4d   :  { %v5496_v63 = vadd.f32 %v3669_v61, %v6772_v17  ;;  %v3671_v28 = vpop.f32.mrb[27].mxu0  ;;  %v3742_v22 = vpop.f32.mrb[27].mxu1  ;;  %v5512_v21 = vadd.f32 %v3740_v23, %v6787_v5  ;;  %v4125_v61 = vld [vmem:[%s7111_s7 + $0x20] sm:$0xff]  ;;  %v4126_v23 = vld [vmem:[%s7111_s7 + $0x28] sm:$0xff] }
 0xe4e   :  { %v5497_v20 = vadd.f32 %v3671_v28, %v6776_v58  ;;  %v5513_v19 = vadd.f32 %v3742_v22, %v6782_v15  ;;  %v4127_v28 = vld [vmem:[%s7111_s7 + $0x30] sm:$0xff]  ;;  %v4128_v22 = vld [vmem:[%s7111_s7 + $0x38] sm:$0xff] }
 0xe4f   :  { %v4280_v31 = vmul.f32 -1.442695, %v5496_v63  ;;  %v5437_v63 = vpack.c.bf16 %v4126_v23, %v4125_v61 }
 0xe50   :  { %v4281_v26 = vmul.f32 -1.442695, %v5497_v20  ;;  %v4282_v35 = vmul.f32 -1.442695, %v5513_v19  ;;  %v5440_v20 = vpack.c.bf16 %v4128_v22, %v4127_v28 }
 0xe51   :  { %5800 = vpow2.f32 %v4280_v31  ;;  %v4129_v31 = vld [vmem:[%s7111_s7 + $0x40] sm:$0xff] }
 0xe52   :  { %5802 = vpow2.f32 %v4281_v26  ;;  %v4130_v26 = vld [vmem:[%s7111_s7 + $0x48] sm:$0xff] }
 0xe53   :  { %5804 = vpow2.f32 %v4282_v35  ;;  %v5443_v19 = vpack.c.bf16 %v4130_v26, %v4129_v31  ;;  %v4131_v35 = vld [vmem:[%s7111_s7 + $0x50] sm:$0xff] }
 0xe54   :  { %5806 = vtanh.f32 %v5512_v21  ;;  %v4132_v21 = vld [vmem:[%s7111_s7 + $0x58] sm:$0xff] }
 0xe5b   :  { %v5801_v40 = vpop.eup %5800 }
 0xe5c   :  { %v5803_v38 = vpop.eup %5802  ;;  %v3752_v46 = vadd.f32 1.0, %v5801_v40  ;;  %v4133_v40 = vld [vmem:[%s7111_s7 + $0x60] sm:$0xff] }
 0xe5d   :  { %v3758_v59 = vadd.f32 1.0, %v5803_v38  ;;  %v5805_v1 = vpop.eup %5804  ;;  %v5446_v38 = vpack.c.bf16 %v4132_v21, %v4131_v35 }
 0xe5e   :  { %5808 = vrcp.f32 %v3752_v46  ;;  %v5807_v34 = vpop.eup %5806  ;;  %v3765_v36 = vadd.f32 1.0, %v5805_v1  ;;  %v4134_v46 = vld [vmem:[%s7111_s7 + $0x68] sm:$0xff]  ;;  %v4135_v1 = vld [vmem:[%s7111_s7 + $0x70] sm:$0xff] }
 0xe5f   :  { %5810 = vrcp.f32 %v3758_v59  ;;  %v5449_v59 = vpack.c.bf16 %v4134_v46, %v4133_v40 }
 0xe60   :  { %5812 = vrcp.f32 %v3765_v36 }
 0xe68   :  { %v5809_v43 = vpop.eup %5808 }
 0xe69   :  { %v5811_v49 = vpop.eup %5810  ;;  %v3769_v6 = vmul.f32 %v5809_v43, %v5807_v34  ;;  %v4136_v34 = vld [vmem:[%s7111_s7 + $0x78] sm:$0xff] }
 0xe6a   :  { %v3768_v9 = vmul.f32 %v5811_v49, %v6958_v51  ;;  %v5813_v39 = vpop.eup %5812  ;;  %v4123_v51 = vld [vmem:[%s7111_s7 + $0x10] sm:$0xff]  ;;  %v5452_v43 = vpack.c.bf16 %v4136_v34, %v4135_v1 }
 0xe6b   :  { %v5434_v33 = vpack.c.bf16 %v4124_v14, %v4123_v51 }
 0xe6c   :  { %v7000_v11 = vadd.f32 %v3769_v6, %v3768_v9 }
 0xe6e   :  { %5814 = vtanh.f32 %v7000_v11 }
 0xe78   :  { %v5815_v55 = vpop.eup %5814 }
 0xe79   :  { %v3772_v32 = vmul.f32 %v5815_v55, %v5813_v39 }
 0xe7b   :  { %3842 = vmatmul.mubr.f32.vlgmr.msra.gmra.mrb[28].mxu0 %v3772_v32  ;;  %3913 = vmatmul.mubr.f32.vlgmr.msra.gmra.mrb[28].mxu1 %v3772_v32 }
 0xe7c   :  { %5369 = vmatpush1.bf16.msra.mxu0 %v6630_v56  ;;  %5401 = vmatpush1.bf16.msra.mxu1 %v6633_v45 }
 0xe7d   :  { %5371 = vmatprep.subr.bf16.mxu0 %v6638_v18  ;;  %5403 = vmatprep.subr.bf16.mxu1 %v6640_v60 }
 0xe7e   :  { %4015 = vmatprep.mubr.f32.mxu0 %v5923_v0  ;;  %4086 = vmatprep.mubr.f32.mxu1 %v5923_v0 }
 0xe80   :  { %5373 = vmatpush1.bf16.msra.mxu0 %v6642_v57  ;;  %5405 = vmatpush1.bf16.msra.mxu1 %v6645_v30 }
 0xe81   :  { %5375 = vmatprep.subr.bf16.mxu0 %v6650_v12  ;;  %5407 = vmatprep.subr.bf16.mxu1 %v6652_v44 }
 0xe84   :  { %5377 = vmatpush1.bf16.msra.mxu0 %v6654_v54  ;;  %5409 = vmatpush1.bf16.msra.mxu1 %v6657_v24 }
 0xe85   :  { %5379 = vmatprep.subr.bf16.mxu0 %v6662_v2  ;;  %5411 = vmatprep.subr.bf16.mxu1 %v6664_v53 }
 0xe88   :  { %5381 = vmatpush1.bf16.msra.mxu0 %v6666_v7  ;;  %5413 = vmatpush1.bf16.msra.mxu1 %v6669_v50 }
 0xe89   :  { %5383 = vmatprep.subr.bf16.mxu0 %v6673_v48  ;;  %5415 = vmatprep.subr.bf16.mxu1 %v6675_v10 }
 0xe8c   :  { %5385 = vmatpush1.bf16.msra.mxu0 %v6678_v37  ;;  %5417 = vmatpush1.bf16.msra.mxu1 %v6682_v62 }
 0xe8d   :  { %5387 = vmatprep.subr.bf16.mxu0 %v6684_v29  ;;  %5419 = vmatprep.subr.bf16.mxu1 %v6686_v47 }
 0xe90   :  { %5389 = vmatpush1.bf16.msra.mxu0 %v6689_v13  ;;  %5421 = vmatpush1.bf16.msra.mxu1 %v6693_v41 }
 0xe91   :  { %5391 = vmatprep.subr.bf16.mxu0 %v6695_v4  ;;  %5423 = vmatprep.subr.bf16.mxu1 %v6698_v52 }
 0xe94   :  { %5393 = vmatpush1.bf16.msra.mxu0 %v6701_v42  ;;  %5425 = vmatpush1.bf16.msra.mxu1 %v6705_v8 }
 0xe95   :  { %5395 = vmatprep.subr.bf16.mxu0 %v6710_v3  ;;  %5427 = vmatprep.subr.bf16.mxu1 %v6712_v27  ;;  %v4121_v3 = vld [vmem:[%s7111_s7] sm:$0xff]  ;;  %v4122_v27 = vld [vmem:[%s7111_s7 + $0x8] sm:$0xff] }
 0xe98   :  { %5397 = vmatpush1.bf16.msra.mxu0 %v6714_v16  ;;  %5429 = vmatpush1.bf16.msra.mxu1 %v6717_v25  ;;  %v5431_v16 = vpack.c.bf16 %v4122_v27, %v4121_v3  ;;  %v5924_v25 = vmov 0.0|0.0  }
 0xe99   :  { %5430 = vmatprep.subr.bf16.mxu0 %v5924_v25 }
 0xf4e   :  { %v3843_v56 = vpop.f32.mrb[28].mxu0  ;;  %v3914_v45 = vpop.f32.mrb[28].mxu1 }
 0xf4f   :  { %v5498_v18 = vadd.f32 %v3843_v56, %v6772_v17  ;;  %v3845_v60 = vpop.f32.mrb[29].mxu0  ;;  %v3916_v57 = vpop.f32.mrb[29].mxu1  ;;  %v5514_v2 = vadd.f32 %v3914_v45, %v6787_v5 }
 0xf50   :  { %v5499_v30 = vadd.f32 %v3845_v60, %v6776_v58  ;;  %v5515_v54 = vadd.f32 %v3916_v57, %v6782_v15 }
 0xf51   :  { %v4283_v12 = vmul.f32 -1.442695, %v5498_v18 }
 0xf52   :  { %v4284_v44 = vmul.f32 -1.442695, %v5499_v30  ;;  %v4285_v24 = vmul.f32 -1.442695, %v5515_v54 }
 0xf53   :  { %5816 = vpow2.f32 %v4283_v12 }
 0xf54   :  { %5818 = vpow2.f32 %v4284_v44 }
 0xf55   :  { %5820 = vpow2.f32 %v4285_v24 }
 0xf56   :  { %5822 = vtanh.f32 %v5514_v2 }
 0xf5d   :  { %v5817_v53 = vpop.eup %5816 }
 0xf5e   :  { %v5819_v7 = vpop.eup %5818  ;;  %v3926_v50 = vadd.f32 1.0, %v5817_v53 }
 0xf5f   :  { %v3932_v48 = vadd.f32 1.0, %v5819_v7  ;;  %v5821_v10 = vpop.eup %5820 }
 0xf60   :  { %5824 = vrcp.f32 %v3926_v50  ;;  %v5823_v37 = vpop.eup %5822  ;;  %v3939_v13 = vadd.f32 1.0, %v5821_v10  ;;  %v4289_v50 = vld [vmem:[%s7112_s8] ss:$0 sm:$0xff] }
 0xf61   :  { %5826 = vrcp.f32 %v3932_v48 }
 0xf62   :  { %5828 = vrcp.f32 %v3939_v13 }
 0xf6a   :  { %v5825_v62 = vpop.eup %5824 }
 0xf6b   :  { %v5827_v29 = vpop.eup %5826  ;;  %v3943_v47 = vmul.f32 %v5825_v62, %v5823_v37 }
 0xf6c   :  { %v3942_v41 = vmul.f32 %v5827_v29, %v7000_v11  ;;  %v5829_v52 = vpop.eup %5828 }
 0xf6e   :  { %v7040_v4 = vadd.f32 %v3943_v47, %v3942_v41 }
 0xf70   :  { %5830 = vtanh.f32 %v7040_v4 }
 0xf7a   :  { %v5831_v42 = vpop.eup %5830 }
 0xf7b   :  { %v3946_v8 = vmul.f32 %v5831_v42, %v5829_v52 }
 0xf7d   :  { %4016 = vmatmul.mubr.f32.vlgmr.msra.gmra.mrb[30].mxu0 %v3946_v8  ;;  %4087 = vmatmul.mubr.f32.vlgmr.msra.gmra.mrb[30].mxu1 %v3946_v8 }
 0xf7e   :  { %5432 = vmatpush3.bf16.msra.mxu0 %v5431_v16  ;;  %4339 = vmatprep.mubr.msk.f32.mxu0 %vm5925_vm2, %v5923_v0 }
 0xf7f   :  { %5433 = vmatprep.subr.bf16.mxu0 %v5924_v25 }
 0xf82   :  { %5435 = vmatpush3.bf16.msra.mxu0 %v5434_v33 }
 0xf83   :  { %5436 = vmatprep.subr.bf16.mxu0 %v5924_v25 }
 0xf86   :  { %5438 = vmatpush3.bf16.msra.mxu0 %v5437_v63 }
 0xf87   :  { %5439 = vmatprep.subr.bf16.mxu0 %v5924_v25 }
 0xf8a   :  { %5441 = vmatpush3.bf16.msra.mxu0 %v5440_v20 }
 0xf8b   :  { %5442 = vmatprep.subr.bf16.mxu0 %v5924_v25 }
 0xf8e   :  { %5444 = vmatpush3.bf16.msra.mxu0 %v5443_v19 }
 0xf8f   :  { %5445 = vmatprep.subr.bf16.mxu0 %v5924_v25 }
 0xf92   :  { %5447 = vmatpush3.bf16.msra.mxu0 %v5446_v38 }
 0xf93   :  { %5448 = vmatprep.subr.bf16.mxu0 %v5924_v25 }
 0xf96   :  { %5450 = vmatpush3.bf16.msra.mxu0 %v5449_v59 }
 0xf97   :  { %5451 = vmatprep.subr.bf16.mxu0 %v5924_v25 }
 0xf9a   :  { %5453 = vmatpush3.bf16.msra.mxu0 %v5452_v43 }
0x1050   :  { %v4017_v49 = vpop.f32.mrb[30].mxu0  ;;  %v4088_v6 = vpop.f32.mrb[30].mxu1 }
0x1051   :  { %v5500_v36 = vadd.f32 %v4017_v49, %v6772_v17  ;;  %v4019_v0 = vpop.f32.mrb[31].mxu0  ;;  %v4090_v9 = vpop.f32.mrb[31].mxu1  ;;  %v5516_v45 = vadd.f32 %v4088_v6, %v6787_v5 }
0x1052   :  { %v5501_v11 = vadd.f32 %v4019_v0, %v6776_v58  ;;  %v5517_v32 = vadd.f32 %v4090_v9, %v6782_v15 }
0x1053   :  { %v4286_v39 = vmul.f32 -1.442695, %v5500_v36 }
0x1054   :  { %v4287_v55 = vmul.f32 -1.442695, %v5501_v11  ;;  %v4288_v56 = vmul.f32 -1.442695, %v5517_v32 }
0x1055   :  { %5832 = vpow2.f32 %v4286_v39 }
0x1056   :  { %5834 = vpow2.f32 %v4287_v55 }
0x1057   :  { %5836 = vpow2.f32 %v4288_v56 }
0x1058   :  { %5838 = vtanh.f32 %v5516_v45 }
0x105f   :  { %v5833_v18 = vpop.eup %5832 }
0x1060   :  { %v5835_v60 = vpop.eup %5834  ;;  %v4100_v57 = vadd.f32 1.0, %v5833_v18 }
0x1061   :  { %v4106_v30 = vadd.f32 1.0, %v5835_v60  ;;  %v5837_v17 = vpop.eup %5836 }
0x1062   :  { %5840 = vrcp.f32 %v4100_v57  ;;  %v5839_v12 = vpop.eup %5838  ;;  %v4113_v24 = vadd.f32 1.0, %v5837_v17 }
0x1063   :  { %5842 = vrcp.f32 %v4106_v30 }
0x1064   :  { %5844 = vrcp.f32 %v4113_v24 }
0x106c   :  { %v5841_v58 = vpop.eup %5840 }
0x106d   :  { %v5843_v44 = vpop.eup %5842  ;;  %v4117_v54 = vmul.f32 %v5841_v58, %v5839_v12 }
0x106e   :  { %v4116_v2 = vmul.f32 %v5843_v44, %v7040_v4  ;;  %v5845_v5 = vpop.eup %5844 }
0x1070   :  { %v4118_v15 = vadd.f32 %v4117_v54, %v4116_v2 }
0x1072   :  { %5846 = vtanh.f32 %v4118_v15 }
0x107c   :  { %v5847_v53 = vpop.eup %5846 }
0x107d   :  { %v4120_v7 = vmul.f32 %v5847_v53, %v5845_v5 }
0x107f   :  { %4340 = vmatmul.mubr.f32.vlgmr.msra.gmra.mrb[32].mxu0 %v4120_v7 }
0x1152   :  { %v4210_v48 = vpop.f32.mrb[32].mxu0 }
0x1153   :  { %v4211_v10 = vadd.f32 %v4289_v50, %v4210_v48  ;;  %v4341_v37 = vpop.f32.mrb[33].mxu0 }
0x1155   :  { %4214 = vst.msk [vmem:[%s7113_s9] sm:$0xff] %vm109_vm1, %v4211_v10 }
0x1156   :  { %4219 = vsyncpa [#allocation5], 1 }
0x1157   :  { %4220 = vsyncpa [#allocation7], 1 }

</bundles_post_ra>
